<compile_context>
chip_gen: v5e
topology: v5e:2x2
jax: 0.10.0
libtpu: 0.0.40
codegen_flags: <defaults>
</compile_context>

<pallas_src>
import numpy as np
import jax
import jax.numpy as jnp
from jax.experimental import pallas as pl
from jax.experimental.pallas import tpu as pltpu

_VMEM = pl.BlockSpec(memory_space=pltpu.MemorySpace.VMEM)
_INV_SQRT2 = 0.7071067811865476


def _erf_poly(x):
    # Abramowitz & Stegun 7.1.26 (max abs error 1.5e-7); only +,*,abs,div,exp.
    p = 0.3275911
    c1, c2, c3, c4, c5 = (0.254829592, -0.284496736, 1.421413741,
                          -1.453152027, 1.061405429)
    ax = jnp.abs(x)
    t = 1.0 / (1.0 + p * ax)
    poly = ((((c5 * t + c4) * t + c3) * t + c2) * t + c1) * t
    y = 1.0 - poly * jnp.exp(-ax * ax)
    return jnp.where(x >= 0.0, y, -y)


def _gelu_exact(x):
    return 0.5 * x * (1.0 + _erf_poly(x * _INV_SQRT2))


# --------------------------------------------------------------------------
# Single fused kernel: static path + GAT (time-batched) + GRU + both heads
# --------------------------------------------------------------------------
def _stan_kernel(xs_ref, xall_ref, xallT_ref, adjb_ref, sel_ref,       # data
                 wbig_ref, bcat_ref,                                   # static
                 wgat_ref, a1_ref, u2row_ref,                          # GAT
                 wih3_ref, whh3_ref, bg_ref,                           # GRU
                 wstat_ref, bstat_ref,                                 # static head
                 wfc_rep_ref, wfc_stat_ref, bfc_ref,                   # fc head
                 o_ref):
    f32 = jnp.float32

    def mm(a, b):
        return jnp.dot(a, b, preferred_element_type=f32)

    # ---- static path: all 7 feature blocks as ONE (B,394)@(394,56) matmul ----
    sf = mm(xs_ref[...], wbig_ref[...]) + bcat_ref[...]                 # (B, 7H)
    static_emb = mm(_gelu_exact(sf), wstat_ref[...]) + bstat_ref[...]   # (B, S)

    # ---- GAT layer, batched over all T steps at once ----
    T, B, _ = sel_ref.shape
    G = wgat_ref.shape[1]
    h_all = mm(xall_ref[...], wgat_ref[...])                 # (T*B, G)
    f1 = mm(h_all, a1_ref[...])                              # (T*B, 1)
    f2row = mm(u2row_ref[...], xallT_ref[...])               # (1, T*B) == (x@W@a2)^T
    e = f1 + f2row                                           # (T*B, T*B)
    e = jnp.where(e > 0, e, 0.01 * e)                        # LeakyReLU(0.01)
    logits = jnp.where(adjb_ref[...] > 0.0, e, jnp.float32(-9e15))
    m = jnp.max(logits, axis=1, keepdims=True)
    p = jnp.exp(logits - m)
    s = jnp.sum(p, axis=1, keepdims=True)
    att = p * pl.reciprocal(s, approx=False)                 # softmax over dim=1
    # adjb is block-diagonal (per time-step adj), so one matmul = all T steps.
    hp = mm(att, h_all)                                      # (T*B, G)
    rep_all = jnp.where(hp > 0, hp, jnp.exp(jnp.minimum(hp, 0.0)) - 1.0)  # ELU

    # ---- GRU: input-gate terms precomputed for all steps (no h dependence) ----
    gi_r = mm(rep_all, wih3_ref[0]) + bg_ref[0:1, :]         # includes b_ih_r+b_hh_r
    gi_z = mm(rep_all, wih3_ref[1]) + bg_ref[1:2, :]         # includes b_ih_z+b_hh_z
    gi_n = mm(rep_all, wih3_ref[2]) + bg_ref[2:3, :]         # includes b_ih_n
    b_hn = bg_ref[3:4, :]                                    # b_hh_n (stays inside r*(...))
    whh_r = whh3_ref[0]
    whh_z = whh3_ref[1]
    whh_n = whh3_ref[2]

    # t = 0: h == 0, recurrent matmuls vanish.
    r = jax.nn.sigmoid(gi_r[0:B])
    z = jax.nn.sigmoid(gi_z[0:B])
    n = jnp.tanh(gi_n[0:B] + r * b_hn)
    h = (1.0 - z) * n
    rep_last = sel_ref[0] * h                                # sel: (B,1) one-hot of last visit
    for t in range(1, T):                                    # T static & tiny -> unrolled
        lo = t * B
        gh_r = mm(h, whh_r)
        gh_z = mm(h, whh_z)
        gh_n = mm(h, whh_n) + b_hn
        r = jax.nn.sigmoid(gi_r[lo:lo + B] + gh_r)
        z = jax.nn.sigmoid(gi_z[lo:lo + B] + gh_z)
        n = jnp.tanh(gi_n[lo:lo + B] + r * gh_n)
        h = (1.0 - z) * n + z * h
        rep_last = rep_last + sel_ref[t] * h
    # Precondition: every mask row has >=1 visit (all-zero mask rows select nothing).

    # ---- fused head: GELU + fc (concat replaced by split weight matmuls) ----
    o_ref[...] = (mm(_gelu_exact(rep_last), wfc_rep_ref[...])
                  + mm(_gelu_exact(static_emb), wfc_stat_ref[...])
                  + bfc_ref[...])


def _stan_fused(prep, x_static, x_all, x_allT, adj_blk, sel_t):
    B = x_static.shape[0]
    TL = prep["b_fc"].shape[1]
    return pl.pallas_call(
        _stan_kernel,
        out_shape=jax.ShapeDtypeStruct((B, TL), jnp.float32),
        in_specs=[_VMEM] * 18,
        out_specs=_VMEM,
    )(x_static, x_all, x_allT, adj_blk, sel_t,
      prep["w_big"], prep["b_cat"],
      prep["w_gat"], prep["a1"], prep["u2row"],
      prep["wih3"], prep["whh3"], prep["bg"],
      prep["w_static_t"], prep["b_static"],
      prep["w_fc_rep_t"], prep["w_fc_stat_t"], prep["b_fc"])


# --------------------------------------------------------------------------
# Parameters: torch-layout init + one-time kernel-ready preparation
# --------------------------------------------------------------------------
def init_params(key, gat_hidden=32, hidden=8, static_dim=16, test_length=4):
    G, H, S = gat_hidden, hidden, static_dim
    ks = iter(jax.random.split(key, 40))

    def lin(out_f, in_f):
        bound = 1.0 / (in_f ** 0.5)
        return {"w": jax.random.uniform(next(ks), (out_f, in_f), jnp.float32,
                                        -bound, bound),
                "b": jax.random.uniform(next(ks), (out_f,), jnp.float32,
                                        -bound, bound)}

    def xavier(shape):
        fan = shape[0] + shape[1]
        return jax.random.normal(next(ks), shape, jnp.float32) * (2.0 / fan) ** 0.5 * (2.0 ** 0.5)

    gbound = 1.0 / (G ** 0.5)

    def gru_u(shape):
        return jax.random.uniform(next(ks), shape, jnp.float32, -gbound, gbound)

    return {
        "county": lin(H, 14), "covid": lin(H, 91),
        "vac_time": lin(H, 91), "vac_type": lin(1, 34),
        "hos_time": lin(H, 91), "hos_type": lin(1, 4),
        "claim_time": lin(H, 91), "claim_type": lin(1, 20),
        "cte": lin(H, 3),                                  # county_tensor_emb_linear
        "static": lin(S, 7 * H),
        "fc": lin(test_length, G + S),
        "month_table": jax.random.normal(next(ks), (13, H), jnp.float32) * 0.5,
        "gat": {"W": xavier((19, G)), "a1": xavier((G, 1)), "a2": xavier((G, 1))},
        "gru": {"w_ih": gru_u((3 * G, G)), "w_hh": gru_u((3 * G, G)),
                "b_ih": gru_u((3 * G,)), "b_hh": gru_u((3 * G,))},
    }


def prepare_params(p):
    """One-time weight prep: transposes, per-gate GRU splits, block static weight."""
    H = p["county"]["w"].shape[0]
    G = p["gat"]["W"].shape[1]
    hi = jax.lax.Precision.HIGHEST

    # Block-diagonal static weight (K = 14+91+91+91+91+3+13 = 394, N = 7H = 56).
    blocks = [p["county"]["w"].T, p["covid"]["w"].T,
              p["vac_time"]["w"].T, p["hos_time"]["w"].T, p["claim_time"]["w"].T,
              p["cte"]["w"].T, p["month_table"]]
    biases = [p["county"]["b"], p["covid"]["b"],
              p["vac_time"]["b"], p["hos_time"]["b"], p["claim_time"]["b"],
              p["cte"]["b"], jnp.zeros((H,), jnp.float32)]
    total_in = sum(int(b.shape[0]) for b in blocks)
    w_big = jnp.zeros((total_in, 7 * H), jnp.float32)
    row = 0
    for i, blk in enumerate(blocks):
        w_big = w_big.at[row:row + blk.shape[0], i * H:(i + 1) * H].set(blk)
        row += blk.shape[0]
    b_cat = jnp.concatenate(biases).reshape(1, 7 * H)

    g = p["gru"]
    wih, whh = g["w_ih"], g["w_hh"]                          # (3G, G), torch gate order r,z,n
    wih3 = jnp.stack([wih[0:G].T, wih[G:2 * G].T, wih[2 * G:3 * G].T])     # (3,G,G)
    whh3 = jnp.stack([whh[0:G].T, whh[G:2 * G].T, whh[2 * G:3 * G].T])     # (3,G,G)
    bg = jnp.stack([g["b_ih"][0:G] + g["b_hh"][0:G],
                    g["b_ih"][G:2 * G] + g["b_hh"][G:2 * G],
                    g["b_ih"][2 * G:3 * G],
                    g["b_hh"][2 * G:3 * G]])                 # (4, G)

    fcw = p["fc"]["w"]                                       # (TL, G+S)
    return {
        "w_big": w_big, "b_cat": b_cat,
        "vac_type_w": p["vac_type"]["w"][0], "vac_type_b": p["vac_type"]["b"][0],
        "hos_type_w": p["hos_type"]["w"][0], "hos_type_b": p["hos_type"]["b"][0],
        "claim_type_w": p["claim_type"]["w"][0], "claim_type_b": p["claim_type"]["b"][0],
        "w_gat": p["gat"]["W"], "a1": p["gat"]["a1"],
        "u2row": jnp.dot(p["gat"]["W"], p["gat"]["a2"], precision=hi).T,   # (1, 19)
        "wih3": wih3, "whh3": whh3, "bg": bg,
        "w_static_t": p["static"]["w"].T, "b_static": p["static"]["b"].reshape(1, -1),
        "w_fc_rep_t": fcw[:, :G].T, "w_fc_stat_t": fcw[:, G:].T,
        "b_fc": p["fc"]["b"].reshape(1, -1),
    }


# --------------------------------------------------------------------------
# Forward pass (mirrors STAN.forward); jitted, ONE pallas_call launch total.
# --------------------------------------------------------------------------
def _forward(prep, county, covid, vac, hos, claim, county_tensor_emb,
             X, month, mask, adj):
    hi = jax.lax.Precision.HIGHEST
    B, T, F = X.shape
    # out_features==1 type linears kept as tiny XLA einsums (fuse with concat).
    vac_t = jnp.einsum('bka,a->bk', vac, prep["vac_type_w"], precision=hi) + prep["vac_type_b"]
    hos_t = jnp.einsum('bka,a->bk', hos, prep["hos_type_w"], precision=hi) + prep["hos_type_b"]
    claim_t = jnp.einsum('bka,a->bk', claim, prep["claim_type_w"], precision=hi) + prep["claim_type_b"]
    month_oh = jax.nn.one_hot(month, 13, dtype=jnp.float32)
    x_static = jnp.concatenate(
        [county, covid, vac_t, hos_t, claim_t, county_tensor_emb, month_oh], axis=1)

    x_all = jnp.transpose(X, (1, 0, 2)).reshape(T * B, F)    # row index = t*B + b
    x_allT = jnp.transpose(X, (2, 1, 0)).reshape(F, T * B)   # col index = t*B + b
    adj_blk = jnp.kron(jnp.eye(T, dtype=jnp.float32),
                       (adj > 0).astype(jnp.float32))        # block-diag attention mask
    last = jnp.sum(mask, axis=1).astype(jnp.int32) - 1       # get_last_visit index
    sel_t = jnp.transpose(jax.nn.one_hot(last, T, dtype=jnp.float32),
                          (1, 0))[:, :, None]                # (T, B, 1)

    return _stan_fused(prep, x_static, x_all, x_allT, adj_blk, sel_t)


forward = jax.jit(_forward)


# --------------------------------------------------------------------------
# Pure-JAX reference mirroring the PyTorch module (for numerical check)
# --------------------------------------------------------------------------
def forward_ref(p, county, covid, vac, hos, claim, county_tensor_emb,
                X, month, mask, adj):
    hi = jax.lax.Precision.HIGHEST

    def lin(x, w, b):
        return jnp.dot(x, w.T, precision=hi) + b

    county_f = lin(county, p["county"]["w"], p["county"]["b"])
    covid_f = lin(covid, p["covid"]["w"], p["covid"]["b"])
    vac_f = lin(lin(vac, p["vac_type"]["w"], p["vac_type"]["b"])[..., 0],
                p["vac_time"]["w"], p["vac_time"]["b"])
    hos_f = lin(lin(hos, p["hos_type"]["w"], p["hos_type"]["b"])[..., 0],
                p["hos_time"]["w"], p["hos_time"]["b"])
    claim_f = lin(lin(claim, p["claim_type"]["w"], p["claim_type"]["b"])[..., 0],
                  p["claim_time"]["w"], p["claim_time"]["b"])
    cte_f = lin(county_tensor_emb, p["cte"]["w"], p["cte"]["b"])
    month_f = p["month_table"][month]
    static_features = jnp.concatenate(
        [county_f, covid_f, vac_f, hos_f, claim_f, cte_f, month_f], axis=1)
    static_emb = lin(jax.nn.gelu(static_features, approximate=False),
                     p["static"]["w"], p["static"]["b"])

    W, a1, a2 = p["gat"]["W"], p["gat"]["a1"], p["gat"]["a2"]
    T = X.shape[1]
    reps = []
    for i in range(T):
        h = jnp.dot(X[:, i], W, precision=hi)
        f1 = jnp.dot(h, a1, precision=hi)
        f2 = jnp.dot(h, a2, precision=hi)
        e = f1 + f2.T
        e = jnp.where(e > 0, e, 0.01 * e)
        att = jnp.where(adj > 0, e, -9e15)
        att = jax.nn.softmax(att, axis=1)
        hp = jnp.dot(att, h, precision=hi)
        reps.append(jnp.where(hp > 0, hp, jnp.exp(jnp.minimum(hp, 0.0)) - 1.0))
    rep = jnp.stack(reps, axis=1)

    g = p["gru"]
    G = g["w_hh"].shape[1]
    hstate = jnp.zeros((county.shape[0], G), jnp.float32)
    outs = []
    for t in range(T):
        gi = jnp.dot(rep[:, t], g["w_ih"].T, precision=hi) + g["b_ih"]
        gh = jnp.dot(hstate, g["w_hh"].T, precision=hi) + g["b_hh"]
        ir, iz, inn = jnp.split(gi, 3, axis=1)
        hr, hz, hn = jnp.split(gh, 3, axis=1)
        r = jax.nn.sigmoid(ir + hr)
        z = jax.nn.sigmoid(iz + hz)
        n = jnp.tanh(inn + r * hn)
        hstate = (1.0 - z) * n + z * hstate
        outs.append(hstate)
    hs = jnp.stack(outs, axis=1)
    last = jnp.sum(mask, axis=1).astype(jnp.int32) - 1
    rep_last = jnp.take_along_axis(hs, last[:, None, None], axis=1)[:, 0, :]
    cat = jnp.concatenate([rep_last, static_emb], axis=1)
    return lin(jax.nn.gelu(cat, approximate=False), p["fc"]["w"], p["fc"]["b"])


if __name__ == "__main__":
    key = jax.random.PRNGKey(0)
    GAT_H, HIDDEN, STATIC, TEST_LEN = 32, 8, 16, 4
    B, T = 8, 8                                   # B = number of graph nodes

    kp, kd = jax.random.split(key)
    params = init_params(kp, GAT_H, HIDDEN, STATIC, TEST_LEN)
    prep = prepare_params(params)

    ks = jax.random.split(kd, 10)
    county = jax.random.normal(ks[0], (B, 14), jnp.float32)
    covid = jax.random.normal(ks[1], (B, 91), jnp.float32)
    vac = jax.random.normal(ks[2], (B, 91, 34), jnp.float32)
    hos = jax.random.normal(ks[3], (B, 91, 4), jnp.float32)
    claim = jax.random.normal(ks[4], (B, 91, 20), jnp.float32)
    county_tensor_emb = jax.random.normal(ks[5], (B, 3), jnp.float32)
    X = jax.random.normal(ks[6], (B, T, 19), jnp.float32)
    month = jax.random.randint(ks[7], (B,), 0, 13)
    lengths = jnp.array([8, 5, 3, 1, 8, 2, 7, 4], dtype=jnp.int32)
    mask = (jnp.arange(T)[None, :] < lengths[:, None]).astype(jnp.float32)
    adj = (jax.random.uniform(ks[8], (B, B)) < 0.5).astype(jnp.float32)
    adj = jnp.maximum(adj, jnp.eye(B, dtype=jnp.float32))

    out = forward(prep, county, covid, vac, hos, claim, county_tensor_emb,
                  X, month, mask, adj)
    out = jax.block_until_ready(out)
    assert out.shape == (B, TEST_LEN) and out.dtype == jnp.float32

    ref = jax.block_until_ready(
        forward_ref(params, county, covid, vac, hos, claim, county_tensor_emb,
                    X, month, mask, adj))
    np.testing.assert_allclose(np.asarray(out), np.asarray(ref),
                               rtol=2e-3, atol=2e-3)
    print("KERNEL_OK")
</pallas_src>

<mosaic_0001>
module attributes {stable_mosaic.version = 11 : i64} {
  func.func @_stan_kernel(%arg0: memref<8x394xf32, #tpu.memory_space<vmem>>, %arg1: memref<64x19xf32, #tpu.memory_space<vmem>>, %arg2: memref<19x64xf32, #tpu.memory_space<vmem>>, %arg3: memref<64x64xf32, #tpu.memory_space<vmem>>, %arg4: memref<8x8x1xf32, #tpu.memory_space<vmem>>, %arg5: memref<394x56xf32, #tpu.memory_space<vmem>>, %arg6: memref<1x56xf32, #tpu.memory_space<vmem>>, %arg7: memref<19x32xf32, #tpu.memory_space<vmem>>, %arg8: memref<32x1xf32, #tpu.memory_space<vmem>>, %arg9: memref<1x19xf32, #tpu.memory_space<vmem>>, %arg10: memref<3x32x32xf32, #tpu.memory_space<vmem>>, %arg11: memref<3x32x32xf32, #tpu.memory_space<vmem>>, %arg12: memref<4x32xf32, #tpu.memory_space<vmem>>, %arg13: memref<56x16xf32, #tpu.memory_space<vmem>>, %arg14: memref<1x16xf32, #tpu.memory_space<vmem>>, %arg15: memref<32x4xf32, #tpu.memory_space<vmem>>, %arg16: memref<16x4xf32, #tpu.memory_space<vmem>>, %arg17: memref<1x4xf32, #tpu.memory_space<vmem>>, %arg18: memref<8x4xf32, #tpu.memory_space<vmem>>) attributes {dimension_semantics = [], scalar_prefetch = 0 : i64, scratch_operands = 0 : i64, tpu.core_type = #tpu.core_type<tc>} {
    %c0 = arith.constant 0 : index
    %c0_0 = arith.constant 0 : index
    %0 = vector.load %arg0[%c0, %c0_0] : memref<8x394xf32, #tpu.memory_space<vmem>>, vector<8x394xf32>
    %c0_1 = arith.constant 0 : index
    %c0_2 = arith.constant 0 : index
    %1 = vector.load %arg5[%c0_1, %c0_2] : memref<394x56xf32, #tpu.memory_space<vmem>>, vector<394x56xf32>
    %cst = arith.constant dense<0.000000e+00> : vector<8x56xf32>
    %2 = tpu.matmul %0, %1, %cst {dimension_numbers = #tpu.dot_dimension_numbers<[1], [0], [0], [1], [0, 0, 1, 1], [], []>} : vector<8x394xf32>, vector<394x56xf32>, vector<8x56xf32> -> vector<8x56xf32>
    %c0_3 = arith.constant 0 : index
    %c0_4 = arith.constant 0 : index
    %3 = vector.load %arg6[%c0_3, %c0_4] : memref<1x56xf32, #tpu.memory_space<vmem>>, vector<1x56xf32>
    %4 = vector.broadcast %3 : vector<1x56xf32> to vector<8x56xf32>
    %5 = arith.addf %2, %4 : vector<8x56xf32>
    %cst_5 = arith.constant 5.000000e-01 : f32
    %6 = vector.broadcast %cst_5 : f32 to vector<8x56xf32>
    %7 = arith.mulf %6, %5 : vector<8x56xf32>
    %cst_6 = arith.constant 0.707106769 : f32
    %8 = vector.broadcast %cst_6 : f32 to vector<8x56xf32>
    %9 = arith.mulf %5, %8 : vector<8x56xf32>
    %10 = math.absf %9 : vector<8x56xf32>
    %cst_7 = arith.constant 0.327591091 : f32
    %11 = vector.broadcast %cst_7 : f32 to vector<8x56xf32>
    %12 = arith.mulf %11, %10 : vector<8x56xf32>
    %cst_8 = arith.constant 1.000000e+00 : f32
    %13 = vector.broadcast %cst_8 : f32 to vector<8x56xf32>
    %14 = arith.addf %13, %12 : vector<8x56xf32>
    %cst_9 = arith.constant 1.000000e+00 : f32
    %15 = vector.broadcast %cst_9 : f32 to vector<8x56xf32>
    %16 = arith.divf %15, %14 : vector<8x56xf32>
    %cst_10 = arith.constant 1.06140542 : f32
    %17 = vector.broadcast %cst_10 : f32 to vector<8x56xf32>
    %18 = arith.mulf %17, %16 : vector<8x56xf32>
    %cst_11 = arith.constant -1.45315206 : f32
    %19 = vector.broadcast %cst_11 : f32 to vector<8x56xf32>
    %20 = arith.addf %18, %19 : vector<8x56xf32>
    %21 = arith.mulf %20, %16 : vector<8x56xf32>
    %cst_12 = arith.constant 1.42141378 : f32
    %22 = vector.broadcast %cst_12 : f32 to vector<8x56xf32>
    %23 = arith.addf %21, %22 : vector<8x56xf32>
    %24 = arith.mulf %23, %16 : vector<8x56xf32>
    %cst_13 = arith.constant -0.284496725 : f32
    %25 = vector.broadcast %cst_13 : f32 to vector<8x56xf32>
    %26 = arith.addf %24, %25 : vector<8x56xf32>
    %27 = arith.mulf %26, %16 : vector<8x56xf32>
    %cst_14 = arith.constant 0.254829586 : f32
    %28 = vector.broadcast %cst_14 : f32 to vector<8x56xf32>
    %29 = arith.addf %27, %28 : vector<8x56xf32>
    %30 = arith.mulf %29, %16 : vector<8x56xf32>
    %cst_15 = arith.constant 0.000000e+00 : f32
    %31 = vector.broadcast %cst_15 : f32 to vector<8x56xf32>
    %32 = arith.subf %31, %10 : vector<8x56xf32>
    %33 = arith.mulf %32, %10 : vector<8x56xf32>
    %34 = math.exp %33 : vector<8x56xf32>
    %35 = arith.mulf %30, %34 : vector<8x56xf32>
    %cst_16 = arith.constant 1.000000e+00 : f32
    %36 = vector.broadcast %cst_16 : f32 to vector<8x56xf32>
    %37 = arith.subf %36, %35 : vector<8x56xf32>
    %cst_17 = arith.constant 0.000000e+00 : f32
    %38 = vector.broadcast %cst_17 : f32 to vector<8x56xf32>
    %39 = arith.cmpf oge, %9, %38 : vector<8x56xf32>
    %cst_18 = arith.constant 0.000000e+00 : f32
    %40 = vector.broadcast %cst_18 : f32 to vector<8x56xf32>
    %41 = arith.subf %40, %37 : vector<8x56xf32>
    %42 = arith.select %39, %37, %41 : vector<8x56xi1>, vector<8x56xf32>
    %cst_19 = arith.constant 1.000000e+00 : f32
    %43 = vector.broadcast %cst_19 : f32 to vector<8x56xf32>
    %44 = arith.addf %43, %42 : vector<8x56xf32>
    %45 = arith.mulf %7, %44 : vector<8x56xf32>
    %c0_20 = arith.constant 0 : index
    %c0_21 = arith.constant 0 : index
    %46 = vector.load %arg13[%c0_20, %c0_21] : memref<56x16xf32, #tpu.memory_space<vmem>>, vector<56x16xf32>
    %cst_22 = arith.constant dense<0.000000e+00> : vector<8x16xf32>
    %47 = tpu.matmul %45, %46, %cst_22 {dimension_numbers = #tpu.dot_dimension_numbers<[1], [0], [0], [1], [0, 0, 1, 1], [], []>} : vector<8x56xf32>, vector<56x16xf32>, vector<8x16xf32> -> vector<8x16xf32>
    %c0_23 = arith.constant 0 : index
    %c0_24 = arith.constant 0 : index
    %48 = vector.load %arg14[%c0_23, %c0_24] : memref<1x16xf32, #tpu.memory_space<vmem>>, vector<1x16xf32>
    %49 = vector.broadcast %48 : vector<1x16xf32> to vector<8x16xf32>
    %50 = arith.addf %47, %49 : vector<8x16xf32>
    %c0_25 = arith.constant 0 : index
    %c0_26 = arith.constant 0 : index
    %51 = vector.load %arg1[%c0_25, %c0_26] : memref<64x19xf32, #tpu.memory_space<vmem>>, vector<64x19xf32>
    %c0_27 = arith.constant 0 : index
    %c0_28 = arith.constant 0 : index
    %52 = vector.load %arg7[%c0_27, %c0_28] : memref<19x32xf32, #tpu.memory_space<vmem>>, vector<19x32xf32>
    %cst_29 = arith.constant dense<0.000000e+00> : vector<64x32xf32>
    %53 = tpu.matmul %51, %52, %cst_29 {dimension_numbers = #tpu.dot_dimension_numbers<[1], [0], [0], [1], [0, 0, 1, 1], [], []>} : vector<64x19xf32>, vector<19x32xf32>, vector<64x32xf32> -> vector<64x32xf32>
    %c0_30 = arith.constant 0 : index
    %c0_31 = arith.constant 0 : index
    %54 = vector.load %arg8[%c0_30, %c0_31] : memref<32x1xf32, #tpu.memory_space<vmem>>, vector<32x1xf32>
    %cst_32 = arith.constant dense<0.000000e+00> : vector<64x1xf32>
    %55 = tpu.matmul %53, %54, %cst_32 {dimension_numbers = #tpu.dot_dimension_numbers<[1], [0], [0], [1], [0, 0, 1, 1], [], []>} : vector<64x32xf32>, vector<32x1xf32>, vector<64x1xf32> -> vector<64x1xf32>
    %c0_33 = arith.constant 0 : index
    %c0_34 = arith.constant 0 : index
    %56 = vector.load %arg9[%c0_33, %c0_34] : memref<1x19xf32, #tpu.memory_space<vmem>>, vector<1x19xf32>
    %c0_35 = arith.constant 0 : index
    %c0_36 = arith.constant 0 : index
    %57 = vector.load %arg2[%c0_35, %c0_36] : memref<19x64xf32, #tpu.memory_space<vmem>>, vector<19x64xf32>
    %cst_37 = arith.constant dense<0.000000e+00> : vector<1x64xf32>
    %58 = tpu.matmul %56, %57, %cst_37 {dimension_numbers = #tpu.dot_dimension_numbers<[1], [0], [0], [1], [0, 0, 1, 1], [], []>} : vector<1x19xf32>, vector<19x64xf32>, vector<1x64xf32> -> vector<1x64xf32>
    %59 = vector.broadcast %55 : vector<64x1xf32> to vector<64x64xf32>
    %60 = vector.broadcast %58 : vector<1x64xf32> to vector<64x64xf32>
    %61 = arith.addf %59, %60 : vector<64x64xf32>
    %cst_38 = arith.constant 0.000000e+00 : f32
    %62 = vector.broadcast %cst_38 : f32 to vector<64x64xf32>
    %63 = arith.cmpf ogt, %61, %62 : vector<64x64xf32>
    %cst_39 = arith.constant 0.00999999977 : f32
    %64 = vector.broadcast %cst_39 : f32 to vector<64x64xf32>
    %65 = arith.mulf %64, %61 : vector<64x64xf32>
    %66 = arith.select %63, %61, %65 : vector<64x64xi1>, vector<64x64xf32>
    %c0_40 = arith.constant 0 : index
    %c0_41 = arith.constant 0 : index
    %67 = vector.load %arg3[%c0_40, %c0_41] : memref<64x64xf32, #tpu.memory_space<vmem>>, vector<64x64xf32>
    %cst_42 = arith.constant 0.000000e+00 : f32
    %68 = vector.broadcast %cst_42 : f32 to vector<64x64xf32>
    %69 = arith.cmpf ogt, %67, %68 : vector<64x64xf32>
    %cst_43 = arith.constant -9.000000e+15 : f32
    %70 = vector.broadcast %cst_43 : f32 to vector<64x64xf32>
    %71 = arith.select %69, %66, %70 : vector<64x64xi1>, vector<64x64xf32>
    %cst_44 = arith.constant dense<0xFF800000> : vector<64xf32>
    %72 = vector.multi_reduction <maximumf>, %71, %cst_44 [1] : vector<64x64xf32> to vector<64xf32>
    %73 = vector.shape_cast %72 : vector<64xf32> to vector<64x1xf32>
    %74 = vector.broadcast %73 : vector<64x1xf32> to vector<64x64xf32>
    %75 = arith.subf %71, %74 : vector<64x64xf32>
    %76 = math.exp %75 : vector<64x64xf32>
    %cst_45 = arith.constant dense<0.000000e+00> : vector<64xf32>
    %77 = vector.multi_reduction <add>, %76, %cst_45 [1] : vector<64x64xf32> to vector<64xf32>
    %78 = vector.shape_cast %77 : vector<64xf32> to vector<64x1xf32>
    %79 = tpu.reciprocal %78 : vector<64x1xf32> -> vector<64x1xf32>
    %80 = vector.broadcast %79 : vector<64x1xf32> to vector<64x64xf32>
    %81 = arith.mulf %76, %80 : vector<64x64xf32>
    %cst_46 = arith.constant dense<0.000000e+00> : vector<64x32xf32>
    %82 = tpu.matmul %81, %53, %cst_46 {dimension_numbers = #tpu.dot_dimension_numbers<[1], [0], [0], [1], [0, 0, 1, 1], [], []>} : vector<64x64xf32>, vector<64x32xf32>, vector<64x32xf32> -> vector<64x32xf32>
    %cst_47 = arith.constant 0.000000e+00 : f32
    %83 = vector.broadcast %cst_47 : f32 to vector<64x32xf32>
    %84 = arith.cmpf ogt, %82, %83 : vector<64x32xf32>
    %cst_48 = arith.constant 0.000000e+00 : f32
    %85 = vector.broadcast %cst_48 : f32 to vector<64x32xf32>
    %86 = arith.minimumf %82, %85 : vector<64x32xf32>
    %87 = math.exp %86 : vector<64x32xf32>
    %cst_49 = arith.constant 1.000000e+00 : f32
    %88 = vector.broadcast %cst_49 : f32 to vector<64x32xf32>
    %89 = arith.subf %87, %88 : vector<64x32xf32>
    %90 = arith.select %84, %82, %89 : vector<64x32xi1>, vector<64x32xf32>
    %c0_50 = arith.constant 0 : index
    %c0_51 = arith.constant 0 : index
    %c0_52 = arith.constant 0 : index
    %91 = vector.load %arg10[%c0_50, %c0_51, %c0_52] : memref<3x32x32xf32, #tpu.memory_space<vmem>>, vector<1x32x32xf32>
    %92 = vector.shape_cast %91 : vector<1x32x32xf32> to vector<32x32xf32>
    %cst_53 = arith.constant dense<0.000000e+00> : vector<64x32xf32>
    %93 = tpu.matmul %90, %92, %cst_53 {dimension_numbers = #tpu.dot_dimension_numbers<[1], [0], [0], [1], [0, 0, 1, 1], [], []>} : vector<64x32xf32>, vector<32x32xf32>, vector<64x32xf32> -> vector<64x32xf32>
    %c0_54 = arith.constant 0 : index
    %c0_55 = arith.constant 0 : index
    %94 = vector.load %arg12[%c0_54, %c0_55] : memref<4x32xf32, #tpu.memory_space<vmem>>, vector<1x32xf32>
    %95 = vector.broadcast %94 : vector<1x32xf32> to vector<64x32xf32>
    %96 = arith.addf %93, %95 : vector<64x32xf32>
    %c1 = arith.constant 1 : index
    %c0_56 = arith.constant 0 : index
    %c0_57 = arith.constant 0 : index
    %97 = vector.load %arg10[%c1, %c0_56, %c0_57] : memref<3x32x32xf32, #tpu.memory_space<vmem>>, vector<1x32x32xf32>
    %98 = vector.shape_cast %97 : vector<1x32x32xf32> to vector<32x32xf32>
    %cst_58 = arith.constant dense<0.000000e+00> : vector<64x32xf32>
    %99 = tpu.matmul %90, %98, %cst_58 {dimension_numbers = #tpu.dot_dimension_numbers<[1], [0], [0], [1], [0, 0, 1, 1], [], []>} : vector<64x32xf32>, vector<32x32xf32>, vector<64x32xf32> -> vector<64x32xf32>
    %c1_59 = arith.constant 1 : index
    %c0_60 = arith.constant 0 : index
    %100 = vector.load %arg12[%c1_59, %c0_60] : memref<4x32xf32, #tpu.memory_space<vmem>>, vector<1x32xf32>
    %101 = vector.broadcast %100 : vector<1x32xf32> to vector<64x32xf32>
    %102 = arith.addf %99, %101 : vector<64x32xf32>
    %c2 = arith.constant 2 : index
    %c0_61 = arith.constant 0 : index
    %c0_62 = arith.constant 0 : index
    %103 = vector.load %arg10[%c2, %c0_61, %c0_62] : memref<3x32x32xf32, #tpu.memory_space<vmem>>, vector<1x32x32xf32>
    %104 = vector.shape_cast %103 : vector<1x32x32xf32> to vector<32x32xf32>
    %cst_63 = arith.constant dense<0.000000e+00> : vector<64x32xf32>
    %105 = tpu.matmul %90, %104, %cst_63 {dimension_numbers = #tpu.dot_dimension_numbers<[1], [0], [0], [1], [0, 0, 1, 1], [], []>} : vector<64x32xf32>, vector<32x32xf32>, vector<64x32xf32> -> vector<64x32xf32>
    %c2_64 = arith.constant 2 : index
    %c0_65 = arith.constant 0 : index
    %106 = vector.load %arg12[%c2_64, %c0_65] : memref<4x32xf32, #tpu.memory_space<vmem>>, vector<1x32xf32>
    %107 = vector.broadcast %106 : vector<1x32xf32> to vector<64x32xf32>
    %108 = arith.addf %105, %107 : vector<64x32xf32>
    %c3 = arith.constant 3 : index
    %c0_66 = arith.constant 0 : index
    %109 = vector.load %arg12[%c3, %c0_66] : memref<4x32xf32, #tpu.memory_space<vmem>>, vector<1x32xf32>
    %c0_67 = arith.constant 0 : index
    %c0_68 = arith.constant 0 : index
    %c0_69 = arith.constant 0 : index
    %110 = vector.load %arg11[%c0_67, %c0_68, %c0_69] : memref<3x32x32xf32, #tpu.memory_space<vmem>>, vector<1x32x32xf32>
    %111 = vector.shape_cast %110 : vector<1x32x32xf32> to vector<32x32xf32>
    %c1_70 = arith.constant 1 : index
    %c0_71 = arith.constant 0 : index
    %c0_72 = arith.constant 0 : index
    %112 = vector.load %arg11[%c1_70, %c0_71, %c0_72] : memref<3x32x32xf32, #tpu.memory_space<vmem>>, vector<1x32x32xf32>
    %113 = vector.shape_cast %112 : vector<1x32x32xf32> to vector<32x32xf32>
    %c2_73 = arith.constant 2 : index
    %c0_74 = arith.constant 0 : index
    %c0_75 = arith.constant 0 : index
    %114 = vector.load %arg11[%c2_73, %c0_74, %c0_75] : memref<3x32x32xf32, #tpu.memory_space<vmem>>, vector<1x32x32xf32>
    %115 = vector.shape_cast %114 : vector<1x32x32xf32> to vector<32x32xf32>
    %116 = vector.extract_strided_slice %96 {offsets = [0, 0], sizes = [8, 32], strides = [1, 1]} : vector<64x32xf32> to vector<8x32xf32>
    %117 = arith.negf %116 : vector<8x32xf32>
    %118 = math.exp %117 : vector<8x32xf32>
    %cst_76 = arith.constant 1.000000e+00 : f32
    %119 = vector.broadcast %cst_76 : f32 to vector<8x32xf32>
    %120 = arith.addf %119, %118 : vector<8x32xf32>
    %121 = arith.divf %119, %120 : vector<8x32xf32>
    %122 = vector.extract_strided_slice %102 {offsets = [0, 0], sizes = [8, 32], strides = [1, 1]} : vector<64x32xf32> to vector<8x32xf32>
    %123 = arith.negf %122 : vector<8x32xf32>
    %124 = math.exp %123 : vector<8x32xf32>
    %cst_77 = arith.constant 1.000000e+00 : f32
    %125 = vector.broadcast %cst_77 : f32 to vector<8x32xf32>
    %126 = arith.addf %125, %124 : vector<8x32xf32>
    %127 = arith.divf %125, %126 : vector<8x32xf32>
    %128 = vector.extract_strided_slice %108 {offsets = [0, 0], sizes = [8, 32], strides = [1, 1]} : vector<64x32xf32> to vector<8x32xf32>
    %129 = vector.broadcast %109 : vector<1x32xf32> to vector<8x32xf32>
    %130 = arith.mulf %121, %129 : vector<8x32xf32>
    %131 = arith.addf %128, %130 : vector<8x32xf32>
    %132 = math.tanh %131 : vector<8x32xf32>
    %cst_78 = arith.constant 1.000000e+00 : f32
    %133 = vector.broadcast %cst_78 : f32 to vector<8x32xf32>
    %134 = arith.subf %133, %127 : vector<8x32xf32>
    %135 = arith.mulf %134, %132 : vector<8x32xf32>
    %c0_79 = arith.constant 0 : index
    %c0_80 = arith.constant 0 : index
    %c0_81 = arith.constant 0 : index
    %136 = vector.load %arg4[%c0_79, %c0_80, %c0_81] : memref<8x8x1xf32, #tpu.memory_space<vmem>>, vector<1x8x1xf32>
    %137 = vector.shape_cast %136 : vector<1x8x1xf32> to vector<8x1xf32>
    %138 = vector.broadcast %137 : vector<8x1xf32> to vector<8x32xf32>
    %139 = arith.mulf %138, %135 : vector<8x32xf32>
    %cst_82 = arith.constant dense<0.000000e+00> : vector<8x32xf32>
    %140 = tpu.matmul %135, %111, %cst_82 {dimension_numbers = #tpu.dot_dimension_numbers<[1], [0], [0], [1], [0, 0, 1, 1], [], []>} : vector<8x32xf32>, vector<32x32xf32>, vector<8x32xf32> -> vector<8x32xf32>
    %cst_83 = arith.constant dense<0.000000e+00> : vector<8x32xf32>
    %141 = tpu.matmul %135, %113, %cst_83 {dimension_numbers = #tpu.dot_dimension_numbers<[1], [0], [0], [1], [0, 0, 1, 1], [], []>} : vector<8x32xf32>, vector<32x32xf32>, vector<8x32xf32> -> vector<8x32xf32>
    %cst_84 = arith.constant dense<0.000000e+00> : vector<8x32xf32>
    %142 = tpu.matmul %135, %115, %cst_84 {dimension_numbers = #tpu.dot_dimension_numbers<[1], [0], [0], [1], [0, 0, 1, 1], [], []>} : vector<8x32xf32>, vector<32x32xf32>, vector<8x32xf32> -> vector<8x32xf32>
    %143 = vector.broadcast %109 : vector<1x32xf32> to vector<8x32xf32>
    %144 = arith.addf %142, %143 : vector<8x32xf32>
    %145 = vector.extract_strided_slice %96 {offsets = [8, 0], sizes = [8, 32], strides = [1, 1]} : vector<64x32xf32> to vector<8x32xf32>
    %146 = arith.addf %145, %140 : vector<8x32xf32>
    %147 = arith.negf %146 : vector<8x32xf32>
    %148 = math.exp %147 : vector<8x32xf32>
    %cst_85 = arith.constant 1.000000e+00 : f32
    %149 = vector.broadcast %cst_85 : f32 to vector<8x32xf32>
    %150 = arith.addf %149, %148 : vector<8x32xf32>
    %151 = arith.divf %149, %150 : vector<8x32xf32>
    %152 = vector.extract_strided_slice %102 {offsets = [8, 0], sizes = [8, 32], strides = [1, 1]} : vector<64x32xf32> to vector<8x32xf32>
    %153 = arith.addf %152, %141 : vector<8x32xf32>
    %154 = arith.negf %153 : vector<8x32xf32>
    %155 = math.exp %154 : vector<8x32xf32>
    %cst_86 = arith.constant 1.000000e+00 : f32
    %156 = vector.broadcast %cst_86 : f32 to vector<8x32xf32>
    %157 = arith.addf %156, %155 : vector<8x32xf32>
    %158 = arith.divf %156, %157 : vector<8x32xf32>
    %159 = vector.extract_strided_slice %108 {offsets = [8, 0], sizes = [8, 32], strides = [1, 1]} : vector<64x32xf32> to vector<8x32xf32>
    %160 = arith.mulf %151, %144 : vector<8x32xf32>
    %161 = arith.addf %159, %160 : vector<8x32xf32>
    %162 = math.tanh %161 : vector<8x32xf32>
    %cst_87 = arith.constant 1.000000e+00 : f32
    %163 = vector.broadcast %cst_87 : f32 to vector<8x32xf32>
    %164 = arith.subf %163, %158 : vector<8x32xf32>
    %165 = arith.mulf %164, %162 : vector<8x32xf32>
    %166 = arith.mulf %158, %135 : vector<8x32xf32>
    %167 = arith.addf %165, %166 : vector<8x32xf32>
    %c1_88 = arith.constant 1 : index
    %c0_89 = arith.constant 0 : index
    %c0_90 = arith.constant 0 : index
    %168 = vector.load %arg4[%c1_88, %c0_89, %c0_90] : memref<8x8x1xf32, #tpu.memory_space<vmem>>, vector<1x8x1xf32>
    %169 = vector.shape_cast %168 : vector<1x8x1xf32> to vector<8x1xf32>
    %170 = vector.broadcast %169 : vector<8x1xf32> to vector<8x32xf32>
    %171 = arith.mulf %170, %167 : vector<8x32xf32>
    %172 = arith.addf %139, %171 : vector<8x32xf32>
    %cst_91 = arith.constant dense<0.000000e+00> : vector<8x32xf32>
    %173 = tpu.matmul %167, %111, %cst_91 {dimension_numbers = #tpu.dot_dimension_numbers<[1], [0], [0], [1], [0, 0, 1, 1], [], []>} : vector<8x32xf32>, vector<32x32xf32>, vector<8x32xf32> -> vector<8x32xf32>
    %cst_92 = arith.constant dense<0.000000e+00> : vector<8x32xf32>
    %174 = tpu.matmul %167, %113, %cst_92 {dimension_numbers = #tpu.dot_dimension_numbers<[1], [0], [0], [1], [0, 0, 1, 1], [], []>} : vector<8x32xf32>, vector<32x32xf32>, vector<8x32xf32> -> vector<8x32xf32>
    %cst_93 = arith.constant dense<0.000000e+00> : vector<8x32xf32>
    %175 = tpu.matmul %167, %115, %cst_93 {dimension_numbers = #tpu.dot_dimension_numbers<[1], [0], [0], [1], [0, 0, 1, 1], [], []>} : vector<8x32xf32>, vector<32x32xf32>, vector<8x32xf32> -> vector<8x32xf32>
    %176 = vector.broadcast %109 : vector<1x32xf32> to vector<8x32xf32>
    %177 = arith.addf %175, %176 : vector<8x32xf32>
    %178 = vector.extract_strided_slice %96 {offsets = [16, 0], sizes = [8, 32], strides = [1, 1]} : vector<64x32xf32> to vector<8x32xf32>
    %179 = arith.addf %178, %173 : vector<8x32xf32>
    %180 = arith.negf %179 : vector<8x32xf32>
    %181 = math.exp %180 : vector<8x32xf32>
    %cst_94 = arith.constant 1.000000e+00 : f32
    %182 = vector.broadcast %cst_94 : f32 to vector<8x32xf32>
    %183 = arith.addf %182, %181 : vector<8x32xf32>
    %184 = arith.divf %182, %183 : vector<8x32xf32>
    %185 = vector.extract_strided_slice %102 {offsets = [16, 0], sizes = [8, 32], strides = [1, 1]} : vector<64x32xf32> to vector<8x32xf32>
    %186 = arith.addf %185, %174 : vector<8x32xf32>
    %187 = arith.negf %186 : vector<8x32xf32>
    %188 = math.exp %187 : vector<8x32xf32>
    %cst_95 = arith.constant 1.000000e+00 : f32
    %189 = vector.broadcast %cst_95 : f32 to vector<8x32xf32>
    %190 = arith.addf %189, %188 : vector<8x32xf32>
    %191 = arith.divf %189, %190 : vector<8x32xf32>
    %192 = vector.extract_strided_slice %108 {offsets = [16, 0], sizes = [8, 32], strides = [1, 1]} : vector<64x32xf32> to vector<8x32xf32>
    %193 = arith.mulf %184, %177 : vector<8x32xf32>
    %194 = arith.addf %192, %193 : vector<8x32xf32>
    %195 = math.tanh %194 : vector<8x32xf32>
    %cst_96 = arith.constant 1.000000e+00 : f32
    %196 = vector.broadcast %cst_96 : f32 to vector<8x32xf32>
    %197 = arith.subf %196, %191 : vector<8x32xf32>
    %198 = arith.mulf %197, %195 : vector<8x32xf32>
    %199 = arith.mulf %191, %167 : vector<8x32xf32>
    %200 = arith.addf %198, %199 : vector<8x32xf32>
    %c2_97 = arith.constant 2 : index
    %c0_98 = arith.constant 0 : index
    %c0_99 = arith.constant 0 : index
    %201 = vector.load %arg4[%c2_97, %c0_98, %c0_99] : memref<8x8x1xf32, #tpu.memory_space<vmem>>, vector<1x8x1xf32>
    %202 = vector.shape_cast %201 : vector<1x8x1xf32> to vector<8x1xf32>
    %203 = vector.broadcast %202 : vector<8x1xf32> to vector<8x32xf32>
    %204 = arith.mulf %203, %200 : vector<8x32xf32>
    %205 = arith.addf %172, %204 : vector<8x32xf32>
    %cst_100 = arith.constant dense<0.000000e+00> : vector<8x32xf32>
    %206 = tpu.matmul %200, %111, %cst_100 {dimension_numbers = #tpu.dot_dimension_numbers<[1], [0], [0], [1], [0, 0, 1, 1], [], []>} : vector<8x32xf32>, vector<32x32xf32>, vector<8x32xf32> -> vector<8x32xf32>
    %cst_101 = arith.constant dense<0.000000e+00> : vector<8x32xf32>
    %207 = tpu.matmul %200, %113, %cst_101 {dimension_numbers = #tpu.dot_dimension_numbers<[1], [0], [0], [1], [0, 0, 1, 1], [], []>} : vector<8x32xf32>, vector<32x32xf32>, vector<8x32xf32> -> vector<8x32xf32>
    %cst_102 = arith.constant dense<0.000000e+00> : vector<8x32xf32>
    %208 = tpu.matmul %200, %115, %cst_102 {dimension_numbers = #tpu.dot_dimension_numbers<[1], [0], [0], [1], [0, 0, 1, 1], [], []>} : vector<8x32xf32>, vector<32x32xf32>, vector<8x32xf32> -> vector<8x32xf32>
    %209 = vector.broadcast %109 : vector<1x32xf32> to vector<8x32xf32>
    %210 = arith.addf %208, %209 : vector<8x32xf32>
    %211 = vector.extract_strided_slice %96 {offsets = [24, 0], sizes = [8, 32], strides = [1, 1]} : vector<64x32xf32> to vector<8x32xf32>
    %212 = arith.addf %211, %206 : vector<8x32xf32>
    %213 = arith.negf %212 : vector<8x32xf32>
    %214 = math.exp %213 : vector<8x32xf32>
    %cst_103 = arith.constant 1.000000e+00 : f32
    %215 = vector.broadcast %cst_103 : f32 to vector<8x32xf32>
    %216 = arith.addf %215, %214 : vector<8x32xf32>
    %217 = arith.divf %215, %216 : vector<8x32xf32>
    %218 = vector.extract_strided_slice %102 {offsets = [24, 0], sizes = [8, 32], strides = [1, 1]} : vector<64x32xf32> to vector<8x32xf32>
    %219 = arith.addf %218, %207 : vector<8x32xf32>
    %220 = arith.negf %219 : vector<8x32xf32>
    %221 = math.exp %220 : vector<8x32xf32>
    %cst_104 = arith.constant 1.000000e+00 : f32
    %222 = vector.broadcast %cst_104 : f32 to vector<8x32xf32>
    %223 = arith.addf %222, %221 : vector<8x32xf32>
    %224 = arith.divf %222, %223 : vector<8x32xf32>
    %225 = vector.extract_strided_slice %108 {offsets = [24, 0], sizes = [8, 32], strides = [1, 1]} : vector<64x32xf32> to vector<8x32xf32>
    %226 = arith.mulf %217, %210 : vector<8x32xf32>
    %227 = arith.addf %225, %226 : vector<8x32xf32>
    %228 = math.tanh %227 : vector<8x32xf32>
    %cst_105 = arith.constant 1.000000e+00 : f32
    %229 = vector.broadcast %cst_105 : f32 to vector<8x32xf32>
    %230 = arith.subf %229, %224 : vector<8x32xf32>
    %231 = arith.mulf %230, %228 : vector<8x32xf32>
    %232 = arith.mulf %224, %200 : vector<8x32xf32>
    %233 = arith.addf %231, %232 : vector<8x32xf32>
    %c3_106 = arith.constant 3 : index
    %c0_107 = arith.constant 0 : index
    %c0_108 = arith.constant 0 : index
    %234 = vector.load %arg4[%c3_106, %c0_107, %c0_108] : memref<8x8x1xf32, #tpu.memory_space<vmem>>, vector<1x8x1xf32>
    %235 = vector.shape_cast %234 : vector<1x8x1xf32> to vector<8x1xf32>
    %236 = vector.broadcast %235 : vector<8x1xf32> to vector<8x32xf32>
    %237 = arith.mulf %236, %233 : vector<8x32xf32>
    %238 = arith.addf %205, %237 : vector<8x32xf32>
    %cst_109 = arith.constant dense<0.000000e+00> : vector<8x32xf32>
    %239 = tpu.matmul %233, %111, %cst_109 {dimension_numbers = #tpu.dot_dimension_numbers<[1], [0], [0], [1], [0, 0, 1, 1], [], []>} : vector<8x32xf32>, vector<32x32xf32>, vector<8x32xf32> -> vector<8x32xf32>
    %cst_110 = arith.constant dense<0.000000e+00> : vector<8x32xf32>
    %240 = tpu.matmul %233, %113, %cst_110 {dimension_numbers = #tpu.dot_dimension_numbers<[1], [0], [0], [1], [0, 0, 1, 1], [], []>} : vector<8x32xf32>, vector<32x32xf32>, vector<8x32xf32> -> vector<8x32xf32>
    %cst_111 = arith.constant dense<0.000000e+00> : vector<8x32xf32>
    %241 = tpu.matmul %233, %115, %cst_111 {dimension_numbers = #tpu.dot_dimension_numbers<[1], [0], [0], [1], [0, 0, 1, 1], [], []>} : vector<8x32xf32>, vector<32x32xf32>, vector<8x32xf32> -> vector<8x32xf32>
    %242 = vector.broadcast %109 : vector<1x32xf32> to vector<8x32xf32>
    %243 = arith.addf %241, %242 : vector<8x32xf32>
    %244 = vector.extract_strided_slice %96 {offsets = [32, 0], sizes = [8, 32], strides = [1, 1]} : vector<64x32xf32> to vector<8x32xf32>
    %245 = arith.addf %244, %239 : vector<8x32xf32>
    %246 = arith.negf %245 : vector<8x32xf32>
    %247 = math.exp %246 : vector<8x32xf32>
    %cst_112 = arith.constant 1.000000e+00 : f32
    %248 = vector.broadcast %cst_112 : f32 to vector<8x32xf32>
    %249 = arith.addf %248, %247 : vector<8x32xf32>
    %250 = arith.divf %248, %249 : vector<8x32xf32>
    %251 = vector.extract_strided_slice %102 {offsets = [32, 0], sizes = [8, 32], strides = [1, 1]} : vector<64x32xf32> to vector<8x32xf32>
    %252 = arith.addf %251, %240 : vector<8x32xf32>
    %253 = arith.negf %252 : vector<8x32xf32>
    %254 = math.exp %253 : vector<8x32xf32>
    %cst_113 = arith.constant 1.000000e+00 : f32
    %255 = vector.broadcast %cst_113 : f32 to vector<8x32xf32>
    %256 = arith.addf %255, %254 : vector<8x32xf32>
    %257 = arith.divf %255, %256 : vector<8x32xf32>
    %258 = vector.extract_strided_slice %108 {offsets = [32, 0], sizes = [8, 32], strides = [1, 1]} : vector<64x32xf32> to vector<8x32xf32>
    %259 = arith.mulf %250, %243 : vector<8x32xf32>
    %260 = arith.addf %258, %259 : vector<8x32xf32>
    %261 = math.tanh %260 : vector<8x32xf32>
    %cst_114 = arith.constant 1.000000e+00 : f32
    %262 = vector.broadcast %cst_114 : f32 to vector<8x32xf32>
    %263 = arith.subf %262, %257 : vector<8x32xf32>
    %264 = arith.mulf %263, %261 : vector<8x32xf32>
    %265 = arith.mulf %257, %233 : vector<8x32xf32>
    %266 = arith.addf %264, %265 : vector<8x32xf32>
    %c4 = arith.constant 4 : index
    %c0_115 = arith.constant 0 : index
    %c0_116 = arith.constant 0 : index
    %267 = vector.load %arg4[%c4, %c0_115, %c0_116] : memref<8x8x1xf32, #tpu.memory_space<vmem>>, vector<1x8x1xf32>
    %268 = vector.shape_cast %267 : vector<1x8x1xf32> to vector<8x1xf32>
    %269 = vector.broadcast %268 : vector<8x1xf32> to vector<8x32xf32>
    %270 = arith.mulf %269, %266 : vector<8x32xf32>
    %271 = arith.addf %238, %270 : vector<8x32xf32>
    %cst_117 = arith.constant dense<0.000000e+00> : vector<8x32xf32>
    %272 = tpu.matmul %266, %111, %cst_117 {dimension_numbers = #tpu.dot_dimension_numbers<[1], [0], [0], [1], [0, 0, 1, 1], [], []>} : vector<8x32xf32>, vector<32x32xf32>, vector<8x32xf32> -> vector<8x32xf32>
    %cst_118 = arith.constant dense<0.000000e+00> : vector<8x32xf32>
    %273 = tpu.matmul %266, %113, %cst_118 {dimension_numbers = #tpu.dot_dimension_numbers<[1], [0], [0], [1], [0, 0, 1, 1], [], []>} : vector<8x32xf32>, vector<32x32xf32>, vector<8x32xf32> -> vector<8x32xf32>
    %cst_119 = arith.constant dense<0.000000e+00> : vector<8x32xf32>
    %274 = tpu.matmul %266, %115, %cst_119 {dimension_numbers = #tpu.dot_dimension_numbers<[1], [0], [0], [1], [0, 0, 1, 1], [], []>} : vector<8x32xf32>, vector<32x32xf32>, vector<8x32xf32> -> vector<8x32xf32>
    %275 = vector.broadcast %109 : vector<1x32xf32> to vector<8x32xf32>
    %276 = arith.addf %274, %275 : vector<8x32xf32>
    %277 = vector.extract_strided_slice %96 {offsets = [40, 0], sizes = [8, 32], strides = [1, 1]} : vector<64x32xf32> to vector<8x32xf32>
    %278 = arith.addf %277, %272 : vector<8x32xf32>
    %279 = arith.negf %278 : vector<8x32xf32>
    %280 = math.exp %279 : vector<8x32xf32>
    %cst_120 = arith.constant 1.000000e+00 : f32
    %281 = vector.broadcast %cst_120 : f32 to vector<8x32xf32>
    %282 = arith.addf %281, %280 : vector<8x32xf32>
    %283 = arith.divf %281, %282 : vector<8x32xf32>
    %284 = vector.extract_strided_slice %102 {offsets = [40, 0], sizes = [8, 32], strides = [1, 1]} : vector<64x32xf32> to vector<8x32xf32>
    %285 = arith.addf %284, %273 : vector<8x32xf32>
    %286 = arith.negf %285 : vector<8x32xf32>
    %287 = math.exp %286 : vector<8x32xf32>
    %cst_121 = arith.constant 1.000000e+00 : f32
    %288 = vector.broadcast %cst_121 : f32 to vector<8x32xf32>
    %289 = arith.addf %288, %287 : vector<8x32xf32>
    %290 = arith.divf %288, %289 : vector<8x32xf32>
    %291 = vector.extract_strided_slice %108 {offsets = [40, 0], sizes = [8, 32], strides = [1, 1]} : vector<64x32xf32> to vector<8x32xf32>
    %292 = arith.mulf %283, %276 : vector<8x32xf32>
    %293 = arith.addf %291, %292 : vector<8x32xf32>
    %294 = math.tanh %293 : vector<8x32xf32>
    %cst_122 = arith.constant 1.000000e+00 : f32
    %295 = vector.broadcast %cst_122 : f32 to vector<8x32xf32>
    %296 = arith.subf %295, %290 : vector<8x32xf32>
    %297 = arith.mulf %296, %294 : vector<8x32xf32>
    %298 = arith.mulf %290, %266 : vector<8x32xf32>
    %299 = arith.addf %297, %298 : vector<8x32xf32>
    %c5 = arith.constant 5 : index
    %c0_123 = arith.constant 0 : index
    %c0_124 = arith.constant 0 : index
    %300 = vector.load %arg4[%c5, %c0_123, %c0_124] : memref<8x8x1xf32, #tpu.memory_space<vmem>>, vector<1x8x1xf32>
    %301 = vector.shape_cast %300 : vector<1x8x1xf32> to vector<8x1xf32>
    %302 = vector.broadcast %301 : vector<8x1xf32> to vector<8x32xf32>
    %303 = arith.mulf %302, %299 : vector<8x32xf32>
    %304 = arith.addf %271, %303 : vector<8x32xf32>
    %cst_125 = arith.constant dense<0.000000e+00> : vector<8x32xf32>
    %305 = tpu.matmul %299, %111, %cst_125 {dimension_numbers = #tpu.dot_dimension_numbers<[1], [0], [0], [1], [0, 0, 1, 1], [], []>} : vector<8x32xf32>, vector<32x32xf32>, vector<8x32xf32> -> vector<8x32xf32>
    %cst_126 = arith.constant dense<0.000000e+00> : vector<8x32xf32>
    %306 = tpu.matmul %299, %113, %cst_126 {dimension_numbers = #tpu.dot_dimension_numbers<[1], [0], [0], [1], [0, 0, 1, 1], [], []>} : vector<8x32xf32>, vector<32x32xf32>, vector<8x32xf32> -> vector<8x32xf32>
    %cst_127 = arith.constant dense<0.000000e+00> : vector<8x32xf32>
    %307 = tpu.matmul %299, %115, %cst_127 {dimension_numbers = #tpu.dot_dimension_numbers<[1], [0], [0], [1], [0, 0, 1, 1], [], []>} : vector<8x32xf32>, vector<32x32xf32>, vector<8x32xf32> -> vector<8x32xf32>
    %308 = vector.broadcast %109 : vector<1x32xf32> to vector<8x32xf32>
    %309 = arith.addf %307, %308 : vector<8x32xf32>
    %310 = vector.extract_strided_slice %96 {offsets = [48, 0], sizes = [8, 32], strides = [1, 1]} : vector<64x32xf32> to vector<8x32xf32>
    %311 = arith.addf %310, %305 : vector<8x32xf32>
    %312 = arith.negf %311 : vector<8x32xf32>
    %313 = math.exp %312 : vector<8x32xf32>
    %cst_128 = arith.constant 1.000000e+00 : f32
    %314 = vector.broadcast %cst_128 : f32 to vector<8x32xf32>
    %315 = arith.addf %314, %313 : vector<8x32xf32>
    %316 = arith.divf %314, %315 : vector<8x32xf32>
    %317 = vector.extract_strided_slice %102 {offsets = [48, 0], sizes = [8, 32], strides = [1, 1]} : vector<64x32xf32> to vector<8x32xf32>
    %318 = arith.addf %317, %306 : vector<8x32xf32>
    %319 = arith.negf %318 : vector<8x32xf32>
    %320 = math.exp %319 : vector<8x32xf32>
    %cst_129 = arith.constant 1.000000e+00 : f32
    %321 = vector.broadcast %cst_129 : f32 to vector<8x32xf32>
    %322 = arith.addf %321, %320 : vector<8x32xf32>
    %323 = arith.divf %321, %322 : vector<8x32xf32>
    %324 = vector.extract_strided_slice %108 {offsets = [48, 0], sizes = [8, 32], strides = [1, 1]} : vector<64x32xf32> to vector<8x32xf32>
    %325 = arith.mulf %316, %309 : vector<8x32xf32>
    %326 = arith.addf %324, %325 : vector<8x32xf32>
    %327 = math.tanh %326 : vector<8x32xf32>
    %cst_130 = arith.constant 1.000000e+00 : f32
    %328 = vector.broadcast %cst_130 : f32 to vector<8x32xf32>
    %329 = arith.subf %328, %323 : vector<8x32xf32>
    %330 = arith.mulf %329, %327 : vector<8x32xf32>
    %331 = arith.mulf %323, %299 : vector<8x32xf32>
    %332 = arith.addf %330, %331 : vector<8x32xf32>
    %c6 = arith.constant 6 : index
    %c0_131 = arith.constant 0 : index
    %c0_132 = arith.constant 0 : index
    %333 = vector.load %arg4[%c6, %c0_131, %c0_132] : memref<8x8x1xf32, #tpu.memory_space<vmem>>, vector<1x8x1xf32>
    %334 = vector.shape_cast %333 : vector<1x8x1xf32> to vector<8x1xf32>
    %335 = vector.broadcast %334 : vector<8x1xf32> to vector<8x32xf32>
    %336 = arith.mulf %335, %332 : vector<8x32xf32>
    %337 = arith.addf %304, %336 : vector<8x32xf32>
    %cst_133 = arith.constant dense<0.000000e+00> : vector<8x32xf32>
    %338 = tpu.matmul %332, %111, %cst_133 {dimension_numbers = #tpu.dot_dimension_numbers<[1], [0], [0], [1], [0, 0, 1, 1], [], []>} : vector<8x32xf32>, vector<32x32xf32>, vector<8x32xf32> -> vector<8x32xf32>
    %cst_134 = arith.constant dense<0.000000e+00> : vector<8x32xf32>
    %339 = tpu.matmul %332, %113, %cst_134 {dimension_numbers = #tpu.dot_dimension_numbers<[1], [0], [0], [1], [0, 0, 1, 1], [], []>} : vector<8x32xf32>, vector<32x32xf32>, vector<8x32xf32> -> vector<8x32xf32>
    %cst_135 = arith.constant dense<0.000000e+00> : vector<8x32xf32>
    %340 = tpu.matmul %332, %115, %cst_135 {dimension_numbers = #tpu.dot_dimension_numbers<[1], [0], [0], [1], [0, 0, 1, 1], [], []>} : vector<8x32xf32>, vector<32x32xf32>, vector<8x32xf32> -> vector<8x32xf32>
    %341 = vector.broadcast %109 : vector<1x32xf32> to vector<8x32xf32>
    %342 = arith.addf %340, %341 : vector<8x32xf32>
    %343 = vector.extract_strided_slice %96 {offsets = [56, 0], sizes = [8, 32], strides = [1, 1]} : vector<64x32xf32> to vector<8x32xf32>
    %344 = arith.addf %343, %338 : vector<8x32xf32>
    %345 = arith.negf %344 : vector<8x32xf32>
    %346 = math.exp %345 : vector<8x32xf32>
    %cst_136 = arith.constant 1.000000e+00 : f32
    %347 = vector.broadcast %cst_136 : f32 to vector<8x32xf32>
    %348 = arith.addf %347, %346 : vector<8x32xf32>
    %349 = arith.divf %347, %348 : vector<8x32xf32>
    %350 = vector.extract_strided_slice %102 {offsets = [56, 0], sizes = [8, 32], strides = [1, 1]} : vector<64x32xf32> to vector<8x32xf32>
    %351 = arith.addf %350, %339 : vector<8x32xf32>
    %352 = arith.negf %351 : vector<8x32xf32>
    %353 = math.exp %352 : vector<8x32xf32>
    %cst_137 = arith.constant 1.000000e+00 : f32
    %354 = vector.broadcast %cst_137 : f32 to vector<8x32xf32>
    %355 = arith.addf %354, %353 : vector<8x32xf32>
    %356 = arith.divf %354, %355 : vector<8x32xf32>
    %357 = vector.extract_strided_slice %108 {offsets = [56, 0], sizes = [8, 32], strides = [1, 1]} : vector<64x32xf32> to vector<8x32xf32>
    %358 = arith.mulf %349, %342 : vector<8x32xf32>
    %359 = arith.addf %357, %358 : vector<8x32xf32>
    %360 = math.tanh %359 : vector<8x32xf32>
    %cst_138 = arith.constant 1.000000e+00 : f32
    %361 = vector.broadcast %cst_138 : f32 to vector<8x32xf32>
    %362 = arith.subf %361, %356 : vector<8x32xf32>
    %363 = arith.mulf %362, %360 : vector<8x32xf32>
    %364 = arith.mulf %356, %332 : vector<8x32xf32>
    %365 = arith.addf %363, %364 : vector<8x32xf32>
    %c7 = arith.constant 7 : index
    %c0_139 = arith.constant 0 : index
    %c0_140 = arith.constant 0 : index
    %366 = vector.load %arg4[%c7, %c0_139, %c0_140] : memref<8x8x1xf32, #tpu.memory_space<vmem>>, vector<1x8x1xf32>
    %367 = vector.shape_cast %366 : vector<1x8x1xf32> to vector<8x1xf32>
    %368 = vector.broadcast %367 : vector<8x1xf32> to vector<8x32xf32>
    %369 = arith.mulf %368, %365 : vector<8x32xf32>
    %370 = arith.addf %337, %369 : vector<8x32xf32>
    %cst_141 = arith.constant 5.000000e-01 : f32
    %371 = vector.broadcast %cst_141 : f32 to vector<8x32xf32>
    %372 = arith.mulf %371, %370 : vector<8x32xf32>
    %cst_142 = arith.constant 0.707106769 : f32
    %373 = vector.broadcast %cst_142 : f32 to vector<8x32xf32>
    %374 = arith.mulf %370, %373 : vector<8x32xf32>
    %375 = math.absf %374 : vector<8x32xf32>
    %cst_143 = arith.constant 0.327591091 : f32
    %376 = vector.broadcast %cst_143 : f32 to vector<8x32xf32>
    %377 = arith.mulf %376, %375 : vector<8x32xf32>
    %cst_144 = arith.constant 1.000000e+00 : f32
    %378 = vector.broadcast %cst_144 : f32 to vector<8x32xf32>
    %379 = arith.addf %378, %377 : vector<8x32xf32>
    %cst_145 = arith.constant 1.000000e+00 : f32
    %380 = vector.broadcast %cst_145 : f32 to vector<8x32xf32>
    %381 = arith.divf %380, %379 : vector<8x32xf32>
    %cst_146 = arith.constant 1.06140542 : f32
    %382 = vector.broadcast %cst_146 : f32 to vector<8x32xf32>
    %383 = arith.mulf %382, %381 : vector<8x32xf32>
    %cst_147 = arith.constant -1.45315206 : f32
    %384 = vector.broadcast %cst_147 : f32 to vector<8x32xf32>
    %385 = arith.addf %383, %384 : vector<8x32xf32>
    %386 = arith.mulf %385, %381 : vector<8x32xf32>
    %cst_148 = arith.constant 1.42141378 : f32
    %387 = vector.broadcast %cst_148 : f32 to vector<8x32xf32>
    %388 = arith.addf %386, %387 : vector<8x32xf32>
    %389 = arith.mulf %388, %381 : vector<8x32xf32>
    %cst_149 = arith.constant -0.284496725 : f32
    %390 = vector.broadcast %cst_149 : f32 to vector<8x32xf32>
    %391 = arith.addf %389, %390 : vector<8x32xf32>
    %392 = arith.mulf %391, %381 : vector<8x32xf32>
    %cst_150 = arith.constant 0.254829586 : f32
    %393 = vector.broadcast %cst_150 : f32 to vector<8x32xf32>
    %394 = arith.addf %392, %393 : vector<8x32xf32>
    %395 = arith.mulf %394, %381 : vector<8x32xf32>
    %cst_151 = arith.constant 0.000000e+00 : f32
    %396 = vector.broadcast %cst_151 : f32 to vector<8x32xf32>
    %397 = arith.subf %396, %375 : vector<8x32xf32>
    %398 = arith.mulf %397, %375 : vector<8x32xf32>
    %399 = math.exp %398 : vector<8x32xf32>
    %400 = arith.mulf %395, %399 : vector<8x32xf32>
    %cst_152 = arith.constant 1.000000e+00 : f32
    %401 = vector.broadcast %cst_152 : f32 to vector<8x32xf32>
    %402 = arith.subf %401, %400 : vector<8x32xf32>
    %cst_153 = arith.constant 0.000000e+00 : f32
    %403 = vector.broadcast %cst_153 : f32 to vector<8x32xf32>
    %404 = arith.cmpf oge, %374, %403 : vector<8x32xf32>
    %cst_154 = arith.constant 0.000000e+00 : f32
    %405 = vector.broadcast %cst_154 : f32 to vector<8x32xf32>
    %406 = arith.subf %405, %402 : vector<8x32xf32>
    %407 = arith.select %404, %402, %406 : vector<8x32xi1>, vector<8x32xf32>
    %cst_155 = arith.constant 1.000000e+00 : f32
    %408 = vector.broadcast %cst_155 : f32 to vector<8x32xf32>
    %409 = arith.addf %408, %407 : vector<8x32xf32>
    %410 = arith.mulf %372, %409 : vector<8x32xf32>
    %c0_156 = arith.constant 0 : index
    %c0_157 = arith.constant 0 : index
    %411 = vector.load %arg15[%c0_156, %c0_157] : memref<32x4xf32, #tpu.memory_space<vmem>>, vector<32x4xf32>
    %cst_158 = arith.constant dense<0.000000e+00> : vector<8x4xf32>
    %412 = tpu.matmul %410, %411, %cst_158 {dimension_numbers = #tpu.dot_dimension_numbers<[1], [0], [0], [1], [0, 0, 1, 1], [], []>} : vector<8x32xf32>, vector<32x4xf32>, vector<8x4xf32> -> vector<8x4xf32>
    %cst_159 = arith.constant 5.000000e-01 : f32
    %413 = vector.broadcast %cst_159 : f32 to vector<8x16xf32>
    %414 = arith.mulf %413, %50 : vector<8x16xf32>
    %cst_160 = arith.constant 0.707106769 : f32
    %415 = vector.broadcast %cst_160 : f32 to vector<8x16xf32>
    %416 = arith.mulf %50, %415 : vector<8x16xf32>
    %417 = math.absf %416 : vector<8x16xf32>
    %cst_161 = arith.constant 0.327591091 : f32
    %418 = vector.broadcast %cst_161 : f32 to vector<8x16xf32>
    %419 = arith.mulf %418, %417 : vector<8x16xf32>
    %cst_162 = arith.constant 1.000000e+00 : f32
    %420 = vector.broadcast %cst_162 : f32 to vector<8x16xf32>
    %421 = arith.addf %420, %419 : vector<8x16xf32>
    %cst_163 = arith.constant 1.000000e+00 : f32
    %422 = vector.broadcast %cst_163 : f32 to vector<8x16xf32>
    %423 = arith.divf %422, %421 : vector<8x16xf32>
    %cst_164 = arith.constant 1.06140542 : f32
    %424 = vector.broadcast %cst_164 : f32 to vector<8x16xf32>
    %425 = arith.mulf %424, %423 : vector<8x16xf32>
    %cst_165 = arith.constant -1.45315206 : f32
    %426 = vector.broadcast %cst_165 : f32 to vector<8x16xf32>
    %427 = arith.addf %425, %426 : vector<8x16xf32>
    %428 = arith.mulf %427, %423 : vector<8x16xf32>
    %cst_166 = arith.constant 1.42141378 : f32
    %429 = vector.broadcast %cst_166 : f32 to vector<8x16xf32>
    %430 = arith.addf %428, %429 : vector<8x16xf32>
    %431 = arith.mulf %430, %423 : vector<8x16xf32>
    %cst_167 = arith.constant -0.284496725 : f32
    %432 = vector.broadcast %cst_167 : f32 to vector<8x16xf32>
    %433 = arith.addf %431, %432 : vector<8x16xf32>
    %434 = arith.mulf %433, %423 : vector<8x16xf32>
    %cst_168 = arith.constant 0.254829586 : f32
    %435 = vector.broadcast %cst_168 : f32 to vector<8x16xf32>
    %436 = arith.addf %434, %435 : vector<8x16xf32>
    %437 = arith.mulf %436, %423 : vector<8x16xf32>
    %cst_169 = arith.constant 0.000000e+00 : f32
    %438 = vector.broadcast %cst_169 : f32 to vector<8x16xf32>
    %439 = arith.subf %438, %417 : vector<8x16xf32>
    %440 = arith.mulf %439, %417 : vector<8x16xf32>
    %441 = math.exp %440 : vector<8x16xf32>
    %442 = arith.mulf %437, %441 : vector<8x16xf32>
    %cst_170 = arith.constant 1.000000e+00 : f32
    %443 = vector.broadcast %cst_170 : f32 to vector<8x16xf32>
    %444 = arith.subf %443, %442 : vector<8x16xf32>
    %cst_171 = arith.constant 0.000000e+00 : f32
    %445 = vector.broadcast %cst_171 : f32 to vector<8x16xf32>
    %446 = arith.cmpf oge, %416, %445 : vector<8x16xf32>
    %cst_172 = arith.constant 0.000000e+00 : f32
    %447 = vector.broadcast %cst_172 : f32 to vector<8x16xf32>
    %448 = arith.subf %447, %444 : vector<8x16xf32>
    %449 = arith.select %446, %444, %448 : vector<8x16xi1>, vector<8x16xf32>
    %cst_173 = arith.constant 1.000000e+00 : f32
    %450 = vector.broadcast %cst_173 : f32 to vector<8x16xf32>
    %451 = arith.addf %450, %449 : vector<8x16xf32>
    %452 = arith.mulf %414, %451 : vector<8x16xf32>
    %c0_174 = arith.constant 0 : index
    %c0_175 = arith.constant 0 : index
    %453 = vector.load %arg16[%c0_174, %c0_175] : memref<16x4xf32, #tpu.memory_space<vmem>>, vector<16x4xf32>
    %cst_176 = arith.constant dense<0.000000e+00> : vector<8x4xf32>
    %454 = tpu.matmul %452, %453, %cst_176 {dimension_numbers = #tpu.dot_dimension_numbers<[1], [0], [0], [1], [0, 0, 1, 1], [], []>} : vector<8x16xf32>, vector<16x4xf32>, vector<8x4xf32> -> vector<8x4xf32>
    %455 = arith.addf %412, %454 : vector<8x4xf32>
    %c0_177 = arith.constant 0 : index
    %c0_178 = arith.constant 0 : index
    %456 = vector.load %arg17[%c0_177, %c0_178] : memref<1x4xf32, #tpu.memory_space<vmem>>, vector<1x4xf32>
    %457 = vector.broadcast %456 : vector<1x4xf32> to vector<8x4xf32>
    %458 = arith.addf %455, %457 : vector<8x4xf32>
    %c0_179 = arith.constant 0 : index
    %c0_180 = arith.constant 0 : index
    %459 = vector.load %arg18[%c0_179, %c0_180] : memref<8x4xf32, #tpu.memory_space<vmem>>, vector<8x4xf32>
    tpu.vector_store %arg18[%c0_179, %c0_180], %458 {strides = array<i32>} : memref<8x4xf32, #tpu.memory_space<vmem>>, vector<8x4xf32>,
    return
  }
}

</mosaic_0001>

<bundles_post_ra>
// kernel: _forward.1
= control target key start
LH: loop header
LB: loop body
LE: loop exit
PB: predicated region body
PF: predicated region fallthrough
CT: control target
= control target key end

     0   :  { %vm121_vm0 = vcmask 1041408   ;;  %vm117_vm1 = vcmask 80896   ;;  %vm316_vm5 = vcmask 1042432   ;;  %vm256_vm8 = vcmask 457728   ;;  %s3352_s5 = inlined_call_operand.vmem [shape: f32[394,56], index: 5, kind: input, shape index: {}]   ;;  %s3353_s0 = inlined_call_operand.vmem [shape: f32[8,394], index: 0, kind: input, shape index: {}]   ;;  %s3354_s6 = inlined_call_operand.vmem [shape: f32[1,56], index: 6, kind: input, shape index: {}]   ;;  %s3355_s14 = inlined_call_operand.vmem [shape: f32[1,16], index: 14, kind: input, shape index: {}]   ;;  %s3356_s13 = inlined_call_operand.vmem [shape: f32[56,16], index: 13, kind: input, shape index: {}]   ;;  %s3357_s7 = inlined_call_operand.vmem [shape: f32[19,32], index: 7, kind: input, shape index: {}]   ;;  %s3358_s1 = inlined_call_operand.vmem [shape: f32[64,19], index: 1, kind: input, shape index: {}]   ;;  %s3359_s8 = inlined_call_operand.vmem [shape: f32[32,1], index: 8, kind: input, shape index: {}]   ;;  %s3360_s2 = inlined_call_operand.vmem [shape: f32[19,64], index: 2, kind: input, shape index: {}]   ;;  %s3361_s9 = inlined_call_operand.vmem [shape: f32[1,19], index: 9, kind: input, shape index: {}]   ;;  %s3362_s3 = inlined_call_operand.vmem [shape: f32[64,64], index: 3, kind: input, shape index: {}]   ;;  %s3363_s4 = inlined_call_operand.vmem [shape: f32[8,8,1], index: 4, kind: input, shape index: {}]   ;;  %s3364_s10 = inlined_call_operand.vmem [shape: f32[3,32,32], index: 10, kind: input, shape index: {}]   ;;  %s3365_s12 = inlined_call_operand.vmem [shape: f32[4,32], index: 12, kind: input, shape index: {}]   ;;  %s3366_s11 = inlined_call_operand.vmem [shape: f32[3,32,32], index: 11, kind: input, shape index: {}]   ;;  %s3367_s16 = inlined_call_operand.vmem [shape: f32[16,4], index: 16, kind: input, shape index: {}]   ;;  %s3368_s17 = inlined_call_operand.vmem [shape: f32[1,4], index: 17, kind: input, shape index: {}]   ;;  %s3369_s15 = inlined_call_operand.vmem [shape: f32[32,4], index: 15, kind: input, shape index: {}]   ;;  %s3370_s18 = inlined_call_operand.vmem [shape: f32[8,4], index: 18, kind: output, shape index: {}]  }
   0x1   :  { %3373 = sst [smem:[#allocation2_spill]] %s3352_s5  ;;  %vm291_vm9 = vcmask 154624   ;;  %vm365_vm10 = vcmask 261120   ;;  %vm558_vm13 = vcmask 523264  }
   0x2   :  { %3374 = sst [smem:[#allocation3_spill]] %s3353_s0 }
   0x3   :  { %3375 = sst [smem:[#allocation4_spill]] %s3354_s6 }
   0x4   :  { %s3376_s29 = sld [smem:[#allocation2_spill]] }
   0x5   :  { %s3377_s23 = sld [smem:[#allocation3_spill]] }
   0x6   :  { %s3378_s30 = sld [smem:[#allocation4_spill]] }
   0xa   :  { %v110_v0 = vld [vmem:[%s3376_s29 + $0x178] sm:$0xff]  ;;  %v109_v2 = vld [vmem:[%s3376_s29 + $0x170] sm:$0xff]  ;;  %v108_v5 = vld [vmem:[%s3376_s29 + $0x168] sm:$0xff] }
   0xb   :  { %v78_v1 = vld [vmem:[%s3376_s29 + $0x78] sm:$0xff]  ;;  %165 = vmatpush.msra.mxu2 %v110_v0  ;;  %v77_v3 = vld [vmem:[%s3376_s29 + $0x70] sm:$0xff]  ;;  %v76_v6 = vld [vmem:[%s3376_s29 + $0x68] sm:$0xff] }
   0xc   :  { %125 = vmatpush.msra.mxu0 %v78_v1  ;;  %v94_v4 = vld [vmem:[%s3376_s29 + $0xf8] sm:$0xff]  ;;  %v93_v7 = vld [vmem:[%s3376_s29 + $0xf0] sm:$0xff]  ;;  %v92_v8 = vld [vmem:[%s3376_s29 + $0xe8] sm:$0xff] }
   0xd   :  { %145 = vmatpush.msra.mxu1 %v94_v4  ;;  %166 = vmatpush.msra.mxu2 %v109_v2  ;;  %v107_v9 = vld [vmem:[%s3376_s29 + $0x160] sm:$0xff]  ;;  %v106_v12 = vld [vmem:[%s3376_s29 + $0x158] sm:$0xff]  ;;  %v105_v15 = vld [vmem:[%s3376_s29 + $0x150] sm:$0xff] }
   0xe   :  { %126 = vmatpush.msra.mxu0 %v77_v3  ;;  %v75_v10 = vld [vmem:[%s3376_s29 + $0x60] sm:$0xff]  ;;  %v74_v13 = vld [vmem:[%s3376_s29 + $0x58] sm:$0xff]  ;;  %v73_v16 = vld [vmem:[%s3376_s29 + $0x50] sm:$0xff] }
   0xf   :  { %146 = vmatpush.msra.mxu1 %v93_v7  ;;  %167 = vmatpush.msra.mxu2 %v108_v5  ;;  %v91_v11 = vld [vmem:[%s3376_s29 + $0xe0] sm:$0xff]  ;;  %v90_v14 = vld [vmem:[%s3376_s29 + $0xd8] sm:$0xff]  ;;  %v89_v17 = vld [vmem:[%s3376_s29 + $0xd0] sm:$0xff] }
  0x10   :  { %127 = vmatpush.msra.mxu0 %v76_v6  ;;  %v104_v18 = vld [vmem:[%s3376_s29 + $0x148] sm:$0xff]  ;;  %v103_v21 = vld [vmem:[%s3376_s29 + $0x140] sm:$0xff]  ;;  %v102_v24 = vld [vmem:[%s3376_s29 + $0x138] sm:$0xff] }
  0x11   :  { %147 = vmatpush.msra.mxu1 %v92_v8  ;;  %168 = vmatpush.msra.mxu2 %v107_v9  ;;  %v72_v19 = vld [vmem:[%s3376_s29 + $0x48] sm:$0xff]  ;;  %v71_v22 = vld [vmem:[%s3376_s29 + $0x40] sm:$0xff]  ;;  %v70_v25 = vld [vmem:[%s3376_s29 + $0x38] sm:$0xff] }
  0x12   :  { %128 = vmatpush.msra.mxu0 %v75_v10  ;;  %v88_v20 = vld [vmem:[%s3376_s29 + $0xc8] sm:$0xff]  ;;  %v87_v23 = vld [vmem:[%s3376_s29 + $0xc0] sm:$0xff]  ;;  %v86_v26 = vld [vmem:[%s3376_s29 + $0xb8] sm:$0xff] }
  0x13   :  { %148 = vmatpush.msra.mxu1 %v91_v11  ;;  %169 = vmatpush.msra.mxu2 %v106_v12  ;;  %v112_v27 = vld [vmem:[%s3376_s29 + $0x188] sm:$0x3]  ;;  %v101_v28 = vld [vmem:[%s3376_s29 + $0x130] sm:$0xff]  ;;  %v111_v30 = vld [vmem:[%s3376_s29 + $0x180] sm:$0xff] }
  0x14   :  { %129 = vmatpush.msra.mxu0 %v74_v13  ;;  %v69_v29 = vld [vmem:[%s3376_s29 + $0x30] sm:$0xff]  ;;  %2074 = vmatpush.msk.msra.mxu3 %vm121_vm0, %v112_v27  ;;  %v62_v32 = vld [vmem:[%s3377_s23 + $0x18] sm:$0xff]  ;;  %v100_v33 = vld [vmem:[%s3376_s29 + $0x128] sm:$0xff] }
  0x15   :  { %149 = vmatpush.msra.mxu1 %v90_v14  ;;  %170 = vmatpush.msra.mxu2 %v105_v15  ;;  %v85_v31 = vld [vmem:[%s3376_s29 + $0xb0] sm:$0xff]  ;;  %v68_v34 = vld [vmem:[%s3376_s29 + $0x28] sm:$0xff]  ;;  %v99_v36 = vld [vmem:[%s3376_s29 + $0x120] sm:$0xff] }
  0x16   :  { %130 = vmatpush.msra.mxu0 %v73_v16  ;;  %200 = vmatpush.msra.mxu3 %v111_v30  ;;  %v84_v35 = vld [vmem:[%s3376_s29 + $0xa8] sm:$0xff]  ;;  %v67_v37 = vld [vmem:[%s3376_s29 + $0x20] sm:$0xff]  ;;  %v98_v39 = vld [vmem:[%s3376_s29 + $0x118] sm:$0xff] }
  0x17   :  { %150 = vmatpush.msra.mxu1 %v89_v17  ;;  %171 = vmatpush.msra.mxu2 %v104_v18  ;;  %v83_v38 = vld [vmem:[%s3376_s29 + $0xa0] sm:$0xff]  ;;  %v66_v40 = vld [vmem:[%s3376_s29 + $0x18] sm:$0xff]  ;;  %v97_v42 = vld [vmem:[%s3376_s29 + $0x110] sm:$0xff] }
  0x18   :  { %131 = vmatpush.msra.mxu0 %v72_v19  ;;  %2075 = vmatmul.msk.f32.vlgmr.msra.gmra.mxu3 %vm117_vm1, %v62_v32  ;;  %v82_v41 = vld [vmem:[%s3376_s29 + $0x98] sm:$0xff]  ;;  %v65_v43 = vld [vmem:[%s3376_s29 + $0x10] sm:$0xff]  ;;  %v96_v45 = vld [vmem:[%s3376_s29 + $0x108] sm:$0xff] }
  0x19   :  { %151 = vmatpush.msra.mxu1 %v88_v20  ;;  %172 = vmatpush.msra.mxu2 %v103_v21  ;;  %v81_v44 = vld [vmem:[%s3376_s29 + $0x90] sm:$0xff]  ;;  %v64_v46 = vld [vmem:[%s3376_s29 + $0x8] sm:$0xff]  ;;  %v95_v48 = vld [vmem:[%s3376_s29 + $0x100] sm:$0xff] }
  0x1a   :  { %132 = vmatpush.msra.mxu0 %v71_v22  ;;  %v80_v47 = vld [vmem:[%s3376_s29 + $0x88] sm:$0xff]  ;;  %v63_v49 = vld [vmem:[%s3376_s29] sm:$0xff]  ;;  %v61_v50 = vld [vmem:[%s3377_s23 + $0x10] sm:$0xff] }
  0x1b   :  { %152 = vmatpush.msra.mxu1 %v87_v23  ;;  %173 = vmatpush.msra.mxu2 %v102_v24  ;;  %v59_v51 = vld [vmem:[%s3377_s23] sm:$0xff]  ;;  %v60_v53 = vld [vmem:[%s3377_s23 + $0x8] sm:$0xff]  ;;  %v251_v3 = vld [vmem:[%s3356_s13 + $0x30] sm:$0xff] }
  0x1c   :  { %133 = vmatpush.msra.mxu0 %v70_v25  ;;  %v79_v52 = vld [vmem:[%s3376_s29 + $0x80] sm:$0xff]  ;;  %269 = vmatpush.msrb.mxu3 %v251_v3  ;;  %v250_v4 = vld [vmem:[%s3356_s13 + $0x28] sm:$0xff]  ;;  %v248_v8 = vld [vmem:[%s3356_s13 + $0x18] sm:$0xff] }
  0x1d   :  { %153 = vmatpush.msra.mxu1 %v86_v26  ;;  %174 = vmatpush.msra.mxu2 %v101_v28  ;;  %v2202_v54 = vld [vmem:[%s3378_s30] ss:$0 sm:$0xff]  ;;  %v247_v10 = vld [vmem:[%s3356_s13 + $0x10] sm:$0xff]  ;;  %v246_v14 = vld [vmem:[%s3356_s13 + $0x8] sm:$0xff] }
  0x1e   :  { %134 = vmatpush.msra.mxu0 %v69_v29  ;;  %270 = vmatpush.msrb.mxu3 %v250_v4  ;;  %v249_v5 = vld [vmem:[%s3356_s13 + $0x20] sm:$0xff]  ;;  %v290_v18 = vld [vmem:[%s3357_s7 + $0x10] sm:$0x7]  ;;  %v289_v19 = vld [vmem:[%s3357_s7 + $0x8] sm:$0xff] }
  0x1f   :  { %154 = vmatpush.msra.mxu1 %v85_v31  ;;  %175 = vmatpush.msra.mxu2 %v100_v33  ;;  %v245_v15 = vld [vmem:[%s3356_s13] sm:$0xff] }
  0x20   :  { %135 = vmatpush.msra.mxu0 %v68_v34  ;;  %271 = vmatpush.msrb.mxu3 %v249_v5  ;;  %v288_v23 = vld [vmem:[%s3357_s7] sm:$0xff] }
  0x21   :  { %155 = vmatpush.msra.mxu1 %v84_v35  ;;  %176 = vmatpush.msra.mxu2 %v99_v36 }
  0x22   :  { %136 = vmatpush.msra.mxu0 %v67_v37  ;;  %272 = vmatpush.msrb.mxu3 %v248_v8 }
  0x23   :  { %156 = vmatpush.msra.mxu1 %v83_v38  ;;  %177 = vmatpush.msra.mxu2 %v98_v39 }
  0x24   :  { %137 = vmatpush.msra.mxu0 %v66_v40  ;;  %273 = vmatpush.msrb.mxu3 %v247_v10 }
  0x25   :  { %157 = vmatpush.msra.mxu1 %v82_v41  ;;  %178 = vmatpush.msra.mxu2 %v97_v42 }
  0x26   :  { %138 = vmatpush.msra.mxu0 %v65_v43  ;;  %274 = vmatpush.msrb.mxu3 %v246_v14  ;;  %v280_v43 = vld [vmem:[%s3358_s1] sm:$0xff] }
  0x27   :  { %158 = vmatpush.msra.mxu1 %v81_v44  ;;  %179 = vmatpush.msra.mxu2 %v96_v45  ;;  %v281_v44 = vld [vmem:[%s3358_s1 + $0x8] sm:$0xff]  ;;  %v282_v45 = vld [vmem:[%s3358_s1 + $0x10] sm:$0xff] }
  0x28   :  { %139 = vmatpush.msra.mxu0 %v64_v46  ;;  %275 = vmatpush.msrb.mxu3 %v245_v15  ;;  %v283_v46 = vld [vmem:[%s3358_s1 + $0x18] sm:$0xff] }
  0x29   :  { %159 = vmatpush.msra.mxu1 %v80_v47  ;;  %180 = vmatpush.msra.mxu2 %v95_v48  ;;  %v284_v47 = vld [vmem:[%s3358_s1 + $0x20] sm:$0xff]  ;;  %v285_v48 = vld [vmem:[%s3358_s1 + $0x28] sm:$0xff] }
  0x2a   :  { %140 = vmatpush.msra.mxu0 %v63_v49  ;;  %181 = vmatmul.f32.vlgmr.msra.gmra.mxu2 %v61_v50  ;;  %v286_v49 = vld [vmem:[%s3358_s1 + $0x30] sm:$0xff]  ;;  %v287_v50 = vld [vmem:[%s3358_s1 + $0x38] sm:$0xff] }
  0x2b   :  { %141 = vmatmul.f32.vlgmr.msra.gmra.mxu0 %v59_v51  ;;  %160 = vmatpush.msra.mxu1 %v79_v52  ;;  %v364_v51 = vld [vmem:[%s3359_s8 + $0x18] sm:$0xff]  ;;  %v363_v52 = vld [vmem:[%s3359_s8 + $0x10] sm:$0xff] }
  0x2c   :  { %161 = vmatmul.f32.vlgmr.msra.gmra.mxu1 %v60_v53  ;;  %2077 = vmatpush.msk.msra.mxu3 %vm316_vm5, %v290_v18  ;;  %v362_v53 = vld [vmem:[%s3359_s8 + $0x8] sm:$0xff] }
  0x2d   :  { %402 = vmatpush.msrb.mxu0 %v364_v51 }
  0x2e   :  { %334 = vmatpush.msra.mxu3 %v289_v19 }
  0x2f   :  { %403 = vmatpush.msrb.mxu0 %v363_v52  ;;  %v540_v52 = vld [vmem:[%s3362_s3 + $0x30] sm:$0xff] }
  0x30   :  { %335 = vmatpush.msra.mxu3 %v288_v23 }
  0x31   :  { %404 = vmatpush.msrb.mxu0 %v362_v53 }
  0x9b   :  { %v202_v60 = vpop.f32.mrf.mxu3 }
  0xa8   :  { %v142_v55 = vpop.f32.mrf.mxu0 }
  0xa9   :  { %v143_v56 = vadd.f32 %v2202_v54, %v142_v55  ;;  %v162_v57 = vpop.f32.mrf.mxu1  ;;  %v361_v54 = vld [vmem:[%s3359_s8] sm:$0xff] }
  0xaa   :  { %405 = vmatpush.msrb.mxu0 %v361_v54 }
  0xab   :  { %v163_v58 = vadd.f32 %v162_v57, %v143_v56 }
  0xad   :  { %v182_v59 = vpop.f32.mrf.mxu2 }
  0xae   :  { %v183_v61 = vadd.f32 %v182_v59, %v163_v58 }
  0xb0   :  { %v2614_v62 = vadd.f32 %v202_v60, %v183_v61  ;;  %v434_v61 = vld [vmem:[%s3360_s2 + $0x10] sm:$0x7] }
  0xb1   :  { %2094 = vmatpush.msk.msrb.mxu1 %vm316_vm5, %v434_v61 }
  0xb2   :  { %v206_v63 = vmul.f32 0.70710677, %v2614_v62  ;;  %v205_v40 = vmul.f32 0.5, %v2614_v62  ;;  %v433_v62 = vld [vmem:[%s3360_s2 + $0x8] sm:$0xff] }
  0xb3   :  { %455 = vmatpush.msrb.mxu1 %v433_v62 }
  0xb4   :  { %v207_v0 = vand.u32 2147483647, %v206_v63  ;;  %vm240_vm7 = vcmp.ge.f32.partialorder %v206_v63, 0.0 }
  0xb6   :  { %v208_v1 = vmul.f32 0.3275911, %v207_v0  ;;  %v234_v22 = vsub.f32 0.0, %v207_v0 }
  0xb8   :  { %v209_v2 = vadd.f32 1.0, %v208_v1  ;;  %v235_v26 = vmul.f32 %v234_v22, %v207_v0  ;;  %v2353_v0 = vmov 0   ;;  %v432_v1 = vld [vmem:[%s3360_s2] sm:$0xff] }
  0xb9   :  { %2199 = vset.pattern.permute.xlu0 %v2353_v0  ;;  %2201 = vset.pattern.permute.xlu2 %v2353_v0 }
  0xba   :  { %2209 = vrcp.f32 %v209_v2  ;;  %v221_v11 = vand.u32 2147483648, %v209_v2  ;;  %v219_v13 = vand.u32 2147483647, %v209_v2  ;;  %vm215_vm3 = vweird.f32 %v209_v2  ;;  %2200 = vset.pattern.permute.xlu1 %v2353_v0  ;;  %456 = vmatpush.msrb.mxu1 %v432_v1 }
  0xbb   :  { %v236_v29 = vmul.f32 1.442695, %v235_v26 }
  0xbc   :  { %v222_v17 = vor.u32 1.1754944e-38, %v221_v11  ;;  %vm220_vm6 = vcmp.eq.f32.partialorder %v219_v13, 8.507059e+37 }
  0xbd   :  { %2211 = vpow2.f32 %v236_v29 }
  0xc0   :  { %v2210_v6 = vpop.eup %2209 }
  0xc1   :  { %v211_v7 = vmul.f32 %v2210_v6, %v209_v2  ;;  %vm216_vm2 = vweird.f32 %v2210_v6  ;;  %v431_v2 = vld [vmem:[%s3361_s9] sm:$0x1] }
  0xc2   :  { %vm217_vm4 = vmor %vm215_vm3, %vm216_vm2  ;;  %2095 = vmatmul.msk.f32.vlgmr.msrb.gmra.mxu1 %vm291_vm9, %v431_v2 }
  0xc3   :  { %v212_v9 = vsub.f32 1.0, %v211_v7  ;;  %v2212_v35 = vpop.eup %2211 }
  0xc5   :  { %v213_v12 = vmul.f32 %v2210_v6, %v212_v9 }
  0xc7   :  { %v214_v16 = vadd.f32 %v2210_v6, %v213_v12 }
  0xc9   :  { %v218_v20 = vsel %vm217_vm4, %v2210_v6, %v214_v16  ;;  %v536_v16 = vld [vmem:[%s3362_s3 + $0x10] sm:$0xff] }
  0xca   :  { %v223_v21 = vsel %vm220_vm6, %v222_v17, %v218_v20  ;;  %vm544_vm12 = vcmp.gt.f32.partialorder %v536_v16, 0.0 }
  0xcb   :  { %v225_v24 = vmul.f32 1.0614054, %v223_v21 }
  0xcd   :  { %v226_v25 = vadd.f32 -1.4531521, %v225_v24  ;;  %v534_v24 = vld [vmem:[%s3362_s3] sm:$0xff] }
  0xce   :  { %vm542_vm15 = vcmp.gt.f32.partialorder %v534_v24, 0.0 }
  0xcf   :  { %v227_v27 = vmul.f32 %v226_v25, %v223_v21 }
  0xd1   :  { %v228_v28 = vadd.f32 1.4214138, %v227_v27 }
  0xd3   :  { %v229_v30 = vmul.f32 %v228_v28, %v223_v21 }
  0xd5   :  { %v230_v31 = vadd.f32 -0.28449672, %v229_v30 }
  0xd7   :  { %v231_v32 = vmul.f32 %v230_v31, %v223_v21  ;;  %v537_v31 = vld [vmem:[%s3362_s3 + $0x18] sm:$0xff] }
  0xd8   :  { %vm545_vm1 = vcmp.gt.f32.partialorder %v537_v31, 0.0 }
  0xd9   :  { %v232_v33 = vadd.f32 0.2548296, %v231_v32 }
  0xdb   :  { %v233_v34 = vmul.f32 %v232_v33, %v223_v21 }
  0xdd   :  { %v238_v36 = vmul.f32 %v2212_v35, %v233_v34 }
  0xdf   :  { %v239_v37 = vsub.f32 1.0, %v238_v36 }
  0xe1   :  { %v241_v38 = vsub.f32 0.0, %v239_v37 }
  0xe3   :  { %v242_v39 = vsel %vm240_vm7, %v239_v37, %v241_v38  ;;  %v538_v38 = vld [vmem:[%s3362_s3 + $0x20] sm:$0xff]  ;;  %vm548_vm7 = vcmp.gt.f32.partialorder %v540_v52, 0.0  ;;  %v867_v52 = vld [vmem:[%s3364_s10 + $0x18] sm:$0xff] }
  0xe4   :  { %v243_v41 = vadd.f32 1.0, %v242_v39  ;;  %vm546_vm3 = vcmp.gt.f32.partialorder %v538_v38, 0.0  ;;  %v541_v38 = vld [vmem:[%s3362_s3 + $0x38] sm:$0xff]  ;;  %906 = vmatpush.msra.mxu1 %v867_v52 }
  0xe6   :  { %v244_v42 = vmul.f32 %v243_v41, %v205_v40 }
  0xe8   :  { %2076 = vmatmul.msk.f32.vlgmr.msrb.gmra.mxu3 %vm256_vm8, %v244_v42 }
  0xf0   :  { %2078 = vmatmul.msk.f32.vlgmr.msra.gmra.mxu3 %vm291_vm9, %v280_v43 }
  0xf8   :  { %2079 = vmatmul.msk.f32.gmra.mxu3 %vm291_vm9, %v281_v44 }
 0x100   :  { %2080 = vmatmul.msk.f32.gmra.mxu3 %vm291_vm9, %v282_v45  ;;  %v539_v45 = vld [vmem:[%s3362_s3 + $0x28] sm:$0xff] }
 0x101   :  { %vm547_vm5 = vcmp.gt.f32.partialorder %v539_v45, 0.0 }
 0x108   :  { %2081 = vmatmul.msk.f32.gmra.mxu3 %vm291_vm9, %v283_v46 }
 0x110   :  { %2082 = vmatmul.msk.f32.gmra.mxu3 %vm291_vm9, %v284_v47 }
 0x118   :  { %2083 = vmatmul.msk.f32.gmra.mxu3 %vm291_vm9, %v285_v48 }
 0x120   :  { %2084 = vmatmul.msk.f32.gmra.mxu3 %vm291_vm9, %v286_v49 }
 0x128   :  { %2085 = vmatmul.msk.f32.gmra.mxu3 %vm291_vm9, %v287_v50 }
 0x13f   :  { %v458_v13 = vpop.f32.mrf.mxu1 }
 0x140   :  { %v2719_v14 = vperm.slane %v458_v13, 0  ;;  %v2183_v13 = vld [vmem:[%s3363_s4 + $0x28] sm:$0xff] }
 0x16b   :  { %v2693_v55 = vpop.f32.mrf.mxu3 }
 0x173   :  { %v337_v56 = vpop.f32.mrf.mxu3 }
 0x174   :  { %2086 = vmatmul.msk.f32.vlgmr.msrb.gmra.mxu0 %vm365_vm10, %v337_v56 }
 0x17b   :  { %v340_v57 = vpop.f32.mrf.mxu3 }
 0x17c   :  { %2087 = vmatmul.msk.f32.gmra.mxu0 %vm365_vm10, %v340_v57 }
 0x183   :  { %v343_v58 = vpop.f32.mrf.mxu3 }
 0x184   :  { %2088 = vmatmul.msk.f32.gmra.mxu0 %vm365_vm10, %v343_v58 }
 0x18b   :  { %v346_v59 = vpop.f32.mrf.mxu3 }
 0x18c   :  { %2089 = vmatmul.msk.f32.gmra.mxu0 %vm365_vm10, %v346_v59 }
 0x193   :  { %v349_v60 = vpop.f32.mrf.mxu3 }
 0x194   :  { %2090 = vmatmul.msk.f32.gmra.mxu0 %vm365_vm10, %v349_v60 }
 0x19b   :  { %v352_v63 = vpop.f32.mrf.mxu3 }
 0x19c   :  { %2091 = vmatmul.msk.f32.gmra.mxu0 %vm365_vm10, %v352_v63 }
 0x1a3   :  { %v355_v3 = vpop.f32.mrf.mxu3 }
 0x1a4   :  { %2092 = vmatmul.msk.f32.gmra.mxu0 %vm365_vm10, %v355_v3 }
 0x1ab   :  { %v358_v4 = vpop.f32.mrf.mxu3 }
 0x1ac   :  { %2093 = vmatmul.msk.f32.gmra.mxu0 %vm365_vm10, %v358_v4  ;;  %783 = vmatpush.msrb.mxu2 %v358_v4 }
 0x1ae   :  { %784 = vmatpush.msrb.mxu2 %v355_v3 }
 0x1b0   :  { %785 = vmatpush.msrb.mxu2 %v352_v63 }
 0x1b2   :  { %786 = vmatpush.msrb.mxu2 %v349_v60 }
 0x1b4   :  { %787 = vmatpush.msrb.mxu2 %v346_v59 }
 0x1b6   :  { %788 = vmatpush.msrb.mxu2 %v343_v58 }
 0x1b8   :  { %789 = vmatpush.msrb.mxu2 %v340_v57 }
 0x1ba   :  { %790 = vmatpush.msrb.mxu2 %v337_v56 }
 0x1f1   :  { %v407_v5 = vpop.f32.mrf.mxu0 }
 0x1f2   :  { %463 = vperm.xlu0 %2199, %v407_v5  }
 0x1f9   :  { %v2717_v6 = vpop.f32.mrf.mxu0 }
 0x201   :  { %v413_v7 = vpop.f32.mrf.mxu0 }
 0x202   :  { %473 = vperm.xlu2 %2201, %v413_v7  }
 0x209   :  { %v416_v8 = vpop.f32.mrf.mxu0 }
 0x20a   :  { %478 = vperm.xlu2 %2201, %v416_v8  }
 0x211   :  { %v419_v9 = vpop.f32.mrf.mxu0 }
 0x212   :  { %483 = vperm.xlu2 %2201, %v419_v9  }
 0x219   :  { %v422_v10 = vpop.f32.mrf.mxu0 }
 0x21a   :  { %488 = vperm.xlu2 %2201, %v422_v10  }
 0x221   :  { %v425_v11 = vpop.f32.mrf.mxu0 }
 0x222   :  { %493 = vperm.xlu2 %2201, %v425_v11  }
 0x229   :  { %v428_v12 = vpop.f32.mrf.mxu0 }
 0x22a   :  { %498 = vperm.xlu2 %2201, %v428_v12   ;;  %v2159_v12 = vld [vmem:[%s3363_s4 + $0x8] sm:$0xff] }
 0x25c   :  { %v474_v15 = vpop.permute.xlu2 %473 }
 0x25d   :  { %v504_v17 = vadd.f32 %v2719_v14, %v474_v15 }
 0x25f   :  { %v520_v18 = vmul.f32 0.01, %v504_v17  ;;  %vm512_vm11 = vcmp.gt.f32.partialorder %v504_v17, 0.0 }
 0x261   :  { %v528_v19 = vsel %vm512_vm11, %v504_v17, %v520_v18 }
 0x262   :  { %v2725_v20 = vsel %vm544_vm12, %v528_v19, -9e+15 }
 0x263   :  { %v565_v21 = vsel %vm558_vm13, %v2725_v20, -inf }
 0x264   :  { %v464_v22 = vpop.permute.xlu0 %463  ;;  %v479_v23 = vpop.permute.xlu2 %478  ;;  %566 = vmax.xlane.f32.xlu2 %v565_v21 }
 0x265   :  { %v502_v25 = vadd.f32 %v2719_v14, %v464_v22  ;;  %v505_v26 = vadd.f32 %v2719_v14, %v479_v23 }
 0x267   :  { %v518_v27 = vmul.f32 0.01, %v502_v25  ;;  %vm510_vm14 = vcmp.gt.f32.partialorder %v502_v25, 0.0  ;;  %v521_v28 = vmul.f32 0.01, %v505_v26  ;;  %vm513_vm0 = vcmp.gt.f32.partialorder %v505_v26, 0.0 }
 0x269   :  { %v526_v29 = vsel %vm510_vm14, %v502_v25, %v518_v27  ;;  %v529_v35 = vsel %vm513_vm0, %v505_v26, %v521_v28 }
 0x26a   :  { %v550_v30 = vsel %vm542_vm15, %v526_v29, -9e+15  ;;  %v553_v36 = vsel %vm545_vm1, %v529_v35, -9e+15  ;;  %v535_v29 = vld [vmem:[%s3362_s3 + $0x8] sm:$0xff]  ;;  %vm549_vm1 = vcmp.gt.f32.partialorder %v541_v38, 0.0 }
 0x26b   :  { %v559_v32 = vsel %vm558_vm13, %v550_v30, -inf  ;;  %v568_v39 = vsel %vm558_vm13, %v553_v36, -inf  ;;  %vm543_vm15 = vcmp.gt.f32.partialorder %v535_v29, 0.0 }
 0x26c   :  { %560 = vmax.xlane.f32.xlu0 %v559_v32  ;;  %v484_v33 = vpop.permute.xlu2 %483 }
 0x26d   :  { %v506_v34 = vadd.f32 %v2719_v14, %v484_v33 }
 0x26f   :  { %v522_v37 = vmul.f32 0.01, %v506_v34  ;;  %vm514_vm2 = vcmp.gt.f32.partialorder %v506_v34, 0.0 }
 0x271   :  { %v530_v42 = vsel %vm514_vm2, %v506_v34, %v522_v37 }
 0x272   :  { %v2744_v43 = vsel %vm546_vm3, %v530_v42, -9e+15 }
 0x273   :  { %v571_v46 = vsel %vm558_vm13, %v2744_v43, -inf }
 0x274   :  { %569 = vmax.xlane.f32.xlu0 %v568_v39  ;;  %v489_v40 = vpop.permute.xlu2 %488 }
 0x275   :  { %v507_v41 = vadd.f32 %v2719_v14, %v489_v40 }
 0x277   :  { %v523_v44 = vmul.f32 0.01, %v507_v41  ;;  %vm515_vm4 = vcmp.gt.f32.partialorder %v507_v41, 0.0 }
 0x279   :  { %v531_v49 = vsel %vm515_vm4, %v507_v41, %v523_v44 }
 0x27a   :  { %v2752_v50 = vsel %vm547_vm5, %v531_v49, -9e+15  ;;  %v1090_v49 = vld [vmem:[%s3363_s4] sm:$0xff] }
 0x27b   :  { %v574_v53 = vsel %vm558_vm13, %v2752_v50, -inf }
 0x27c   :  { %572 = vmax.xlane.f32.xlu0 %v571_v46  ;;  %v494_v47 = vpop.permute.xlu2 %493 }
 0x27d   :  { %v508_v48 = vadd.f32 %v2719_v14, %v494_v47 }
 0x27f   :  { %v524_v51 = vmul.f32 0.01, %v508_v48  ;;  %vm516_vm6 = vcmp.gt.f32.partialorder %v508_v48, 0.0 }
 0x281   :  { %v532_v54 = vsel %vm516_vm6, %v508_v48, %v524_v51  ;;  %v2189_v51 = vld [vmem:[%s3363_s4 + $0x30] sm:$0xff] }
 0x282   :  { %v556_v56 = vsel %vm548_vm7, %v532_v54, -9e+15  ;;  %v2135_v54 = vld [vmem:[%s3364_s10 + $0x58] sm:$0xff] }
 0x283   :  { %v577_v57 = vsel %vm558_vm13, %v556_v56, -inf  ;;  %1002 = vmatpush.msra.mxu0 %v2135_v54 }
 0x284   :  { %575 = vmax.xlane.f32.xlu0 %v574_v53  ;;  %v499_v27 = vpop.permute.xlu2 %498  ;;  %v2123_v53 = vld [vmem:[%s3364_s10 + $0x38] sm:$0xff] }
 0x285   :  { %954 = vmatpush.msrb.mxu3 %v2123_v53 }
 0x28c   :  { %578 = vmax.xlane.f32.xlu0 %v577_v57  ;;  %v2122_v57 = vld [vmem:[%s3364_s10 + $0x30] sm:$0xff] }
 0x28d   :  { %955 = vmatpush.msrb.mxu3 %v2122_v57 }
 0x2d7   :  { %v567_v32 = vpop.xlane.xlu2 %566 }
 0x2df   :  { %v561_v58 = vpop.xlane.xlu0 %560 }
 0x2e0   :  { %v583_v59 = vsub.f32 %v550_v30, %v561_v58  ;;  %v509_v30 = vadd.f32 %v2719_v14, %v499_v27  ;;  %v2134_v58 = vld [vmem:[%s3364_s10 + $0x50] sm:$0xff] }
 0x2e1   :  { %1003 = vmatpush.msra.mxu0 %v2134_v58 }
 0x2e2   :  { %v591_v60 = vmul.f32 1.442695, %v583_v59  ;;  %v525_v34 = vmul.f32 0.01, %v509_v30  ;;  %vm517_vm0 = vcmp.gt.f32.partialorder %v509_v30, 0.0  ;;  %v865_v59 = vld [vmem:[%s3364_s10 + $0x8] sm:$0xff] }
 0x2e4   :  { %2213 = vpow2.f32 %v591_v60  ;;  %v533_v40 = vsel %vm517_vm0, %v509_v30, %v525_v34  ;;  %v2121_v60 = vld [vmem:[%s3364_s10 + $0x28] sm:$0xff] }
 0x2e5   :  { %v557_v41 = vsel %vm549_vm1, %v533_v40, -9e+15  ;;  %956 = vmatpush.msrb.mxu3 %v2121_v60 }
 0x2e6   :  { %v580_v44 = vsel %vm558_vm13, %v557_v41, -inf }
 0x2e7   :  { %v570_v61 = vpop.xlane.xlu0 %569 }
 0x2e8   :  { %v586_v62 = vsub.f32 %v553_v36, %v570_v61  ;;  %v585_v36 = vsub.f32 %v2725_v20, %v567_v32  ;;  %v2133_v61 = vld [vmem:[%s3364_s10 + $0x48] sm:$0xff] }
 0x2e9   :  { %1004 = vmatpush.msra.mxu0 %v2133_v61 }
 0x2ea   :  { %v2214_v63 = vpop.eup %2213  ;;  %v597_v0 = vmul.f32 1.442695, %v586_v62  ;;  %v864_v62 = vld [vmem:[%s3364_s10] sm:$0xff] }
 0x2eb   :  { %v607_v1 = vsel %vm558_vm13, %v2214_v63, 0.0 }
 0x2ec   :  { %2215 = vpow2.f32 %v597_v0  ;;  %608 = vadd.xlane.f32.xlu1 %v607_v1  ;;  %v2132_v0 = vld [vmem:[%s3364_s10 + $0x40] sm:$0xff] }
 0x2ed   :  { %1005 = vmatpush.msra.mxu0 %v2132_v0 }
 0x2ef   :  { %v2761_v2 = vpop.xlane.xlu0 %572 }
 0x2f2   :  { %v2763_v3 = vpop.eup %2215 }
 0x2f3   :  { %v616_v4 = vsel %vm558_vm13, %v2763_v3, 0.0 }
 0x2f4   :  { %617 = vadd.xlane.f32.xlu2 %v616_v4 }
 0x2f7   :  { %v576_v5 = vpop.xlane.xlu0 %575 }
 0x2f8   :  { %v588_v42 = vsub.f32 %v2752_v50, %v576_v5  ;;  %v2171_v50 = vld [vmem:[%s3363_s4 + $0x18] sm:$0xff]  ;;  %v587_v5 = vsub.f32 %v2744_v43, %v2761_v2 }
 0x2fa   :  { %v601_v20 = vmul.f32 1.442695, %v588_v42 }
 0x2ff   :  { %v579_v7 = vpop.xlane.xlu0 %578 }
 0x300   :  { %v589_v8 = vsub.f32 %v556_v56, %v579_v7  ;;  %v866_v56 = vld [vmem:[%s3364_s10 + $0x10] sm:$0xff] }
 0x301   :  { %907 = vmatpush.msra.mxu1 %v866_v56 }
 0x302   :  { %v603_v9 = vmul.f32 1.442695, %v589_v8 }
 0x303   :  { %908 = vmatpush.msra.mxu1 %v865_v59  ;;  %v2894_v59 = vld [vmem:[%s3365_s12 + $0x1] ss:$0 sm:$0xff] }
 0x304   :  { %2217 = vpow2.f32 %v603_v9 }
 0x305   :  { %468 = vperm.xlu1 %2200, %v2717_v6   ;;  %909 = vmatpush.msra.mxu1 %v864_v62 }
 0x30a   :  { %v2768_v10 = vpop.eup %2217 }
 0x30b   :  { %v625_v11 = vsel %vm558_vm13, %v2768_v10, 0.0 }
 0x30c   :  { %626 = vadd.xlane.f32.xlu2 %v625_v11  ;;  %v599_v11 = vmul.f32 1.442695, %v587_v5 }
 0x324   :  { %1211 = vperm.xlu2 %2201, %v2159_v12  }
 0x32c   :  { %1687 = vperm.xlu2 %2201, %v2183_v13  }
 0x35f   :  { %v609_v15 = vpop.xlane.xlu1 %608 }
 0x360   :  { %2219 = vrcp.f32 %v609_v15  ;;  %v642_v18 = vand.u32 2147483648, %v609_v15  ;;  %v640_v21 = vand.u32 2147483647, %v609_v15  ;;  %vm636_vm9 = vweird.f32 %v609_v15 }
 0x362   :  { %v643_v23 = vor.u32 1.1754944e-38, %v642_v18  ;;  %vm641_vm12 = vcmp.eq.f32.partialorder %v640_v21, 8.507059e+37 }
 0x366   :  { %v2220_v16 = vpop.eup %2219 }
 0x367   :  { %v632_v6 = vmul.f32 %v2220_v16, %v609_v15  ;;  %vm637_vm8 = vweird.f32 %v2220_v16 }
 0x368   :  { %vm638_vm11 = vmor %vm636_vm9, %vm637_vm8 }
 0x369   :  { %v633_v17 = vsub.f32 1.0, %v632_v6 }
 0x36b   :  { %v634_v19 = vmul.f32 %v2220_v16, %v633_v17 }
 0x36d   :  { %v635_v22 = vadd.f32 %v2220_v16, %v634_v19 }
 0x36f   :  { %v639_v24 = vsel %vm638_vm11, %v2220_v16, %v635_v22 }
 0x370   :  { %v644_v25 = vsel %vm641_vm12, %v643_v23, %v639_v24  ;;  %v2165_v24 = vld [vmem:[%s3363_s4 + $0x10] sm:$0xff] }
 0x371   :  { %v743_v26 = vmul.f32 %v2214_v63, %v644_v25  ;;  %v2120_v63 = vld [vmem:[%s3364_s10 + $0x20] sm:$0xff] }
 0x372   :  { %957 = vmatpush.msrb.mxu3 %v2120_v63  ;;  %v2177_v25 = vld [vmem:[%s3363_s4 + $0x20] sm:$0xff] }
 0x373   :  { %2096 = vmatmul.msk.f32.vlgmr.msrb.gmra.mxu2 %vm558_vm13, %v743_v26  ;;  %v2195_v26 = vld [vmem:[%s3363_s4 + $0x38] sm:$0xff] }
 0x377   :  { %v469_v28 = vpop.permute.xlu1 %468 }
 0x378   :  { %v503_v31 = vadd.f32 %v2719_v14, %v469_v28  ;;  %v595_v14 = vmul.f32 1.442695, %v585_v36  ;;  %v2870_v28 = vpop.xlane.xlu2 %617 }
 0x37a   :  { %v519_v33 = vmul.f32 0.01, %v503_v31  ;;  %vm511_vm14 = vcmp.gt.f32.partialorder %v503_v31, 0.0  ;;  %2221 = vpow2.f32 %v595_v14 }
 0x37b   :  { %2223 = vpow2.f32 %v601_v20 }
 0x37c   :  { %v527_v35 = vsel %vm511_vm14, %v503_v31, %v519_v33  ;;  %vm678_vm14 = vweird.f32 %v2870_v28 }
 0x37d   :  { %v551_v37 = vsel %vm543_vm15, %v527_v35, -9e+15 }
 0x37e   :  { %v562_v39 = vsel %vm558_vm13, %v551_v37, -inf }
 0x37f   :  { %563 = vmax.xlane.f32.xlu1 %v562_v39 }
 0x380   :  { %v2791_v45 = vpop.eup %2221 }
 0x381   :  { %v613_v46 = vsel %vm558_vm13, %v2791_v45, 0.0  ;;  %v2795_v47 = vpop.eup %2223 }
 0x382   :  { %v622_v48 = vsel %vm558_vm13, %v2795_v47, 0.0 }
 0x387   :  { %581 = vmax.xlane.f32.xlu1 %v580_v44 }
 0x38f   :  { %614 = vadd.xlane.f32.xlu1 %v613_v46 }
 0x397   :  { %623 = vadd.xlane.f32.xlu1 %v622_v48 }
 0x3b0   :  { %1093 = vperm.xlu1 %2200, %v1090_v49  }
 0x3b8   :  { %1449 = vperm.xlu1 %2200, %v2171_v50  }
 0x3c0   :  { %1806 = vperm.xlu1 %2200, %v2189_v51  }
 0x3f2   :  { %v564_v1 = vpop.xlane.xlu1 %563 }
 0x3f3   :  { %v584_v4 = vsub.f32 %v551_v37, %v564_v1 }
 0x3f5   :  { %v593_v7 = vmul.f32 1.442695, %v584_v4 }
 0x3f6   :  { %v792_v8 = vpop.f32.mrf.mxu2 }
 0x3f7   :  { %2225 = vpow2.f32 %v593_v7  ;;  %v824_v9 = vmin.f32 %v792_v8, 0.0  ;;  %vm816_vm2 = vcmp.gt.f32.partialorder %v792_v8, 0.0  ;;  %v2902_v7 = vpop.xlane.xlu2 %626 }
 0x3f9   :  { %v832_v12 = vmul.f32 1.442695, %v824_v9 }
 0x3fa   :  { %v582_v13 = vpop.xlane.xlu1 %581 }
 0x3fb   :  { %2227 = vpow2.f32 %v832_v12  ;;  %v590_v16 = vsub.f32 %v557_v41, %v582_v13  ;;  %v2883_v41 = vld [vmem:[%s3365_s12] ss:$0 sm:$0xff]  ;;  %v684_v13 = vand.u32 2147483648, %v2870_v28 }
 0x3fc   :  { %2229 = vpow2.f32 %v599_v11 }
 0x3fd   :  { %v2846_v15 = vpop.eup %2225  ;;  %v605_v18 = vmul.f32 1.442695, %v590_v16 }
 0x3fe   :  { %v610_v6 = vsel %vm558_vm13, %v2846_v15, 0.0 }
 0x3ff   :  { %611 = vadd.xlane.f32.xlu0 %v610_v6  ;;  %2231 = vpow2.f32 %v605_v18  ;;  %v682_v6 = vand.u32 2147483647, %v2870_v28 }
 0x401   :  { %v2228_v17 = vpop.eup %2227  ;;  %vm683_vm0 = vcmp.eq.f32.partialorder %v682_v6, 8.507059e+37 }
 0x402   :  { %v2104_v19 = vadd.f32 -1.0, %v2228_v17  ;;  %v2850_v43 = vpop.eup %2229  ;;  %v615_v27 = vpop.xlane.xlu1 %614 }
 0x403   :  { %v619_v21 = vsel %vm558_vm13, %v2850_v43, 0.0  ;;  %2233 = vrcp.f32 %v615_v27  ;;  %v670_v54 = vand.u32 2147483648, %v615_v27  ;;  %vm664_vm8 = vweird.f32 %v615_v27 }
 0x404   :  { %v856_v2 = vsel %vm816_vm2, %v792_v8, %v2104_v19  ;;  %v668_v60 = vand.u32 2147483647, %v615_v27 }
 0x405   :  { %2112 = vmatmul.msk.f32.vlgmr.msra.gmra.mxu1 %vm365_vm10, %v856_v2  ;;  %2124 = vmatmul.msk.f32.vlgmr.msrb.gmra.mxu3 %vm365_vm10, %v856_v2  ;;  %v2857_v22 = vpop.eup %2231  ;;  %v671_v0 = vor.u32 1.1754944e-38, %v670_v54 }
 0x406   :  { %2136 = vmatmul.msk.f32.vlgmr.msra.gmra.mxu0 %vm365_vm10, %v856_v2  ;;  %v628_v23 = vsel %vm558_vm13, %v2857_v22, 0.0  ;;  %vm669_vm11 = vcmp.eq.f32.partialorder %v668_v60, 8.507059e+37 }
 0x407   :  { %620 = vadd.xlane.f32.xlu0 %v619_v21  ;;  %v685_v21 = vor.u32 1.1754944e-38, %v684_v13 }
 0x409   :  { %v2234_v30 = vpop.eup %2233 }
 0x40a   :  { %v660_v31 = vmul.f32 %v2234_v30, %v615_v27  ;;  %v2885_v50 = vpop.xlane.xlu1 %623  ;;  %vm665_vm7 = vweird.f32 %v2234_v30 }
 0x40b   :  { %vm666_vm9 = vmor %vm664_vm8, %vm665_vm7 }
 0x40c   :  { %v661_v35 = vsub.f32 1.0, %v660_v31 }
 0x40e   :  { %v662_v14 = vmul.f32 %v2234_v30, %v661_v35 }
 0x40f   :  { %629 = vadd.xlane.f32.xlu0 %v628_v23 }
 0x410   :  { %v663_v52 = vadd.f32 %v2234_v30, %v662_v14 }
 0x412   :  { %v667_v63 = vsel %vm666_vm9, %v2234_v30, %v663_v52  ;;  %v710_v52 = vand.u32 2147483647, %v2885_v50 }
 0x413   :  { %v672_v5 = vsel %vm669_vm11, %v671_v0, %v667_v63  ;;  %v726_v0 = vand.u32 2147483648, %v2902_v7 }
 0x414   :  { %v745_v16 = vmul.f32 %v2791_v45, %v672_v5  ;;  %vm711_vm8 = vcmp.eq.f32.partialorder %v710_v52, 8.507059e+37 }
 0x423   :  { %1330 = vperm.xlu0 %2199, %v2165_v24  }
 0x42b   :  { %1568 = vperm.xlu0 %2199, %v2177_v25  }
 0x433   :  { %1925 = vperm.xlu0 %2199, %v2195_v26  }
 0x472   :  { %v612_v29 = vpop.xlane.xlu0 %611 }
 0x473   :  { %2235 = vrcp.f32 %v612_v29  ;;  %v656_v40 = vand.u32 2147483648, %v612_v29  ;;  %v654_v42 = vand.u32 2147483647, %v612_v29  ;;  %vm650_vm4 = vweird.f32 %v612_v29 }
 0x474   :  { %2237 = vrcp.f32 %v2870_v28 }
 0x475   :  { %v657_v46 = vor.u32 1.1754944e-38, %v656_v40  ;;  %vm655_vm6 = vcmp.eq.f32.partialorder %v654_v42, 8.507059e+37  ;;  %v2964_v40 = vld [vmem:[%s3366_s11 + $0x28] sm:$0xff] }
 0x479   :  { %v2236_v32 = vpop.eup %2235 }
 0x47a   :  { %v2873_v33 = vpop.eup %2237  ;;  %v646_v34 = vmul.f32 %v2236_v32, %v612_v29  ;;  %v2875_v36 = vpop.xlane.xlu0 %620  ;;  %vm651_vm3 = vweird.f32 %v2236_v32 }
 0x47b   :  { %v674_v38 = vmul.f32 %v2873_v33, %v2870_v28  ;;  %2239 = vrcp.f32 %v2875_v36  ;;  %vm652_vm5 = vmor %vm650_vm4, %vm651_vm3  ;;  %vm679_vm12 = vweird.f32 %v2873_v33  ;;  %v698_v27 = vand.u32 2147483648, %v2875_v36 }
 0x47c   :  { %v647_v37 = vsub.f32 1.0, %v646_v34  ;;  %2241 = vrcp.f32 %v2885_v50  ;;  %vm680_vm15 = vmor %vm678_vm14, %vm679_vm12  ;;  %vm692_vm2 = vweird.f32 %v2875_v36  ;;  %v696_v30 = vand.u32 2147483647, %v2875_v36 }
 0x47d   :  { %v675_v20 = vsub.f32 1.0, %v674_v38  ;;  %v699_v38 = vor.u32 1.1754944e-38, %v698_v27  ;;  %vm720_vm14 = vweird.f32 %v2902_v7 }
 0x47e   :  { %v648_v39 = vmul.f32 %v2236_v32, %v647_v37  ;;  %v2955_v37 = vld [vmem:[%s3366_s11 + $0x30] sm:$0xff]  ;;  %vm697_vm4 = vcmp.eq.f32.partialorder %v696_v30, 8.507059e+37 }
 0x47f   :  { %v676_v61 = vmul.f32 %v2873_v33, %v675_v20 }
 0x480   :  { %v649_v44 = vadd.f32 %v2236_v32, %v648_v39 }
 0x481   :  { %v2888_v53 = vpop.eup %2239  ;;  %v677_v11 = vadd.f32 %v2873_v33, %v676_v61 }
 0x482   :  { %v911_v48 = vpop.f32.mrf.mxu1  ;;  %v653_v49 = vsel %vm652_vm5, %v2236_v32, %v649_v44  ;;  %v688_v62 = vmul.f32 %v2888_v53, %v2875_v36  ;;  %v2906_v12 = vpop.eup %2241  ;;  %vm693_vm1 = vweird.f32 %v2888_v53  ;;  %v2950_v36 = vld [vmem:[%s3366_s11 + $0x38] sm:$0xff] }
 0x483   :  { %v912_v51 = vadd.f32 %v2883_v41, %v911_v48  ;;  %v658_v56 = vsel %vm655_vm6, %v657_v46, %v653_v49  ;;  %v702_v18 = vmul.f32 %v2906_v12, %v2885_v50  ;;  %v681_v2 = vsel %vm680_vm15, %v2873_v33, %v677_v11  ;;  %v2921_v24 = vpop.xlane.xlu0 %629  ;;  %vm2934_vm3 = vmor %vm692_vm2, %vm693_vm1  ;;  %1132 = vmatpush.msra.mxu2 %v2950_v36  ;;  %v2973_v46 = vld [vmem:[%s3366_s11 + $0x20] sm:$0xff] }
 0x484   :  { %v744_v58 = vmul.f32 %v2846_v15, %v658_v56  ;;  %v689_v8 = vsub.f32 1.0, %v688_v62  ;;  %v686_v45 = vsel %vm683_vm0, %v685_v21, %v681_v2  ;;  %1727 = vmatpush.msrb.mxu0 %v2950_v36  ;;  %vm707_vm5 = vweird.f32 %v2906_v12 }
 0x485   :  { %v2152_v57 = vmul.f32 -1.442695, %v912_v51  ;;  %v703_v23 = vsub.f32 1.0, %v702_v18  ;;  %v746_v29 = vmul.f32 %v2763_v3, %v686_v45  ;;  %1133 = vmatpush.msra.mxu2 %v2955_v37  ;;  %v712_v49 = vand.u32 2147483648, %v2885_v50  ;;  %v1007_v18 = vpop.f32.mrf.mxu0 }
 0x486   :  { %2097 = vmatmul.msk.f32.gmra.mxu2 %vm558_vm13, %v744_v58  ;;  %v690_v19 = vmul.f32 %v2888_v53, %v689_v8  ;;  %1728 = vmatpush.msrb.mxu0 %v2955_v37  ;;  %vm706_vm6 = vweird.f32 %v2885_v50  ;;  %v724_v8 = vand.u32 2147483647, %v2902_v7  ;;  %v740_v2 = vand.u32 2147483648, %v2921_v24 }
 0x487   :  { %2243 = vpow2.f32 %v2152_v57  ;;  %v704_v34 = vmul.f32 %v2906_v12, %v703_v23  ;;  %1134 = vmatpush.msra.mxu2 %v2964_v40  ;;  %vm708_vm7 = vmor %vm706_vm6, %vm707_vm5  ;;  %v713_v58 = vor.u32 1.1754944e-38, %v712_v49  ;;  %v3056_v49 = vld [vmem:[%s3366_s11 + $0x8] sm:$0xff] }
 0x488   :  { %v959_v1 = vpop.f32.mrf.mxu3  ;;  %2245 = vrcp.f32 %v2902_v7  ;;  %v691_v25 = vadd.f32 %v2888_v53, %v690_v19  ;;  %1729 = vmatpush.msrb.mxu0 %v2964_v40  ;;  %vm725_vm2 = vcmp.eq.f32.partialorder %v724_v8, 8.507059e+37 }
 0x489   :  { %v960_v4 = vadd.f32 %v2894_v59, %v959_v1  ;;  %v705_v20 = vadd.f32 %v2906_v12, %v704_v34  ;;  %1135 = vmatpush.msra.mxu2 %v2973_v46 }
 0x48a   :  { %v695_v3 = vsel %vm2934_vm3, %v2888_v53, %v691_v25  ;;  %1730 = vmatpush.msrb.mxu0 %v2973_v46  ;;  %v738_v25 = vand.u32 2147483647, %v2921_v24 }
 0x48b   :  { %v2153_v9 = vmul.f32 -1.442695, %v960_v4  ;;  %v700_v42 = vsel %vm697_vm4, %v699_v38, %v695_v3  ;;  %v709_v57 = vsel %vm708_vm7, %v2906_v12, %v705_v20  ;;  %vm734_vm4 = vweird.f32 %v2921_v24 }
 0x48c   :  { %v747_v51 = vmul.f32 %v2850_v43, %v700_v42  ;;  %v714_v60 = vsel %vm711_vm8, %v713_v58, %v709_v57  ;;  %vm739_vm7 = vcmp.eq.f32.partialorder %v738_v25, 8.507059e+37 }
 0x48d   :  { %v2244_v15 = vpop.eup %2243  ;;  %2247 = vpow2.f32 %v2153_v9  ;;  %v748_v5 = vmul.f32 %v2795_v47, %v714_v60 }
 0x48e   :  { %v2913_v17 = vadd.f32 1.0, %v2244_v15  ;;  %2098 = vmatmul.msk.f32.gmra.mxu2 %vm558_vm13, %v745_v16  ;;  %v2925_v26 = vpop.eup %2245  ;;  %v727_v15 = vor.u32 1.1754944e-38, %v726_v0  ;;  %v3011_v16 = vld [vmem:[%s3365_s12 + $0x3] ss:$0 sm:$0xff] }
 0x48f   :  { %v716_v33 = vmul.f32 %v2925_v26, %v2902_v7  ;;  %vm721_vm11 = vweird.f32 %v2925_v26  ;;  %v3016_v7 = vld [vmem:[%s3365_s12 + $0x2] ss:$0 sm:$0xff] }
 0x490   :  { %2249 = vrcp.f32 %v2913_v17  ;;  %v1061_v62 = vand.u32 2147483648, %v2913_v17  ;;  %vm1055_vm12 = vweird.f32 %v2913_v17  ;;  %v1059_v1 = vand.u32 2147483647, %v2913_v17  ;;  %vm722_vm0 = vmor %vm720_vm14, %vm721_vm11 }
 0x491   :  { %2251 = vrcp.f32 %v2921_v24  ;;  %v717_v44 = vsub.f32 1.0, %v716_v33 }
 0x492   :  { %v1062_v12 = vor.u32 1.1754944e-38, %v1061_v62  ;;  %vm1060_vm1 = vcmp.eq.f32.partialorder %v1059_v1, 8.507059e+37 }
 0x493   :  { %v2248_v28 = vpop.eup %2247  ;;  %v718_v54 = vmul.f32 %v2925_v26, %v717_v44 }
 0x494   :  { %v2957_v39 = vadd.f32 1.0, %v2248_v28  ;;  %v741_v28 = vor.u32 1.1754944e-38, %v740_v2  ;;  %v3099_v2 = vld [vmem:[%s3366_s11 + $0x48] sm:$0xff] }
 0x495   :  { %v719_v63 = vadd.f32 %v2925_v26, %v718_v54 }
 0x496   :  { %v2931_v31 = vpop.eup %2249  ;;  %2099 = vmatmul.msk.f32.gmra.mxu2 %vm558_vm13, %v746_v29  ;;  %2253 = vrcp.f32 %v2957_v39  ;;  %vm1074_vm8 = vweird.f32 %v2957_v39 }
 0x497   :  { %v1051_v35 = vmul.f32 %v2931_v31, %v2913_v17  ;;  %v2975_v48 = vpop.eup %2251  ;;  %vm1056_vm9 = vweird.f32 %v2931_v31  ;;  %v723_v13 = vsel %vm722_vm0, %v2925_v26, %v719_v63  ;;  %v1008_v26 = vadd.f32 %v3016_v7, %v1007_v18  ;;  %v3070_v63 = vld [vmem:[%s3366_s11] sm:$0xff] }
 0x498   :  { %v730_v56 = vmul.f32 %v2975_v48, %v2921_v24  ;;  %vm1057_vm15 = vmor %vm1055_vm12, %vm1056_vm9  ;;  %v728_v17 = vsel %vm725_vm2, %v727_v15, %v723_v13  ;;  %vm735_vm3 = vweird.f32 %v2975_v48 }
 0x499   :  { %v1052_v14 = vsub.f32 1.0, %v1051_v35  ;;  %v749_v23 = vmul.f32 %v2768_v10, %v728_v17  ;;  %vm736_vm5 = vmor %vm734_vm4, %vm735_vm3  ;;  %v1078_v10 = vand.u32 2147483647, %v2957_v39  ;;  %v3092_v17 = vld [vmem:[%s3366_s11 + $0x50] sm:$0xff] }
 0x49a   :  { %v731_v61 = vsub.f32 1.0, %v730_v56 }
 0x49b   :  { %v1053_v53 = vmul.f32 %v2931_v31, %v1052_v14  ;;  %vm1079_vm11 = vcmp.eq.f32.partialorder %v1078_v10, 8.507059e+37 }
 0x49c   :  { %v2254_v43 = vpop.eup %2253  ;;  %v732_v11 = vmul.f32 %v2975_v48, %v731_v61 }
 0x49d   :  { %v1054_v50 = vadd.f32 %v2931_v31, %v1053_v53  ;;  %v1070_v4 = vmul.f32 %v2254_v43, %v2957_v39  ;;  %vm1075_vm6 = vweird.f32 %v2254_v43 }
 0x49e   :  { %2100 = vmatmul.msk.f32.gmra.mxu2 %vm558_vm13, %v747_v51  ;;  %v733_v19 = vadd.f32 %v2975_v48, %v732_v11  ;;  %vm1076_vm9 = vmor %vm1074_vm8, %vm1075_vm6 }
 0x49f   :  { %v1058_v9 = vsel %vm1057_vm15, %v2931_v31, %v1054_v50  ;;  %v1071_v6 = vsub.f32 1.0, %v1070_v4  ;;  %v1080_v31 = vand.u32 2147483648, %v2957_v39  ;;  %v3040_v39 = vld [vmem:[%s3366_s11 + $0x18] sm:$0xff] }
 0x4a0   :  { %v1063_v47 = vsel %vm1060_vm1, %v1062_v12, %v1058_v9  ;;  %v737_v27 = vsel %vm736_vm5, %v2975_v48, %v733_v19  ;;  %1112 = vmatpush.msrb.mxu1 %v3040_v39  ;;  %1231 = vmatpush.msrb.mxu2 %v3040_v39 }
 0x4a1   :  { %v1085_v21 = vmul.f32 %v3011_v16, %v1063_v47  ;;  %v1072_v45 = vmul.f32 %v2254_v43, %v1071_v6  ;;  %v742_v32 = vsel %vm739_vm7, %v741_v28, %v737_v27  ;;  %v1081_v34 = vor.u32 1.1754944e-38, %v1080_v31  ;;  %1588 = vmatpush.msra.mxu3 %v3040_v39  ;;  %v3087_v6 = vld [vmem:[%s3366_s11 + $0x58] sm:$0xff] }
 0x4a2   :  { %v750_v24 = vmul.f32 %v2857_v22, %v742_v32  ;;  %v3048_v22 = vld [vmem:[%s3366_s11 + $0x10] sm:$0xff]  ;;  %1866 = vmatpush.msra.mxu0 %v3087_v6 }
 0x4a3   :  { %v1086_v29 = vadd.f32 %v1085_v21, %v1008_v26  ;;  %v1073_v30 = vadd.f32 %v2254_v43, %v1072_v45  ;;  %1113 = vmatpush.msrb.mxu1 %v3048_v22  ;;  %1232 = vmatpush.msrb.mxu2 %v3048_v22 }
 0x4a4   :  { %1589 = vmatpush.msra.mxu3 %v3048_v22  ;;  %1867 = vmatpush.msra.mxu0 %v3092_v17 }
 0x4a5   :  { %2255 = vtanh.f32 %v1086_v29  ;;  %v1077_v33 = vsel %vm1076_vm9, %v2254_v43, %v1073_v30  ;;  %1114 = vmatpush.msrb.mxu1 %v3056_v49  ;;  %1233 = vmatpush.msrb.mxu2 %v3056_v49 }
 0x4a6   :  { %2101 = vmatmul.msk.f32.gmra.mxu2 %vm558_vm13, %v748_v5  ;;  %v1082_v35 = vsel %vm1079_vm11, %v1081_v34, %v1077_v33  ;;  %1590 = vmatpush.msra.mxu3 %v3056_v49 }
 0x4a7   :  { %v1088_v38 = vsub.f32 1.0, %v1082_v35  ;;  %1115 = vmatpush.msrb.mxu1 %v3070_v63  ;;  %1234 = vmatpush.msrb.mxu2 %v3070_v63 }
 0x4a8   :  { %1591 = vmatpush.msra.mxu3 %v3070_v63  ;;  %1868 = vmatpush.msra.mxu0 %v3099_v2 }
 0x4a9   :  { %1152 = vmatpush.msra.mxu1 %v3087_v6 }
 0x4aa   :  { %1707 = vmatpush.msrb.mxu3 %v3040_v39 }
 0x4ab   :  { %v2256_v3 = vpop.eup %2255  ;;  %1153 = vmatpush.msra.mxu1 %v3092_v17 }
 0x4ac   :  { %v3033_v14 = vmul.f32 %v2256_v3, %v1088_v38  ;;  %1708 = vmatpush.msrb.mxu3 %v3048_v22 }
 0x4ad   :  { %1154 = vmatpush.msra.mxu1 %v3099_v2 }
 0x4ae   :  { %2102 = vmatmul.msk.f32.gmra.mxu2 %vm558_vm13, %v749_v23  ;;  %1709 = vmatpush.msrb.mxu3 %v3056_v49  ;;  %v3107_v23 = vld [vmem:[%s3366_s11 + $0x40] sm:$0xff] }
 0x4af   :  { %1155 = vmatpush.msra.mxu1 %v3107_v23  ;;  %1869 = vmatpush.msra.mxu0 %v3107_v23 }
 0x4b0   :  { %1710 = vmatpush.msrb.mxu3 %v3070_v63 }
 0x4b6   :  { %2103 = vmatmul.msk.f32.gmra.mxu2 %vm558_vm13, %v750_v24 }
 0x4be   :  { %2155 = vmatmul.msk.f32.vlgmr.msra.gmra.mxu2 %vm365_vm10, %v3033_v14 }
 0x4bf   :  { %1271 = vmatpush.msra.mxu2 %v3087_v6 }
 0x4c1   :  { %1272 = vmatpush.msra.mxu2 %v3092_v17 }
 0x4c3   :  { %1273 = vmatpush.msra.mxu2 %v3099_v2 }
 0x4c5   :  { %1274 = vmatpush.msra.mxu2 %v3107_v23 }
 0x509   :  { %v795_v42 = vpop.f32.mrf.mxu2 }
 0x50a   :  { %v825_v44 = vmin.f32 %v795_v42, 0.0  ;;  %vm817_vm13 = vcmp.gt.f32.partialorder %v795_v42, 0.0 }
 0x50c   :  { %v834_v20 = vmul.f32 1.442695, %v825_v44 }
 0x50e   :  { %2257 = vpow2.f32 %v834_v20 }
 0x511   :  { %v798_v48 = vpop.f32.mrf.mxu2 }
 0x512   :  { %v826_v51 = vmin.f32 %v798_v48, 0.0  ;;  %vm818_vm12 = vcmp.gt.f32.partialorder %v798_v48, 0.0 }
 0x514   :  { %v2258_v52 = vpop.eup %2257  ;;  %v836_v53 = vmul.f32 1.442695, %v826_v51 }
 0x515   :  { %v2105_v54 = vadd.f32 -1.0, %v2258_v52 }
 0x516   :  { %2259 = vpow2.f32 %v836_v53 }
 0x517   :  { %v857_v56 = vsel %vm817_vm13, %v795_v42, %v2105_v54 }
 0x518   :  { %2113 = vmatmul.msk.f32.gmra.mxu1 %vm365_vm10, %v857_v56  ;;  %2125 = vmatmul.msk.f32.gmra.mxu3 %vm365_vm10, %v857_v56 }
 0x519   :  { %2137 = vmatmul.msk.f32.gmra.mxu0 %vm365_vm10, %v857_v56  ;;  %v801_v57 = vpop.f32.mrf.mxu2 }
 0x51a   :  { %v827_v58 = vmin.f32 %v801_v57, 0.0  ;;  %vm819_vm14 = vcmp.gt.f32.partialorder %v801_v57, 0.0 }
 0x51c   :  { %v2260_v43 = vpop.eup %2259  ;;  %v838_v50 = vmul.f32 1.442695, %v827_v58 }
 0x51d   :  { %v2106_v60 = vadd.f32 -1.0, %v2260_v43 }
 0x51e   :  { %2261 = vpow2.f32 %v838_v50 }
 0x51f   :  { %v858_v61 = vsel %vm818_vm12, %v798_v48, %v2106_v60 }
 0x520   :  { %2114 = vmatmul.msk.f32.gmra.mxu1 %vm365_vm10, %v858_v61  ;;  %2126 = vmatmul.msk.f32.gmra.mxu3 %vm365_vm10, %v858_v61 }
 0x521   :  { %2138 = vmatmul.msk.f32.gmra.mxu0 %vm365_vm10, %v858_v61  ;;  %v804_v62 = vpop.f32.mrf.mxu2 }
 0x522   :  { %v828_v0 = vmin.f32 %v804_v62, 0.0  ;;  %vm820_vm15 = vcmp.gt.f32.partialorder %v804_v62, 0.0 }
 0x524   :  { %v2262_v1 = vpop.eup %2261  ;;  %v840_v4 = vmul.f32 1.442695, %v828_v0 }
 0x525   :  { %v2107_v5 = vadd.f32 -1.0, %v2262_v1 }
 0x526   :  { %2263 = vpow2.f32 %v840_v4 }
 0x527   :  { %v859_v8 = vsel %vm819_vm14, %v801_v57, %v2107_v5 }
 0x528   :  { %2115 = vmatmul.msk.f32.gmra.mxu1 %vm365_vm10, %v859_v8  ;;  %2127 = vmatmul.msk.f32.gmra.mxu3 %vm365_vm10, %v859_v8 }
 0x529   :  { %2139 = vmatmul.msk.f32.gmra.mxu0 %vm365_vm10, %v859_v8  ;;  %v807_v9 = vpop.f32.mrf.mxu2 }
 0x52a   :  { %v829_v11 = vmin.f32 %v807_v9, 0.0  ;;  %vm821_vm0 = vcmp.gt.f32.partialorder %v807_v9, 0.0 }
 0x52c   :  { %v2264_v12 = vpop.eup %2263  ;;  %v842_v13 = vmul.f32 1.442695, %v829_v11 }
 0x52d   :  { %v2108_v15 = vadd.f32 -1.0, %v2264_v12 }
 0x52e   :  { %2265 = vpow2.f32 %v842_v13 }
 0x52f   :  { %v860_v47 = vsel %vm820_vm15, %v804_v62, %v2108_v15 }
 0x530   :  { %2116 = vmatmul.msk.f32.gmra.mxu1 %vm365_vm10, %v860_v47  ;;  %2128 = vmatmul.msk.f32.gmra.mxu3 %vm365_vm10, %v860_v47 }
 0x531   :  { %2140 = vmatmul.msk.f32.gmra.mxu0 %vm365_vm10, %v860_v47  ;;  %v810_v18 = vpop.f32.mrf.mxu2 }
 0x532   :  { %v830_v19 = vmin.f32 %v810_v18, 0.0  ;;  %vm822_vm1 = vcmp.gt.f32.partialorder %v810_v18, 0.0 }
 0x534   :  { %v2266_v21 = vpop.eup %2265  ;;  %v844_v45 = vmul.f32 1.442695, %v830_v19 }
 0x535   :  { %v2109_v25 = vadd.f32 -1.0, %v2266_v21 }
 0x536   :  { %2267 = vpow2.f32 %v844_v45 }
 0x537   :  { %v861_v26 = vsel %vm821_vm0, %v807_v9, %v2109_v25 }
 0x538   :  { %2117 = vmatmul.msk.f32.gmra.mxu1 %vm365_vm10, %v861_v26  ;;  %2129 = vmatmul.msk.f32.gmra.mxu3 %vm365_vm10, %v861_v26 }
 0x539   :  { %2141 = vmatmul.msk.f32.gmra.mxu0 %vm365_vm10, %v861_v26  ;;  %v813_v27 = vpop.f32.mrf.mxu2 }
 0x53a   :  { %v831_v28 = vmin.f32 %v813_v27, 0.0  ;;  %vm823_vm2 = vcmp.gt.f32.partialorder %v813_v27, 0.0 }
 0x53c   :  { %v2268_v29 = vpop.eup %2267  ;;  %v846_v30 = vmul.f32 1.442695, %v831_v28 }
 0x53d   :  { %v2110_v31 = vadd.f32 -1.0, %v2268_v29 }
 0x53e   :  { %2269 = vpow2.f32 %v846_v30 }
 0x53f   :  { %v862_v32 = vsel %vm822_vm1, %v810_v18, %v2110_v31 }
 0x540   :  { %2118 = vmatmul.msk.f32.gmra.mxu1 %vm365_vm10, %v862_v32  ;;  %2130 = vmatmul.msk.f32.gmra.mxu3 %vm365_vm10, %v862_v32 }
 0x541   :  { %2142 = vmatmul.msk.f32.gmra.mxu0 %vm365_vm10, %v862_v32  ;;  %v1137_v51 = vpop.f32.mrf.mxu2 }
 0x544   :  { %v2270_v10 = vpop.eup %2269 }
 0x545   :  { %v2111_v24 = vadd.f32 -1.0, %v2270_v10 }
 0x547   :  { %v863_v33 = vsel %vm823_vm2, %v813_v27, %v2111_v24 }
 0x548   :  { %2119 = vmatmul.msk.f32.gmra.mxu1 %vm365_vm10, %v863_v33  ;;  %2131 = vmatmul.msk.f32.gmra.mxu3 %vm365_vm10, %v863_v33 }
 0x549   :  { %2143 = vmatmul.msk.f32.gmra.mxu0 %vm365_vm10, %v863_v33 }
 0x550   :  { %2154 = vmatmul.msk.f32.vlgmr.msrb.gmra.mxu1 %vm365_vm10, %v3033_v14 }
 0x551   :  { %1251 = vmatpush.msrb.mxu1 %v2950_v36 }
 0x553   :  { %1252 = vmatpush.msrb.mxu1 %v2955_v37 }
 0x555   :  { %1253 = vmatpush.msrb.mxu1 %v2964_v40 }
 0x557   :  { %1254 = vmatpush.msrb.mxu1 %v2973_v46 }
 0x558   :  { %2156 = vmatmul.msk.f32.vlgmr.msra.gmra.mxu1 %vm365_vm10, %v3033_v14 }
 0x559   :  { %1350 = vmatpush.msra.mxu1 %v3040_v39 }
 0x55b   :  { %1351 = vmatpush.msra.mxu1 %v3048_v22 }
 0x55d   :  { %1352 = vmatpush.msra.mxu1 %v3056_v49 }
 0x55f   :  { %1353 = vmatpush.msra.mxu1 %v3070_v63 }
 0x595   :  { %v914_v34 = vpop.f32.mrf.mxu1 }
 0x596   :  { %v915_v56 = vadd.f32 %v2883_v41, %v914_v34  ;;  %v1010_v19 = vpop.f32.mrf.mxu0 }
 0x597   :  { %v1011_v28 = vadd.f32 %v3016_v7, %v1010_v19 }
 0x59b   :  { %v962_v44 = vpop.f32.mrf.mxu3 }
 0x59c   :  { %v963_v20 = vadd.f32 %v2894_v59, %v962_v44 }
 0x59d   :  { %v3138_v35 = vpop.f32.mrf.mxu1 }
 0x59e   :  { %v1180_v52 = vadd.f32 %v1137_v51, %v963_v20 }
 0x5a0   :  { %v2158_v53 = vmul.f32 -1.442695, %v1180_v52 }
 0x5a2   :  { %2271 = vpow2.f32 %v2158_v53 }
 0x5a3   :  { %v965_v53 = vpop.f32.mrf.mxu3 }
 0x5a5   :  { %v3140_v3 = vpop.f32.mrf.mxu1 }
 0x5a8   :  { %v2272_v43 = vpop.eup %2271 }
 0x5a9   :  { %v1184_v60 = vadd.f32 1.0, %v2272_v43 }
 0x5ab   :  { %v1196_v29 = vand.u32 2147483648, %v1184_v60  ;;  %vm1190_vm8 = vweird.f32 %v1184_v60  ;;  %v1194_v31 = vand.u32 2147483647, %v1184_v60 }
 0x5ad   :  { %v3142_v38 = vpop.f32.mrf.mxu1  ;;  %v1197_v24 = vor.u32 1.1754944e-38, %v1196_v29  ;;  %vm1195_vm11 = vcmp.eq.f32.partialorder %v1194_v31, 8.507059e+37 }
 0x5b5   :  { %v3144_v42 = vpop.f32.mrf.mxu1 }
 0x5bd   :  { %v3147_v48 = vpop.f32.mrf.mxu1 }
 0x5c5   :  { %v3149_v54 = vpop.f32.mrf.mxu1 }
 0x5cd   :  { %v1117_v57 = vpop.f32.mrf.mxu1 }
 0x5ce   :  { %v1160_v58 = vadd.f32 %v1117_v57, %v915_v56  ;;  %v966_v56 = vadd.f32 %v2894_v59, %v965_v53 }
 0x5d0   :  { %v2157_v50 = vmul.f32 -1.442695, %v1160_v58 }
 0x5d2   :  { %2273 = vpow2.f32 %v2157_v50  ;;  %v918_v50 = vadd.f32 %v2883_v41, %v3138_v35 }
 0x5d3   :  { %2275 = vrcp.f32 %v1184_v60 }
 0x5d5   :  { %v1157_v47 = vpop.f32.mrf.mxu1 }
 0x5d6   :  { %v1158_v45 = vadd.f32 %v3011_v16, %v1157_v47 }
 0x5d8   :  { %v2274_v61 = vpop.eup %2273 }
 0x5d9   :  { %v1164_v62 = vadd.f32 1.0, %v2274_v61  ;;  %v2276_v0 = vpop.eup %2275 }
 0x5da   :  { %v1186_v1 = vmul.f32 %v2276_v0, %v1184_v60  ;;  %vm1191_vm7 = vweird.f32 %v2276_v0 }
 0x5db   :  { %2277 = vrcp.f32 %v1164_v62  ;;  %v1176_v11 = vand.u32 2147483648, %v1164_v62  ;;  %v1174_v13 = vand.u32 2147483647, %v1164_v62  ;;  %vm1170_vm4 = vweird.f32 %v1164_v62  ;;  %vm1192_vm9 = vmor %vm1190_vm8, %vm1191_vm7 }
 0x5dc   :  { %v1187_v8 = vsub.f32 1.0, %v1186_v1 }
 0x5dd   :  { %v1177_v21 = vor.u32 1.1754944e-38, %v1176_v11  ;;  %vm1175_vm6 = vcmp.eq.f32.partialorder %v1174_v13, 8.507059e+37 }
 0x5de   :  { %v1188_v15 = vmul.f32 %v2276_v0, %v1187_v8 }
 0x5e0   :  { %v1189_v27 = vadd.f32 %v2276_v0, %v1188_v15 }
 0x5e1   :  { %v2278_v4 = vpop.eup %2277 }
 0x5e2   :  { %v1166_v5 = vmul.f32 %v2278_v4, %v1164_v62  ;;  %vm1171_vm3 = vweird.f32 %v2278_v4  ;;  %v1193_v10 = vsel %vm1192_vm9, %v2276_v0, %v1189_v27 }
 0x5e3   :  { %vm1172_vm5 = vmor %vm1170_vm4, %vm1171_vm3  ;;  %v1198_v33 = vsel %vm1195_vm11, %v1197_v24, %v1193_v10 }
 0x5e4   :  { %v1167_v9 = vsub.f32 1.0, %v1166_v5  ;;  %v1203_v34 = vsub.f32 1.0, %v1198_v33  ;;  %v1205_v51 = vmul.f32 %v1198_v33, %v3033_v14 }
 0x5e6   :  { %v1168_v12 = vmul.f32 %v2278_v4, %v1167_v9 }
 0x5e8   :  { %v1169_v18 = vadd.f32 %v2278_v4, %v1168_v12 }
 0x5ea   :  { %v1173_v25 = vsel %vm1172_vm5, %v2278_v4, %v1169_v18 }
 0x5eb   :  { %v1178_v26 = vsel %vm1175_vm6, %v1177_v21, %v1173_v25  ;;  %v1013_v25 = vpop.f32.mrf.mxu0 }
 0x5ec   :  { %v1200_v30 = vmul.f32 %v1178_v26, %v1158_v45  ;;  %v1014_v31 = vadd.f32 %v3016_v7, %v1013_v25 }
 0x5ee   :  { %v1201_v32 = vadd.f32 %v1200_v30, %v1011_v28 }
 0x5f0   :  { %2279 = vtanh.f32 %v1201_v32 }
 0x5f6   :  { %v2280_v44 = vpop.eup %2279 }
 0x5f7   :  { %v1204_v20 = vmul.f32 %v2280_v44, %v1203_v34 }
 0x5f9   :  { %v3155_v52 = vadd.f32 %v1205_v51, %v1204_v20 }
 0x5fb   :  { %2160 = vmatmul.msk.f32.vlgmr.msrb.gmra.mxu2 %vm365_vm10, %v3155_v52  ;;  %2161 = vmatmul.msk.f32.vlgmr.msrb.gmra.mxu1 %vm365_vm10, %v3155_v52 }
 0x5fc   :  { %1370 = vmatpush.msrb.mxu2 %v2950_v36  ;;  %1390 = vmatpush.msrb.mxu1 %v3087_v6 }
 0x5fe   :  { %1371 = vmatpush.msrb.mxu2 %v2955_v37  ;;  %1391 = vmatpush.msrb.mxu1 %v3092_v17 }
 0x600   :  { %1372 = vmatpush.msrb.mxu2 %v2964_v40  ;;  %1392 = vmatpush.msrb.mxu1 %v3099_v2 }
 0x602   :  { %1373 = vmatpush.msrb.mxu2 %v2973_v46  ;;  %1393 = vmatpush.msrb.mxu1 %v3107_v23 }
 0x603   :  { %2162 = vmatmul.msk.f32.vlgmr.msra.gmra.mxu2 %vm365_vm10, %v3155_v52 }
 0x604   :  { %1469 = vmatpush.msra.mxu2 %v3040_v39 }
 0x606   :  { %1470 = vmatpush.msra.mxu2 %v3048_v22 }
 0x608   :  { %1471 = vmatpush.msra.mxu2 %v3056_v49 }
 0x60a   :  { %1472 = vmatpush.msra.mxu2 %v3070_v63 }
 0x678   :  { %v1256_v57 = vpop.f32.mrf.mxu1 }
 0x679   :  { %v1299_v58 = vadd.f32 %v1256_v57, %v966_v56 }
 0x67b   :  { %v2164_v43 = vmul.f32 -1.442695, %v1299_v58 }
 0x67d   :  { %2281 = vpow2.f32 %v2164_v43  ;;  %v921_v43 = vadd.f32 %v2883_v41, %v3140_v3 }
 0x67e   :  { %v1236_v60 = vpop.f32.mrf.mxu2 }
 0x67f   :  { %v1279_v61 = vadd.f32 %v1236_v60, %v918_v50 }
 0x681   :  { %v2163_v62 = vmul.f32 -1.442695, %v1279_v61  ;;  %v968_v61 = vpop.f32.mrf.mxu3 }
 0x683   :  { %v2282_v0 = vpop.eup %2281  ;;  %2283 = vpow2.f32 %v2163_v62 }
 0x684   :  { %v1303_v1 = vadd.f32 1.0, %v2282_v0  ;;  %v969_v0 = vadd.f32 %v2894_v59, %v968_v61 }
 0x686   :  { %2285 = vrcp.f32 %v1303_v1  ;;  %v1276_v21 = vpop.f32.mrf.mxu2  ;;  %v1315_v32 = vand.u32 2147483648, %v1303_v1  ;;  %vm1309_vm1 = vweird.f32 %v1303_v1  ;;  %v1313_v24 = vand.u32 2147483647, %v1303_v1 }
 0x687   :  { %v1277_v27 = vadd.f32 %v3011_v16, %v1276_v21  ;;  %v1016_v21 = vpop.f32.mrf.mxu0 }
 0x688   :  { %v1316_v44 = vor.u32 1.1754944e-38, %v1315_v32  ;;  %vm1314_vm3 = vcmp.eq.f32.partialorder %v1313_v24, 8.507059e+37 }
 0x689   :  { %v2284_v4 = vpop.eup %2283 }
 0x68a   :  { %v1283_v5 = vadd.f32 1.0, %v2284_v4 }
 0x68c   :  { %2287 = vrcp.f32 %v1283_v5  ;;  %v2286_v8 = vpop.eup %2285  ;;  %v1295_v47 = vand.u32 2147483648, %v1283_v5  ;;  %v1293_v35 = vand.u32 2147483647, %v1283_v5  ;;  %vm1289_vm12 = vweird.f32 %v1283_v5 }
 0x68d   :  { %v1305_v9 = vmul.f32 %v2286_v8, %v1303_v1  ;;  %vm1310_vm0 = vweird.f32 %v2286_v8 }
 0x68e   :  { %v1296_v26 = vor.u32 1.1754944e-38, %v1295_v47  ;;  %vm1294_vm15 = vcmp.eq.f32.partialorder %v1293_v35, 8.507059e+37  ;;  %vm1311_vm2 = vmor %vm1309_vm1, %vm1310_vm0 }
 0x68f   :  { %v1306_v13 = vsub.f32 1.0, %v1305_v9 }
 0x691   :  { %v1307_v19 = vmul.f32 %v2286_v8, %v1306_v13 }
 0x692   :  { %v2288_v11 = vpop.eup %2287 }
 0x693   :  { %v1285_v12 = vmul.f32 %v2288_v11, %v1283_v5  ;;  %vm1290_vm13 = vweird.f32 %v2288_v11  ;;  %v1308_v29 = vadd.f32 %v2286_v8, %v1307_v19 }
 0x694   :  { %vm1291_vm14 = vmor %vm1289_vm12, %vm1290_vm13 }
 0x695   :  { %v1286_v15 = vsub.f32 1.0, %v1285_v12  ;;  %v1312_v34 = vsel %vm1311_vm2, %v2286_v8, %v1308_v29 }
 0x696   :  { %v1317_v20 = vsel %vm1314_vm3, %v1316_v44, %v1312_v34 }
 0x697   :  { %v1287_v18 = vmul.f32 %v2288_v11, %v1286_v15  ;;  %v1322_v51 = vsub.f32 1.0, %v1317_v20  ;;  %v1324_v57 = vmul.f32 %v1317_v20, %v3155_v52 }
 0x699   :  { %v1288_v45 = vadd.f32 %v2288_v11, %v1287_v18 }
 0x69b   :  { %v1292_v28 = vsel %vm1291_vm14, %v2288_v11, %v1288_v45 }
 0x69c   :  { %v1297_v30 = vsel %vm1294_vm15, %v1296_v26, %v1292_v28 }
 0x69d   :  { %v1319_v10 = vmul.f32 %v1297_v30, %v1277_v27  ;;  %v1017_v30 = vadd.f32 %v3016_v7, %v1016_v21 }
 0x69f   :  { %v1320_v33 = vadd.f32 %v1319_v10, %v1014_v31 }
 0x6a1   :  { %2289 = vtanh.f32 %v1320_v33 }
 0x6a7   :  { %v2290_v53 = vpop.eup %2289 }
 0x6a8   :  { %v1323_v56 = vmul.f32 %v2290_v53, %v1322_v51 }
 0x6aa   :  { %v3181_v58 = vadd.f32 %v1324_v57, %v1323_v56 }
 0x6ac   :  { %2166 = vmatmul.msk.f32.vlgmr.msra.gmra.mxu1 %vm365_vm10, %v3181_v58  ;;  %2167 = vmatmul.msk.f32.vlgmr.msrb.gmra.mxu2 %vm365_vm10, %v3181_v58 }
 0x6ad   :  { %1489 = vmatpush.msra.mxu1 %v2950_v36  ;;  %1509 = vmatpush.msrb.mxu2 %v3087_v6 }
 0x6af   :  { %1490 = vmatpush.msra.mxu1 %v2955_v37  ;;  %1510 = vmatpush.msrb.mxu2 %v3092_v17 }
 0x6b1   :  { %1491 = vmatpush.msra.mxu1 %v2964_v40  ;;  %1511 = vmatpush.msrb.mxu2 %v3099_v2 }
 0x6b3   :  { %1492 = vmatpush.msra.mxu1 %v2973_v46  ;;  %1512 = vmatpush.msrb.mxu2 %v3107_v23 }
 0x6b4   :  { %2168 = vmatmul.msk.f32.vlgmr.msrb.gmra.mxu1 %vm365_vm10, %v3181_v58 }
 0x6b5   :  { %1608 = vmatpush.msrb.mxu1 %v2950_v36 }
 0x6b7   :  { %1609 = vmatpush.msrb.mxu1 %v2955_v37 }
 0x6b9   :  { %1610 = vmatpush.msrb.mxu1 %v2964_v40 }
 0x6bb   :  { %1611 = vmatpush.msrb.mxu1 %v2973_v46 }
 0x729   :  { %v1355_v50 = vpop.f32.mrf.mxu1 }
 0x72a   :  { %v1398_v60 = vadd.f32 %v1355_v50, %v921_v43 }
 0x72c   :  { %v2169_v62 = vmul.f32 -1.442695, %v1398_v60 }
 0x72e   :  { %2291 = vpow2.f32 %v2169_v62 }
 0x72f   :  { %v1375_v1 = vpop.f32.mrf.mxu2 }
 0x730   :  { %v1418_v4 = vadd.f32 %v1375_v1, %v969_v0 }
 0x731   :  { %v1395_v19 = vpop.f32.mrf.mxu1 }
 0x732   :  { %v2170_v5 = vmul.f32 -1.442695, %v1418_v4  ;;  %v1396_v28 = vadd.f32 %v3011_v16, %v1395_v19 }
 0x734   :  { %v2292_v8 = vpop.eup %2291  ;;  %2293 = vpow2.f32 %v2170_v5 }
 0x735   :  { %v1402_v9 = vadd.f32 1.0, %v2292_v8 }
 0x737   :  { %2295 = vrcp.f32 %v1402_v9  ;;  %v1414_v3 = vand.u32 2147483648, %v1402_v9  ;;  %v1412_v18 = vand.u32 2147483647, %v1402_v9  ;;  %vm1408_vm5 = vweird.f32 %v1402_v9 }
 0x739   :  { %v1415_v26 = vor.u32 1.1754944e-38, %v1414_v3  ;;  %vm1413_vm7 = vcmp.eq.f32.partialorder %v1412_v18, 8.507059e+37 }
 0x73a   :  { %v2294_v11 = vpop.eup %2293 }
 0x73b   :  { %v1422_v12 = vadd.f32 1.0, %v2294_v11 }
 0x73d   :  { %v2296_v13 = vpop.eup %2295  ;;  %2297 = vrcp.f32 %v1422_v12  ;;  %v1434_v10 = vand.u32 2147483648, %v1422_v12  ;;  %v1432_v33 = vand.u32 2147483647, %v1422_v12  ;;  %vm1428_vm9 = vweird.f32 %v1422_v12 }
 0x73e   :  { %v1404_v15 = vmul.f32 %v2296_v13, %v1402_v9  ;;  %vm1409_vm4 = vweird.f32 %v2296_v13 }
 0x73f   :  { %vm1410_vm6 = vmor %vm1408_vm5, %vm1409_vm4  ;;  %v1435_v20 = vor.u32 1.1754944e-38, %v1434_v10  ;;  %vm1433_vm13 = vcmp.eq.f32.partialorder %v1432_v33, 8.507059e+37 }
 0x740   :  { %v1405_v41 = vsub.f32 1.0, %v1404_v15 }
 0x742   :  { %v1406_v47 = vmul.f32 %v2296_v13, %v1405_v41 }
 0x743   :  { %v2298_v35 = vpop.eup %2297 }
 0x744   :  { %v1424_v45 = vmul.f32 %v2298_v35, %v1422_v12  ;;  %v1407_v25 = vadd.f32 %v2296_v13, %v1406_v47  ;;  %vm1429_vm8 = vweird.f32 %v2298_v35 }
 0x745   :  { %vm1430_vm11 = vmor %vm1428_vm9, %vm1429_vm8 }
 0x746   :  { %v1425_v27 = vsub.f32 1.0, %v1424_v45  ;;  %v1411_v29 = vsel %vm1410_vm6, %v2296_v13, %v1407_v25 }
 0x747   :  { %v1416_v31 = vsel %vm1413_vm7, %v1415_v26, %v1411_v29 }
 0x748   :  { %v1426_v32 = vmul.f32 %v2298_v35, %v1425_v27  ;;  %v1438_v24 = vmul.f32 %v1416_v31, %v1396_v28 }
 0x74a   :  { %v1427_v34 = vadd.f32 %v2298_v35, %v1426_v32  ;;  %v1439_v44 = vadd.f32 %v1438_v24, %v1017_v30 }
 0x74c   :  { %v1431_v51 = vsel %vm1430_vm11, %v2298_v35, %v1427_v34  ;;  %2299 = vtanh.f32 %v1439_v44  ;;  %v1019_v35 = vpop.f32.mrf.mxu0 }
 0x74d   :  { %v1436_v53 = vsel %vm1433_vm13, %v1435_v20, %v1431_v51  ;;  %v1020_v27 = vadd.f32 %v3016_v7, %v1019_v35  ;;  %v2203_v7 = vld [vmem:[%s3355_s14] ss:$0 sm:$0xff] }
 0x74e   :  { %v1441_v56 = vsub.f32 1.0, %v1436_v53  ;;  %v1443_v50 = vmul.f32 %v1436_v53, %v3181_v58  ;;  %v3254_v51 = vadd.f32 %v2203_v7, %v2693_v55 }
 0x750   :  { %v3257_v53 = vmul.f32 0.70710677, %v3254_v51 }
 0x752   :  { %v2300_v57 = vpop.eup %2299 }
 0x753   :  { %v1442_v43 = vmul.f32 %v2300_v57, %v1441_v56  ;;  %v1976_v56 = vand.u32 2147483647, %v3257_v53 }
 0x755   :  { %v3207_v60 = vadd.f32 %v1443_v50, %v1442_v43  ;;  %v1977_v57 = vmul.f32 0.3275911, %v1976_v56 }
 0x757   :  { %2172 = vmatmul.msk.f32.vlgmr.msra.gmra.mxu2 %vm365_vm10, %v3207_v60  ;;  %2173 = vmatmul.msk.f32.vlgmr.msra.gmra.mxu1 %vm365_vm10, %v3207_v60 }
 0x758   :  { %1628 = vmatpush.msra.mxu2 %v3087_v6  ;;  %1747 = vmatpush.msra.mxu1 %v3087_v6  ;;  %v971_v6 = vpop.f32.mrf.mxu3 }
 0x75a   :  { %1629 = vmatpush.msra.mxu2 %v3092_v17  ;;  %1748 = vmatpush.msra.mxu1 %v3092_v17  ;;  %v972_v17 = vadd.f32 %v2894_v59, %v971_v6 }
 0x75c   :  { %1630 = vmatpush.msra.mxu2 %v3099_v2  ;;  %1749 = vmatpush.msra.mxu1 %v3099_v2 }
 0x75e   :  { %1631 = vmatpush.msra.mxu2 %v3107_v23  ;;  %1750 = vmatpush.msra.mxu1 %v3107_v23  ;;  %v3231_v23 = vld [vmem:[%s3365_s12] ss:$0 sm:$0xff] }
 0x75f   :  { %2174 = vmatmul.msk.f32.vlgmr.msrb.gmra.mxu2 %vm365_vm10, %v3207_v60 }
 0x760   :  { %1826 = vmatpush.msrb.mxu2 %v3040_v39  ;;  %v924_v39 = vadd.f32 %v3231_v23, %v3142_v38 }
 0x762   :  { %1827 = vmatpush.msrb.mxu2 %v3048_v22 }
 0x764   :  { %1828 = vmatpush.msrb.mxu2 %v3056_v49 }
 0x766   :  { %1829 = vmatpush.msrb.mxu2 %v3070_v63 }
 0x7d4   :  { %v1494_v61 = vpop.f32.mrf.mxu1 }
 0x7d5   :  { %v1537_v2 = vadd.f32 %v1494_v61, %v972_v17 }
 0x7d7   :  { %v2176_v62 = vmul.f32 -1.442695, %v1537_v2 }
 0x7d9   :  { %2301 = vpow2.f32 %v2176_v62 }
 0x7da   :  { %v1474_v22 = vpop.f32.mrf.mxu2 }
 0x7db   :  { %v1517_v0 = vadd.f32 %v1474_v22, %v924_v39  ;;  %v3267_v22 = vld [vmem:[%s3365_s12 + $0x1] ss:$0 sm:$0xff] }
 0x7dd   :  { %v2175_v49 = vmul.f32 -1.442695, %v1517_v0 }
 0x7df   :  { %v2302_v1 = vpop.eup %2301  ;;  %2303 = vpow2.f32 %v2175_v49 }
 0x7e0   :  { %v1541_v63 = vadd.f32 1.0, %v2302_v1 }
 0x7e2   :  { %2305 = vrcp.f32 %v1541_v63  ;;  %v1514_v47 = vpop.f32.mrf.mxu2  ;;  %v1553_v28 = vand.u32 2147483648, %v1541_v63  ;;  %vm1547_vm2 = vweird.f32 %v1541_v63  ;;  %v1551_v30 = vand.u32 2147483647, %v1541_v63 }
 0x7e3   :  { %v1515_v21 = vadd.f32 %v3011_v16, %v1514_v47 }
 0x7e4   :  { %v1554_v10 = vor.u32 1.1754944e-38, %v1553_v28  ;;  %vm1552_vm4 = vcmp.eq.f32.partialorder %v1551_v30, 8.507059e+37 }
 0x7e5   :  { %v2304_v59 = vpop.eup %2303 }
 0x7e6   :  { %v1521_v4 = vadd.f32 1.0, %v2304_v59 }
 0x7e8   :  { %2307 = vrcp.f32 %v1521_v4  ;;  %v2306_v5 = vpop.eup %2305  ;;  %v1533_v15 = vand.u32 2147483648, %v1521_v4  ;;  %v1531_v38 = vand.u32 2147483647, %v1521_v4  ;;  %vm1527_vm14 = vweird.f32 %v1521_v4 }
 0x7e9   :  { %v1543_v8 = vmul.f32 %v2306_v5, %v1541_v63  ;;  %vm1548_vm1 = vweird.f32 %v2306_v5 }
 0x7ea   :  { %v1534_v19 = vor.u32 1.1754944e-38, %v1533_v15  ;;  %vm1532_vm0 = vcmp.eq.f32.partialorder %v1531_v38, 8.507059e+37  ;;  %vm1549_vm3 = vmor %vm1547_vm2, %vm1548_vm1  ;;  %vm2009_vm2 = vcmp.ge.f32.partialorder %v3257_v53, 0.0 }
 0x7eb   :  { %v1544_v12 = vsub.f32 1.0, %v1543_v8 }
 0x7ed   :  { %v1545_v3 = vmul.f32 %v2306_v5, %v1544_v12 }
 0x7ee   :  { %v2308_v9 = vpop.eup %2307 }
 0x7ef   :  { %v1523_v11 = vmul.f32 %v2308_v9, %v1521_v4  ;;  %vm1528_vm12 = vweird.f32 %v2308_v9  ;;  %v1546_v25 = vadd.f32 %v2306_v5, %v1545_v3 }
 0x7f0   :  { %vm1529_vm15 = vmor %vm1527_vm14, %vm1528_vm12 }
 0x7f1   :  { %v1524_v13 = vsub.f32 1.0, %v1523_v11  ;;  %v1550_v32 = vsel %vm1549_vm3, %v2306_v5, %v1546_v25  ;;  %v927_v5 = vadd.f32 %v3231_v23, %v3144_v42  ;;  %v2015_v42 = vld [vmem:[%s3367_s16 + $0x8] sm:$0xff]  ;;  %vm2016_vm3 = vcmask 130048  }
 0x7f2   :  { %v1555_v24 = vsel %vm1552_vm4, %v1554_v10, %v1550_v32 }
 0x7f3   :  { %v1525_v41 = vmul.f32 %v2308_v9, %v1524_v13  ;;  %v1560_v33 = vsub.f32 1.0, %v1555_v24  ;;  %v1562_v44 = vmul.f32 %v1555_v24, %v3207_v60 }
 0x7f5   :  { %v1526_v18 = vadd.f32 %v2308_v9, %v1525_v41 }
 0x7f7   :  { %v1530_v45 = vsel %vm1529_vm15, %v2308_v9, %v1526_v18 }
 0x7f8   :  { %v1535_v26 = vsel %vm1532_vm0, %v1534_v19, %v1530_v45  ;;  %v2003_v19 = vsub.f32 0.0, %v1976_v56 }
 0x7f9   :  { %v1557_v29 = vmul.f32 %v1535_v26, %v1515_v21  ;;  %v2014_v21 = vld [vmem:[%s3367_s16] sm:$0xff] }
 0x7fa   :  { %v2004_v26 = vmul.f32 %v2003_v19, %v1976_v56  ;;  %v3281_v56 = vld [vmem:[%s3365_s12 + $0x3] ss:$0 sm:$0xff] }
 0x7fb   :  { %v1558_v31 = vadd.f32 %v1557_v29, %v1020_v27 }
 0x7fd   :  { %2309 = vtanh.f32 %v1558_v31  ;;  %v2005_v31 = vmul.f32 1.442695, %v2004_v26 }
 0x803   :  { %v2310_v16 = vpop.eup %2309 }
 0x804   :  { %v1561_v34 = vmul.f32 %v2310_v16, %v1560_v33 }
 0x806   :  { %v3238_v20 = vadd.f32 %v1562_v44, %v1561_v34 }
 0x808   :  { %2178 = vmatmul.msk.f32.vlgmr.msra.gmra.mxu3 %vm365_vm10, %v3238_v20  ;;  %2179 = vmatmul.msk.f32.vlgmr.msrb.gmra.mxu1 %vm365_vm10, %v3238_v20 }
 0x809   :  { %2180 = vmatmul.msk.f32.vlgmr.msra.gmra.mxu2 %vm365_vm10, %v3238_v20  ;;  %1846 = vmatpush.msra.mxu3 %v2950_v36  ;;  %v1978_v36 = vadd.f32 1.0, %v1977_v57  ;;  %v1022_v57 = vpop.f32.mrf.mxu0 }
 0x80a   :  { %2034 = vmatpush.msrb.mxu1 %v2015_v42 }
 0x80b   :  { %1847 = vmatpush.msra.mxu3 %v2955_v37  ;;  %2311 = vrcp.f32 %v1978_v36  ;;  %v974_v37 = vpop.f32.mrf.mxu3  ;;  %v1990_v61 = vand.u32 2147483648, %v1978_v36  ;;  %vm1984_vm6 = vweird.f32 %v1978_v36  ;;  %v1988_v55 = vand.u32 2147483647, %v1978_v36 }
 0x80c   :  { %v975_v0 = vadd.f32 %v3267_v22, %v974_v37  ;;  %2035 = vmatpush.msrb.mxu1 %v2014_v21 }
 0x80d   :  { %1848 = vmatpush.msra.mxu3 %v2964_v40  ;;  %v1991_v39 = vor.u32 1.1754944e-38, %v1990_v61  ;;  %vm1989_vm8 = vcmp.eq.f32.partialorder %v1988_v55, 8.507059e+37 }
 0x80f   :  { %1849 = vmatpush.msra.mxu3 %v2973_v46 }
 0x811   :  { %v2312_v43 = vpop.eup %2311 }
 0x812   :  { %v1980_v40 = vmul.f32 %v2312_v43, %v1978_v36  ;;  %vm1985_vm5 = vweird.f32 %v2312_v43 }
 0x813   :  { %v3260_v46 = vpop.f32.mrf.mxu3  ;;  %vm1986_vm7 = vmor %vm1984_vm6, %vm1985_vm5 }
 0x814   :  { %v1981_v50 = vsub.f32 1.0, %v1980_v40  ;;  %v978_v53 = vadd.f32 %v3267_v22, %v3260_v46 }
 0x816   :  { %v1982_v6 = vmul.f32 %v2312_v43, %v1981_v50 }
 0x818   :  { %v1983_v17 = vadd.f32 %v2312_v43, %v1982_v6 }
 0x81a   :  { %v1987_v2 = vsel %vm1986_vm7, %v2312_v43, %v1983_v17  ;;  %v3287_v17 = vld [vmem:[%s3365_s12 + $0x2] ss:$0 sm:$0xff] }
 0x81b   :  { %v3262_v62 = vpop.f32.mrf.mxu3  ;;  %v1992_v1 = vsel %vm1989_vm8, %v1991_v39, %v1987_v2  ;;  %v1023_v61 = vadd.f32 %v3287_v17, %v1022_v57 }
 0x81c   :  { %v1994_v4 = vmul.f32 1.0614054, %v1992_v1 }
 0x81e   :  { %v1995_v11 = vadd.f32 -1.4531521, %v1994_v4 }
 0x820   :  { %v1996_v15 = vmul.f32 %v1995_v11, %v1992_v1 }
 0x822   :  { %v1997_v38 = vadd.f32 1.4214138, %v1996_v15 }
 0x824   :  { %v1998_v18 = vmul.f32 %v1997_v38, %v1992_v1 }
 0x826   :  { %v1999_v45 = vadd.f32 -0.28449672, %v1998_v18  ;;  %v1025_v18 = vpop.f32.mrf.mxu0 }
 0x828   :  { %v2000_v29 = vmul.f32 %v1999_v45, %v1992_v1  ;;  %v930_v45 = vadd.f32 %v3231_v23, %v3147_v48 }
 0x82a   :  { %v2001_v16 = vadd.f32 0.2548296, %v2000_v29 }
 0x82c   :  { %v2002_v40 = vmul.f32 %v2001_v16, %v1992_v1 }
 0x885   :  { %v1613_v49 = vpop.f32.mrf.mxu1 }
 0x886   :  { %v1656_v63 = vadd.f32 %v1613_v49, %v975_v0 }
 0x888   :  { %v2182_v59 = vmul.f32 -1.442695, %v1656_v63 }
 0x88a   :  { %2313 = vpow2.f32 %v2182_v59 }
 0x88b   :  { %v1593_v8 = vpop.f32.mrf.mxu3 }
 0x88c   :  { %v1636_v9 = vadd.f32 %v1593_v8, %v927_v5  ;;  %v1633_v44 = vpop.f32.mrf.mxu2 }
 0x88d   :  { %v1634_v37 = vadd.f32 %v3281_v56, %v1633_v44 }
 0x88e   :  { %v2181_v12 = vmul.f32 -1.442695, %v1636_v9 }
 0x890   :  { %v2314_v13 = vpop.eup %2313  ;;  %2315 = vpow2.f32 %v2181_v12 }
 0x891   :  { %v1660_v41 = vadd.f32 1.0, %v2314_v13 }
 0x893   :  { %2317 = vrcp.f32 %v1660_v41  ;;  %v1672_v55 = vand.u32 2147483648, %v1660_v41  ;;  %vm1666_vm15 = vweird.f32 %v1660_v41  ;;  %v1670_v39 = vand.u32 2147483647, %v1660_v41 }
 0x895   :  { %v1673_v1 = vor.u32 1.1754944e-38, %v1672_v55  ;;  %vm1671_vm1 = vcmp.eq.f32.partialorder %v1670_v39, 8.507059e+37 }
 0x896   :  { %v2316_v3 = vpop.eup %2315 }
 0x897   :  { %v1640_v47 = vadd.f32 1.0, %v2316_v3  ;;  %v1974_v3 = vmul.f32 0.5, %v3254_v51 }
 0x899   :  { %2319 = vrcp.f32 %v1640_v47  ;;  %v2318_v35 = vpop.eup %2317  ;;  %v1652_v10 = vand.u32 2147483648, %v1640_v47  ;;  %v1650_v33 = vand.u32 2147483647, %v1640_v47  ;;  %vm1646_vm11 = vweird.f32 %v1640_v47 }
 0x89a   :  { %v1662_v25 = vmul.f32 %v2318_v35, %v1660_v41  ;;  %2321 = vpow2.f32 %v2005_v31  ;;  %vm1667_vm14 = vweird.f32 %v2318_v35 }
 0x89b   :  { %v1653_v36 = vor.u32 1.1754944e-38, %v1652_v10  ;;  %vm1651_vm12 = vcmp.eq.f32.partialorder %v1650_v33, 8.507059e+37  ;;  %vm1668_vm0 = vmor %vm1666_vm15, %vm1667_vm14 }
 0x89c   :  { %v1663_v30 = vsub.f32 1.0, %v1662_v25 }
 0x89e   :  { %v1664_v34 = vmul.f32 %v2318_v35, %v1663_v30 }
 0x89f   :  { %v2320_v27 = vpop.eup %2319 }
 0x8a0   :  { %v1642_v28 = vmul.f32 %v2320_v27, %v1640_v47  ;;  %vm1647_vm9 = vweird.f32 %v2320_v27  ;;  %v1665_v50 = vadd.f32 %v2318_v35, %v1664_v34  ;;  %v2322_v0 = vpop.eup %2321 }
 0x8a1   :  { %vm1648_vm13 = vmor %vm1646_vm11, %vm1647_vm9  ;;  %v2007_v63 = vmul.f32 %v2322_v0, %v2002_v40 }
 0x8a2   :  { %v1643_v32 = vsub.f32 1.0, %v1642_v28  ;;  %v1669_v59 = vsel %vm1668_vm0, %v2318_v35, %v1665_v50  ;;  %v3301_v35 = vpop.f32.mrf.mxu0 }
 0x8a3   :  { %v1674_v4 = vsel %vm1671_vm1, %v1673_v1, %v1669_v59  ;;  %v2008_v5 = vsub.f32 1.0, %v2007_v63 }
 0x8a4   :  { %v1644_v24 = vmul.f32 %v2320_v27, %v1643_v32  ;;  %v1679_v8 = vsub.f32 1.0, %v1674_v4  ;;  %v1681_v13 = vmul.f32 %v1674_v4, %v3238_v20 }
 0x8a5   :  { %v2010_v11 = vsub.f32 0.0, %v2008_v5 }
 0x8a6   :  { %v1645_v7 = vadd.f32 %v2320_v27, %v1644_v24 }
 0x8a7   :  { %v2011_v41 = vsel %vm2009_vm2, %v2008_v5, %v2010_v11  ;;  %v981_v11 = vadd.f32 %v3267_v22, %v3262_v62  ;;  %v1971_v22 = vld [vmem:[%s3369_s15 + $0x8] sm:$0xff] }
 0x8a8   :  { %v1649_v43 = vsel %vm1648_vm13, %v2320_v27, %v1645_v7  ;;  %v2012_v38 = vadd.f32 1.0, %v2011_v41 }
 0x8a9   :  { %v1654_v6 = vsel %vm1651_vm12, %v1653_v36, %v1649_v43 }
 0x8aa   :  { %v1676_v2 = vmul.f32 %v1654_v6, %v1634_v37  ;;  %v2013_v47 = vmul.f32 %v2012_v38, %v1974_v3  ;;  %v1026_v6 = vadd.f32 %v3287_v17, %v1025_v18  ;;  %v1973_v18 = vld [vmem:[%s3369_s15 + $0x18] sm:$0xff] }
 0x8ab   :  { %2055 = vmatpush.msra.mxu2 %v1973_v18 }
 0x8ac   :  { %v1677_v49 = vadd.f32 %v1676_v2, %v1023_v61 }
 0x8ae   :  { %2323 = vtanh.f32 %v1677_v49 }
 0x8b4   :  { %v2324_v9 = vpop.eup %2323 }
 0x8b5   :  { %v1680_v12 = vmul.f32 %v2324_v9, %v1679_v8  ;;  %v933_v9 = vadd.f32 %v3231_v23, %v3149_v54 }
 0x8b7   :  { %v3291_v15 = vadd.f32 %v1681_v13, %v1680_v12 }
 0x8b9   :  { %2184 = vmatmul.msk.f32.vlgmr.msrb.gmra.mxu3 %vm365_vm10, %v3291_v15  ;;  %2185 = vmatmul.msk.f32.vlgmr.msrb.gmra.mxu0 %vm365_vm10, %v3291_v15 }
 0x8ba   :  { %2186 = vmatmul.msk.f32.vlgmr.msra.gmra.mxu1 %vm365_vm10, %v3291_v15 }
 0x8c2   :  { %2196 = vmatmul.msk.f32.vlgmr.msrb.gmra.mxu1 %vm2016_vm3, %v2013_v47 }
 0x936   :  { %v1732_v19 = vpop.f32.mrf.mxu0 }
 0x937   :  { %v1775_v42 = vadd.f32 %v1732_v19, %v978_v53  ;;  %v1752_v7 = vpop.f32.mrf.mxu1  ;;  %v1972_v53 = vld [vmem:[%s3369_s15 + $0x10] sm:$0xff] }
 0x938   :  { %v1753_v37 = vadd.f32 %v3281_v56, %v1752_v7  ;;  %2056 = vmatpush.msra.mxu2 %v1972_v53 }
 0x939   :  { %v2188_v21 = vmul.f32 -1.442695, %v1775_v42  ;;  %v1970_v42 = vld [vmem:[%s3369_s15] sm:$0xff] }
 0x93a   :  { %2057 = vmatpush.msra.mxu2 %v1971_v22 }
 0x93b   :  { %2325 = vpow2.f32 %v2188_v21 }
 0x93c   :  { %v1712_v25 = vpop.f32.mrf.mxu3  ;;  %2058 = vmatpush.msra.mxu2 %v1970_v42 }
 0x93d   :  { %v1755_v26 = vadd.f32 %v1712_v25, %v930_v45  ;;  %v1094_v25 = vpop.permute.xlu1 %1093 }
 0x93f   :  { %v2187_v27 = vmul.f32 -1.442695, %v1755_v26 }
 0x941   :  { %v2326_v51 = vpop.eup %2325  ;;  %2327 = vpow2.f32 %v2187_v27 }
 0x942   :  { %v1779_v28 = vadd.f32 1.0, %v2326_v51 }
 0x944   :  { %2329 = vrcp.f32 %v1779_v28  ;;  %v1791_v61 = vand.u32 2147483648, %v1779_v28  ;;  %vm1785_vm9 = vweird.f32 %v1779_v28  ;;  %v1789_v2 = vand.u32 2147483647, %v1779_v28 }
 0x946   :  { %v1792_v49 = vor.u32 1.1754944e-38, %v1791_v61  ;;  %vm1790_vm13 = vcmp.eq.f32.partialorder %v1789_v2, 8.507059e+37  ;;  %v1096_v61 = vmul.f32 %v1094_v25, %v3033_v14 }
 0x947   :  { %v2328_v29 = vpop.eup %2327 }
 0x948   :  { %v1759_v30 = vadd.f32 1.0, %v2328_v29 }
 0x94a   :  { %2331 = vrcp.f32 %v1759_v30  ;;  %v2330_v31 = vpop.eup %2329  ;;  %v1771_v16 = vand.u32 2147483648, %v1759_v30  ;;  %v1769_v48 = vand.u32 2147483647, %v1759_v30  ;;  %vm1765_vm5 = vweird.f32 %v1759_v30 }
 0x94b   :  { %v1781_v32 = vmul.f32 %v2330_v31, %v1779_v28  ;;  %vm1786_vm8 = vweird.f32 %v2330_v31 }
 0x94c   :  { %v1772_v36 = vor.u32 1.1754944e-38, %v1771_v16  ;;  %vm1770_vm7 = vcmp.eq.f32.partialorder %v1769_v48, 8.507059e+37  ;;  %vm1787_vm11 = vmor %vm1785_vm9, %vm1786_vm8  ;;  %v1212_v16 = vpop.permute.xlu2 %1211 }
 0x94d   :  { %v1782_v24 = vsub.f32 1.0, %v1781_v32 }
 0x94f   :  { %v1783_v44 = vmul.f32 %v2330_v31, %v1782_v24 }
 0x950   :  { %v2332_v46 = vpop.eup %2331 }
 0x951   :  { %v1761_v10 = vmul.f32 %v2332_v46, %v1759_v30  ;;  %vm1766_vm4 = vweird.f32 %v2332_v46  ;;  %v1784_v40 = vadd.f32 %v2330_v31, %v1783_v44  ;;  %v1331_v30 = vpop.permute.xlu0 %1330 }
 0x952   :  { %vm1767_vm6 = vmor %vm1765_vm5, %vm1766_vm4 }
 0x953   :  { %v1762_v33 = vsub.f32 1.0, %v1761_v10  ;;  %v1788_v0 = vsel %vm1787_vm11, %v2330_v31, %v1784_v40  ;;  %v1214_v40 = vmul.f32 %v1212_v16, %v3155_v52  ;;  %vm2068_vm11 = vcmask 31744  }
 0x954   :  { %v1793_v63 = vsel %vm1790_vm13, %v1792_v49, %v1788_v0 }
 0x955   :  { %v1763_v34 = vmul.f32 %v2332_v46, %v1762_v33  ;;  %v1798_v59 = vsub.f32 1.0, %v1793_v63  ;;  %v1800_v5 = vmul.f32 %v1793_v63, %v3291_v15  ;;  %v1215_v0 = vadd.f32 %v1214_v40, %v1096_v61  ;;  %v1688_v63 = vpop.permute.xlu2 %1687  ;;  %v2037_v40 = vpop.f32.mrf.mxu1 }
 0x957   :  { %v1764_v57 = vadd.f32 %v2332_v46, %v1763_v34 }
 0x959   :  { %v1768_v43 = vsel %vm1767_vm6, %v2332_v46, %v1764_v57  ;;  %v1450_v57 = vpop.permute.xlu1 %1449  ;;  %v1569_v2 = vpop.permute.xlu0 %1568 }
 0x95a   :  { %v1773_v50 = vsel %vm1770_vm7, %v1772_v36, %v1768_v43  ;;  %v1029_v36 = vadd.f32 %v3287_v17, %v3301_v35  ;;  %v1452_v49 = vmul.f32 %v1450_v57, %v3207_v60  ;;  %v1571_v52 = vmul.f32 %v1569_v2, %v3238_v20 }
 0x95b   :  { %v1795_v55 = vmul.f32 %v1773_v50, %v1753_v37 }
 0x95d   :  { %v1796_v39 = vadd.f32 %v1795_v55, %v1026_v6 }
 0x95f   :  { %2333 = vtanh.f32 %v1796_v39 }
 0x965   :  { %v2334_v1 = vpop.eup %2333 }
 0x966   :  { %v1799_v4 = vmul.f32 %v2334_v1, %v1798_v59 }
 0x968   :  { %v3310_v8 = vadd.f32 %v1800_v5, %v1799_v4  ;;  %v1690_v4 = vmul.f32 %v1688_v63, %v3291_v15  ;;  %v1807_v5 = vpop.permute.xlu1 %1806 }
 0x96a   :  { %2190 = vmatmul.msk.f32.vlgmr.msrb.gmra.mxu2 %vm365_vm10, %v3310_v8  ;;  %2191 = vmatmul.msk.f32.vlgmr.msra.gmra.mxu3 %vm365_vm10, %v3310_v8 }
 0x96b   :  { %2192 = vmatmul.msk.f32.vlgmr.msra.gmra.mxu0 %vm365_vm10, %v3310_v8 }
 0x9e8   :  { %v1871_v46 = vpop.f32.mrf.mxu0 }
 0x9e9   :  { %v1872_v34 = vadd.f32 %v3281_v56, %v1871_v46  ;;  %v1333_v56 = vmul.f32 %v1331_v30, %v3181_v58 }
 0x9eb   :  { %v1334_v35 = vadd.f32 %v1333_v56, %v1215_v0 }
 0x9ed   :  { %v1831_v12 = vpop.f32.mrf.mxu2  ;;  %v1851_v13 = vpop.f32.mrf.mxu3  ;;  %v1453_v1 = vadd.f32 %v1452_v49, %v1334_v35 }
 0x9ee   :  { %v1874_v41 = vadd.f32 %v1831_v12, %v933_v9  ;;  %v1894_v38 = vadd.f32 %v1851_v13, %v981_v11  ;;  %v1809_v12 = vmul.f32 %v1807_v5, %v3310_v8 }
 0x9ef   :  { %v1572_v11 = vadd.f32 %v1571_v52, %v1453_v1 }
 0x9f0   :  { %v2193_v3 = vmul.f32 -1.442695, %v1874_v41  ;;  %v2194_v47 = vmul.f32 -1.442695, %v1894_v38  ;;  %v1926_v41 = vpop.permute.xlu0 %1925 }
 0x9f1   :  { %v1691_v13 = vadd.f32 %v1690_v4, %v1572_v11 }
 0x9f2   :  { %2335 = vpow2.f32 %v2193_v3 }
 0x9f3   :  { %2337 = vpow2.f32 %v2194_v47  ;;  %v1810_v38 = vadd.f32 %v1809_v12, %v1691_v13 }
 0x9f8   :  { %v2336_v54 = vpop.eup %2335 }
 0x9f9   :  { %v2338_v23 = vpop.eup %2337  ;;  %v1878_v62 = vadd.f32 1.0, %v2336_v54 }
 0x9fa   :  { %v1898_v19 = vadd.f32 1.0, %v2338_v23 }
 0x9fb   :  { %2339 = vrcp.f32 %v1878_v62  ;;  %v1890_v28 = vand.u32 2147483648, %v1878_v62  ;;  %v1888_v32 = vand.u32 2147483647, %v1878_v62  ;;  %vm1884_vm14 = vweird.f32 %v1878_v62 }
 0x9fc   :  { %2341 = vrcp.f32 %v1898_v19  ;;  %v1910_v43 = vand.u32 2147483648, %v1898_v19  ;;  %vm1904_vm2 = vweird.f32 %v1898_v19  ;;  %v1908_v50 = vand.u32 2147483647, %v1898_v19 }
 0x9fd   :  { %v1891_v33 = vor.u32 1.1754944e-38, %v1890_v28  ;;  %vm1889_vm0 = vcmp.eq.f32.partialorder %v1888_v32, 8.507059e+37 }
 0x9fe   :  { %v1911_v39 = vor.u32 1.1754944e-38, %v1910_v43  ;;  %vm1909_vm4 = vcmp.eq.f32.partialorder %v1908_v50, 8.507059e+37  ;;  %v2208_v43 = vld [vmem:[%s3368_s17] ss:$0 sm:$0xff] }
 0xa01   :  { %v2340_v21 = vpop.eup %2339 }
 0xa02   :  { %v2342_v45 = vpop.eup %2341  ;;  %v1880_v26 = vmul.f32 %v2340_v21, %v1878_v62  ;;  %vm1885_vm12 = vweird.f32 %v2340_v21 }
 0xa03   :  { %v1900_v27 = vmul.f32 %v2342_v45, %v1898_v19  ;;  %vm1886_vm15 = vmor %vm1884_vm14, %vm1885_vm12  ;;  %vm1905_vm1 = vweird.f32 %v2342_v45 }
 0xa04   :  { %v1881_v51 = vsub.f32 1.0, %v1880_v26  ;;  %vm1906_vm3 = vmor %vm1904_vm2, %vm1905_vm1 }
 0xa05   :  { %v1901_v29 = vsub.f32 1.0, %v1900_v27 }
 0xa06   :  { %v1882_v31 = vmul.f32 %v2340_v21, %v1881_v51 }
 0xa07   :  { %v1902_v10 = vmul.f32 %v2342_v45, %v1901_v29 }
 0xa08   :  { %v1883_v24 = vadd.f32 %v2340_v21, %v1882_v31 }
 0xa09   :  { %v1903_v7 = vadd.f32 %v2342_v45, %v1902_v10 }
 0xa0a   :  { %v1887_v48 = vsel %vm1886_vm15, %v2340_v21, %v1883_v24 }
 0xa0b   :  { %v1892_v44 = vsel %vm1889_vm0, %v1891_v33, %v1887_v48  ;;  %v1907_v55 = vsel %vm1906_vm3, %v2342_v45, %v1903_v7 }
 0xa0c   :  { %v1914_v37 = vmul.f32 %v1892_v44, %v1872_v34  ;;  %v1912_v17 = vsel %vm1909_vm4, %v1911_v39, %v1907_v55 }
 0xa0d   :  { %v1917_v59 = vsub.f32 1.0, %v1912_v17  ;;  %v1919_v9 = vmul.f32 %v1912_v17, %v3310_v8 }
 0xa0e   :  { %v1915_v6 = vadd.f32 %v1914_v37, %v1029_v36 }
 0xa10   :  { %2343 = vtanh.f32 %v1915_v6 }
 0xa16   :  { %v2344_v14 = vpop.eup %2343 }
 0xa17   :  { %v1918_v58 = vmul.f32 %v2344_v14, %v1917_v59 }
 0xa19   :  { %v1920_v60 = vadd.f32 %v1919_v9, %v1918_v58 }
 0xa1b   :  { %v1928_v3 = vmul.f32 %v1926_v41, %v1920_v60 }
 0xa1d   :  { %v1929_v47 = vadd.f32 %v1928_v3, %v1810_v38 }
 0xa1f   :  { %v1931_v20 = vmul.f32 0.70710677, %v1929_v47  ;;  %v1930_v57 = vmul.f32 0.5, %v1929_v47 }
 0xa21   :  { %v1932_v18 = vand.u32 2147483647, %v1931_v20  ;;  %vm1965_vm9 = vcmp.ge.f32.partialorder %v1931_v20, 0.0 }
 0xa23   :  { %v1933_v53 = vmul.f32 0.3275911, %v1932_v18  ;;  %v1959_v26 = vsub.f32 0.0, %v1932_v18 }
 0xa25   :  { %v1934_v54 = vadd.f32 1.0, %v1933_v53  ;;  %v1960_v28 = vmul.f32 %v1959_v26, %v1932_v18 }
 0xa27   :  { %2345 = vrcp.f32 %v1934_v54  ;;  %v1946_v22 = vand.u32 2147483648, %v1934_v54  ;;  %v1944_v42 = vand.u32 2147483647, %v1934_v54  ;;  %vm1940_vm6 = vweird.f32 %v1934_v54 }
 0xa28   :  { %v1961_v31 = vmul.f32 1.442695, %v1960_v28 }
 0xa29   :  { %v1947_v8 = vor.u32 1.1754944e-38, %v1946_v22  ;;  %vm1945_vm8 = vcmp.eq.f32.partialorder %v1944_v42, 8.507059e+37 }
 0xa2a   :  { %2347 = vpow2.f32 %v1961_v31 }
 0xa2d   :  { %v2346_v15 = vpop.eup %2345 }
 0xa2e   :  { %v1936_v23 = vmul.f32 %v2346_v15, %v1934_v54  ;;  %vm1941_vm5 = vweird.f32 %v2346_v15 }
 0xa2f   :  { %vm1942_vm7 = vmor %vm1940_vm6, %vm1941_vm5 }
 0xa30   :  { %v1937_v62 = vsub.f32 1.0, %v1936_v23  ;;  %v2348_v16 = vpop.eup %2347 }
 0xa32   :  { %v1938_v19 = vmul.f32 %v2346_v15, %v1937_v62 }
 0xa34   :  { %v1939_v21 = vadd.f32 %v2346_v15, %v1938_v19 }
 0xa36   :  { %v1943_v45 = vsel %vm1942_vm7, %v2346_v15, %v1939_v21 }
 0xa37   :  { %v1948_v25 = vsel %vm1945_vm8, %v1947_v8, %v1943_v45 }
 0xa38   :  { %v1950_v27 = vmul.f32 1.0614054, %v1948_v25 }
 0xa3a   :  { %v1951_v51 = vadd.f32 -1.4531521, %v1950_v27 }
 0xa3c   :  { %v1952_v29 = vmul.f32 %v1951_v51, %v1948_v25 }
 0xa3e   :  { %v1953_v30 = vadd.f32 1.4214138, %v1952_v29 }
 0xa40   :  { %v1954_v32 = vmul.f32 %v1953_v30, %v1948_v25 }
 0xa42   :  { %v1955_v46 = vadd.f32 -0.28449672, %v1954_v32 }
 0xa44   :  { %v1956_v10 = vmul.f32 %v1955_v46, %v1948_v25 }
 0xa46   :  { %v1957_v24 = vadd.f32 0.2548296, %v1956_v10 }
 0xa48   :  { %v1958_v33 = vmul.f32 %v1957_v24, %v1948_v25 }
 0xa4a   :  { %v1963_v34 = vmul.f32 %v2348_v16, %v1958_v33 }
 0xa4c   :  { %v1964_v48 = vsub.f32 1.0, %v1963_v34 }
 0xa4e   :  { %v1966_v44 = vsub.f32 0.0, %v1964_v48 }
 0xa50   :  { %v1967_v7 = vsel %vm1965_vm9, %v1964_v48, %v1966_v44 }
 0xa51   :  { %v1968_v36 = vadd.f32 1.0, %v1967_v7 }
 0xa53   :  { %v1969_v37 = vmul.f32 %v1968_v36, %v1930_v57 }
 0xa55   :  { %2197 = vmatmul.msk.f32.vlgmr.msra.gmra.mxu2 %vm365_vm10, %v1969_v37 }
 0xad8   :  { %v2060_v50 = vpop.f32.mrf.mxu2 }
 0xad9   :  { %v2061_v6 = vadd.f32 %v2060_v50, %v2037_v40 }
 0xadb   :  { %v2067_v61 = vadd.f32 %v2208_v43, %v2061_v6 }
 0xadd   :  { %2069 = vst.msk [vmem:[%s3370_s18] sm:$0xff] %vm2068_vm11, %v2067_v61 }

</bundles_post_ra>
